<compile_context>
chip_gen: v5e
topology: v5e:2x2
jax: 0.10.0
libtpu: 0.0.40
codegen_flags: <defaults>
</compile_context>

<pallas_src>
import jax
import jax.numpy as jnp
from jax.experimental import pallas as pl
from jax.experimental.pallas import tpu as pltpu


# ---------------------------------------------------------------------------
# Fused Conv2d(3x3, stride 1, pad 1) + bias + ReLU + MaxPool2d(2,2) kernel.
# grid = (batch, pooled-row blocks); the zero-padded image stays VMEM-resident
# across the row-block axis (its block index does not depend on j).
# ---------------------------------------------------------------------------
def _make_conv_relu_pool_kernel(th, w, cin, cout, pool_pad):
    big_k = (cin % 8 == 0)            # sublane-aligned taps -> single big-K matmul
    hp = th + 2 * pool_pad            # pool-scratch rows
    wp = w + 2 * pool_pad             # pool-scratch cols
    tpo = hp // 2                     # pooled rows produced per grid step
    wpo = wp // 2                     # pooled cols

    def epilogue(acc, b_ref, o_ref, cs_ref, vs_ref):
        conv = jnp.maximum(acc + b_ref[...], 0.0).reshape(th, w, cout)
        if pool_pad:                  # ReLU >= 0  =>  0-padding == -inf padding
            cs_ref[...] = jnp.zeros_like(cs_ref)
        cs_ref[pl.ds(pool_pad, th), pl.ds(pool_pad, w), :] = conv
        vs_ref[...] = jnp.maximum(cs_ref[pl.ds(0, tpo, 2)],      # even conv rows
                                  cs_ref[pl.ds(1, tpo, 2)])      # odd  conv rows
        o_ref[0] = jnp.maximum(vs_ref[:, pl.ds(0, wpo, 2), :],   # even conv cols
                               vs_ref[:, pl.ds(1, wpo, 2), :])   # odd  conv cols

    def row_start():
        r0 = pl.program_id(1) * th
        return pl.multiple_of(r0, 8) if th % 8 == 0 else r0

    if big_k:
        def kernel(x_ref, w_ref, b_ref, o_ref, cs_ref, vs_ref, patch_ref):
            r0 = row_start()
            # im2col: 9 shifted (th, w, cin) slabs placed side by side in K.
            for dy in range(3):
                for dx in range(3):
                    slab = x_ref[0, pl.ds(r0 + dy, th), pl.ds(dx, w), :]
                    patch_ref[:, pl.ds((dy * 3 + dx) * cin, cin)] = (
                        slab.reshape(th * w, cin))
            acc = jnp.dot(patch_ref[...], w_ref[...],
                          preferred_element_type=jnp.float32)
            epilogue(acc, b_ref, o_ref, cs_ref, vs_ref)
    else:
        def kernel(x_ref, w_ref, b_ref, o_ref, cs_ref, vs_ref):
            r0 = row_start()
            acc = jnp.zeros((th * w, cout), jnp.float32)
            for dy in range(3):
                for dx in range(3):
                    slab = x_ref[0, pl.ds(r0 + dy, th), pl.ds(dx, w), :]
                    acc = acc + jnp.dot(slab.reshape(th * w, cin), w_ref[dy, dx],
                                        preferred_element_type=jnp.float32)
            epilogue(acc, b_ref, o_ref, cs_ref, vs_ref)

    return kernel, big_k


def conv3x3_relu_pool(x, w, b, pool_pad=0):
    n, h, wd, cin = x.shape
    cout = w.shape[3]
    assert h % 2 == 0 and wd % 2 == 0

    if pool_pad:
        # MaxPool padding=1 needs the whole (small) conv plane per step.
        tp_out, th, n_row_blocks = (h + 2) // 2, h, 1
    else:
        hp_out = h // 2
        tp = next(t for t in (8, 4, 2, 1) if hp_out % t == 0)   # pooled rows / step
        tp_out, th, n_row_blocks = tp, 2 * tp, hp_out // tp
    out_h = (h + 2 * pool_pad) // 2
    out_w = (wd + 2 * pool_pad) // 2

    xp = jnp.pad(x, ((0, 0), (1, 1), (1, 1), (0, 0)))   # conv zero halo
    # TODO(synk): the 1-pixel conv halo could be emitted by the previous layer's
    # epilogue instead of this extra XLA pad (one activation rewrite per layer).

    kernel, big_k = _make_conv_relu_pool_kernel(th, wd, cin, cout, pool_pad)
    w_arg = w.reshape(9 * cin, cout) if big_k else w
    w_spec = (pl.BlockSpec((9 * cin, cout), lambda i, j: (0, 0)) if big_k
              else pl.BlockSpec((3, 3, cin, cout), lambda i, j: (0, 0, 0, 0)))

    scratch_shapes = [
        pltpu.VMEM((th + 2 * pool_pad, wd + 2 * pool_pad, cout), jnp.float32),
        pltpu.VMEM(((th + 2 * pool_pad) // 2, wd + 2 * pool_pad, cout),
                   jnp.float32),
    ]
    if big_k:
        scratch_shapes.append(pltpu.VMEM((th * wd, 9 * cin), jnp.float32))

    return pl.pallas_call(
        kernel,
        out_shape=jax.ShapeDtypeStruct((n, out_h, out_w, cout), jnp.float32),
        grid_spec=pltpu.PrefetchScalarGridSpec(
            num_scalar_prefetch=0,
            grid=(n, n_row_blocks),
            in_specs=[
                pl.BlockSpec((1, h + 2, wd + 2, cin), lambda i, j: (i, 0, 0, 0)),
                w_spec,
                pl.BlockSpec((1, cout), lambda i, j: (0, 0)),
            ],
            out_specs=pl.BlockSpec((1, tp_out, out_w, cout),
                                   lambda i, j: (i, j, 0, 0)),
            scratch_shapes=scratch_shapes),
        compiler_params=pltpu.CompilerParams(
            dimension_semantics=("parallel", "parallel")),
    )(xp, w_arg, b.reshape(1, cout))


# ---------------------------------------------------------------------------
# FC head: out = (x @ W1 + b1) @ W2 + b2 (no activation in between, exactly as
# forward() does).  Tiled over the flattened K dim with a VMEM accumulator so
# fc1_w is streamed (it does NOT fit VMEM at the module's real 107648x625 size);
# the tiny second matmul is fused into the final-step epilogue.
# ---------------------------------------------------------------------------
def _fc_kernel(x_ref, w1_ref, b1_ref, w2_ref, b2_ref, o_ref, acc_ref):
    k = pl.program_id(0)

    @pl.when(k == 0)
    def _():
        acc_ref[...] = jnp.zeros_like(acc_ref)

    acc_ref[...] += jnp.dot(x_ref[...], w1_ref[...],
                            preferred_element_type=jnp.float32)

    @pl.when(k == pl.num_programs(0) - 1)
    def _():
        h = acc_ref[...] + b1_ref[...]
        o_ref[...] = (jnp.dot(h, w2_ref[...],
                              preferred_element_type=jnp.float32) + b2_ref[...])


def fc_head(x, w1, b1, w2, b2):
    n, flat = x.shape
    nh = w1.shape[1]
    c = w2.shape[1]

    tk = next((t for t in (2048, 1024, 640, 512, 384, 256, 128) if flat % t == 0),
              None)
    if tk is None:                       # ragged K: zero-pad (mathematical no-op)
        tk = 512
        pad_k = (-flat) % tk
        x = jnp.pad(x, ((0, 0), (0, pad_k)))
        w1 = jnp.pad(w1, ((0, pad_k), (0, 0)))
        flat = flat + pad_k
    kb = flat // tk

    return pl.pallas_call(
        _fc_kernel,
        out_shape=jax.ShapeDtypeStruct((n, c), jnp.float32),
        grid_spec=pltpu.PrefetchScalarGridSpec(
            num_scalar_prefetch=0,
            grid=(kb,),
            in_specs=[
                pl.BlockSpec((n, tk), lambda k: (0, k)),
                pl.BlockSpec((tk, nh), lambda k: (k, 0)),
                pl.BlockSpec((1, nh), lambda k: (0, 0)),
                pl.BlockSpec((nh, c), lambda k: (0, 0)),
                pl.BlockSpec((1, c), lambda k: (0, 0)),
            ],
            out_specs=pl.BlockSpec((n, c), lambda k: (0, 0)),
            scratch_shapes=[pltpu.VMEM((n, nh), jnp.float32)]),
        compiler_params=pltpu.CompilerParams(
            dimension_semantics=("arbitrary",)),
    )(x, w1, b1.reshape(1, nh), w2, b2.reshape(1, c))


# ---------------------------------------------------------------------------
# Full model forward (Pallas path) and a pure-JAX reference.
# ---------------------------------------------------------------------------
def harshil_cnn_forward(x_nchw, p):
    x = jnp.transpose(x_nchw, (0, 2, 3, 1)).astype(jnp.float32)   # NCHW -> NHWC
    x = conv3x3_relu_pool(x, p["w1"], p["b1"], pool_pad=0)
    x = conv3x3_relu_pool(x, p["w2"], p["b2"], pool_pad=0)
    x = conv3x3_relu_pool(x, p["w3"], p["b3"], pool_pad=1)
    # flatten in PyTorch NCHW order (matches x.view(N, -1))
    x = jnp.transpose(x, (0, 3, 1, 2)).reshape(x.shape[0], -1)
    return fc_head(x, p["fc1_w"], p["fc1_b"], p["fc2_w"], p["fc2_b"])


def reference_forward(x_nchw, p):
    x = jnp.transpose(x_nchw, (0, 2, 3, 1)).astype(jnp.float32)

    def conv(x, w, b):
        y = jax.lax.conv_general_dilated(
            x, w, window_strides=(1, 1), padding=((1, 1), (1, 1)),
            dimension_numbers=("NHWC", "HWIO", "NHWC"))
        return jax.nn.relu(y + b)

    def pool(x, pad=0):
        if pad:
            x = jnp.pad(x, ((0, 0), (pad, pad), (pad, pad), (0, 0)),
                        constant_values=-jnp.inf)
        return jax.lax.reduce_window(x, -jnp.inf, jax.lax.max,
                                     (1, 2, 2, 1), (1, 2, 2, 1), "VALID")

    x = pool(conv(x, p["w1"], p["b1"]))
    x = pool(conv(x, p["w2"], p["b2"]))
    x = pool(conv(x, p["w3"], p["b3"]), pad=1)
    x = jnp.transpose(x, (0, 3, 1, 2)).reshape(x.shape[0], -1)
    return (x @ p["fc1_w"] + p["fc1_b"]) @ p["fc2_w"] + p["fc2_b"]


# ---------------------------------------------------------------------------
# Deterministic parameter init (shapes follow the module's __init__).
# ---------------------------------------------------------------------------
def init_params(key, channels, pic_size, num_classes):
    ks = jax.random.split(key, 10)

    def uniform(k, shape, limit):
        return jax.random.uniform(k, shape, jnp.float32, -limit, limit)

    def conv_init(kw, kb, c_in, c_out):
        lim = 1.0 / jnp.sqrt(c_in * 9.0)
        return uniform(kw, (3, 3, c_in, c_out), lim), uniform(kb, (c_out,), lim)

    def xavier(kw, fan_in, fan_out):
        lim = jnp.sqrt(6.0 / (fan_in + fan_out))
        return uniform(kw, (fan_in, fan_out), lim)

    w1, b1 = conv_init(ks[0], ks[1], channels, 32)
    w2, b2 = conv_init(ks[2], ks[3], 32, 64)
    w3, b3 = conv_init(ks[4], ks[5], 64, 128)
    s3 = pic_size // 4 // 2 + 1          # layer3 pool uses padding=1
    flat = 128 * s3 * s3                 # == 107648 at pic_size=224 (module default)
    fc1_w = xavier(ks[6], flat, 625)
    fc1_b = uniform(ks[7], (625,), 1.0 / jnp.sqrt(float(flat)))
    fc2_w = xavier(ks[8], 625, num_classes)
    fc2_b = uniform(ks[9], (num_classes,), 1.0 / jnp.sqrt(625.0))
    return dict(w1=w1, b1=b1, w2=w2, b2=b2, w3=w3, b3=b3,
                fc1_w=fc1_w, fc1_b=fc1_b, fc2_w=fc2_w, fc2_b=fc2_b)


if __name__ == "__main__":
    # Small config: channels=3, pic_size=32, num_classes=10.
    # (The module hard-codes fc1 in_features=107648, implying a 224x224 input;
    #  the flatten size is derived from pic_size here so the example stays
    #  small while preserving the forward-pass structure.)
    channels, pic_size, num_classes, batch = 3, 32, 10, 2
    key = jax.random.PRNGKey(0)
    k_param, k_x = jax.random.split(key)
    params = init_params(k_param, channels, pic_size, num_classes)
    x = jax.random.normal(k_x, (batch, channels, pic_size, pic_size), jnp.float32)

    out = jax.block_until_ready(harshil_cnn_forward(x, params))
    ref = jax.block_until_ready(reference_forward(x, params))

    assert out.shape == (batch, num_classes), out.shape
    assert jnp.allclose(out, ref, rtol=5e-3, atol=5e-3), (
        f"max abs err {float(jnp.max(jnp.abs(out - ref)))}")
    print("KERNEL_OK")
</pallas_src>

<mosaic_0001>
module attributes {stable_mosaic.version = 11 : i64} {
  func.func @kernel(%arg0: i32, %arg1: i32, %arg2: memref<1x34x34x3xf32, #tpu.memory_space<vmem>>, %arg3: memref<3x3x3x32xf32, #tpu.memory_space<vmem>>, %arg4: memref<1x32xf32, #tpu.memory_space<vmem>>, %arg5: memref<1x8x16x32xf32, #tpu.memory_space<vmem>>, %arg6: memref<16x32x32xf32, #tpu.memory_space<vmem>>, %arg7: memref<8x32x32xf32, #tpu.memory_space<vmem>>) attributes {dimension_semantics = [#tpu.dimension_semantics<parallel>, #tpu.dimension_semantics<parallel>], iteration_bounds = array<i64: 2, 2>, scalar_prefetch = 0 : i64, scratch_operands = 2 : i64, tpu.core_type = #tpu.core_type<tc>, window_params = [{transform_indices = @transform_0, window_bounds = array<i64: 1, 34, 34, 3>}, {pipeline_mode = #tpu.pipeline_mode<synchronous>, transform_indices = @transform_1, window_bounds = array<i64: 3, 3, 3, 32>}, {pipeline_mode = #tpu.pipeline_mode<synchronous>, transform_indices = @transform_2, window_bounds = array<i64: 1, 32>}, {transform_indices = @transform_3, window_bounds = array<i64: 1, 8, 16, 32>}]} {
    %c16_i32 = arith.constant 16 : i32
    %0 = arith.muli %arg1, %c16_i32 : i32
    %1 = tpu.assume_multiple %0, 8 : i32
    %cst = arith.constant 0.000000e+00 : f32
    %2 = vector.broadcast %cst : f32 to vector<512x32xf32>
    %c0_i32 = arith.constant 0 : i32
    %3 = arith.addi %1, %c0_i32 : i32
    %c0 = arith.constant 0 : index
    %4 = arith.index_cast %3 : i32 to index
    %c0_0 = arith.constant 0 : index
    %c0_1 = arith.constant 0 : index
    %5 = vector.load %arg2[%c0, %4, %c0_0, %c0_1] : memref<1x34x34x3xf32, #tpu.memory_space<vmem>>, vector<1x16x32x3xf32>
    %6 = vector.shape_cast %5 : vector<1x16x32x3xf32> to vector<16x32x3xf32>
    %7 = vector.shape_cast %6 : vector<16x32x3xf32> to vector<512x3xf32>
    %c0_2 = arith.constant 0 : index
    %c0_3 = arith.constant 0 : index
    %c0_4 = arith.constant 0 : index
    %c0_5 = arith.constant 0 : index
    %8 = vector.load %arg3[%c0_2, %c0_3, %c0_4, %c0_5] : memref<3x3x3x32xf32, #tpu.memory_space<vmem>>, vector<1x1x3x32xf32>
    %9 = vector.shape_cast %8 : vector<1x1x3x32xf32> to vector<3x32xf32>
    %cst_6 = arith.constant dense<0.000000e+00> : vector<512x32xf32>
    %10 = tpu.matmul %7, %9, %cst_6 {dimension_numbers = #tpu.dot_dimension_numbers<[1], [0], [0], [1], [0, 0, 1, 1], [], []>} : vector<512x3xf32>, vector<3x32xf32>, vector<512x32xf32> -> vector<512x32xf32>
    %11 = arith.addf %2, %10 : vector<512x32xf32>
    %c0_i32_7 = arith.constant 0 : i32
    %12 = arith.addi %1, %c0_i32_7 : i32
    %c0_8 = arith.constant 0 : index
    %13 = arith.index_cast %12 : i32 to index
    %c1 = arith.constant 1 : index
    %c0_9 = arith.constant 0 : index
    %14 = vector.load %arg2[%c0_8, %13, %c1, %c0_9] : memref<1x34x34x3xf32, #tpu.memory_space<vmem>>, vector<1x16x32x3xf32>
    %15 = vector.shape_cast %14 : vector<1x16x32x3xf32> to vector<16x32x3xf32>
    %16 = vector.shape_cast %15 : vector<16x32x3xf32> to vector<512x3xf32>
    %c0_10 = arith.constant 0 : index
    %c1_11 = arith.constant 1 : index
    %c0_12 = arith.constant 0 : index
    %c0_13 = arith.constant 0 : index
    %17 = vector.load %arg3[%c0_10, %c1_11, %c0_12, %c0_13] : memref<3x3x3x32xf32, #tpu.memory_space<vmem>>, vector<1x1x3x32xf32>
    %18 = vector.shape_cast %17 : vector<1x1x3x32xf32> to vector<3x32xf32>
    %cst_14 = arith.constant dense<0.000000e+00> : vector<512x32xf32>
    %19 = tpu.matmul %16, %18, %cst_14 {dimension_numbers = #tpu.dot_dimension_numbers<[1], [0], [0], [1], [0, 0, 1, 1], [], []>} : vector<512x3xf32>, vector<3x32xf32>, vector<512x32xf32> -> vector<512x32xf32>
    %20 = arith.addf %11, %19 : vector<512x32xf32>
    %c0_i32_15 = arith.constant 0 : i32
    %21 = arith.addi %1, %c0_i32_15 : i32
    %c0_16 = arith.constant 0 : index
    %22 = arith.index_cast %21 : i32 to index
    %c2 = arith.constant 2 : index
    %c0_17 = arith.constant 0 : index
    %23 = vector.load %arg2[%c0_16, %22, %c2, %c0_17] : memref<1x34x34x3xf32, #tpu.memory_space<vmem>>, vector<1x16x32x3xf32>
    %24 = vector.shape_cast %23 : vector<1x16x32x3xf32> to vector<16x32x3xf32>
    %25 = vector.shape_cast %24 : vector<16x32x3xf32> to vector<512x3xf32>
    %c0_18 = arith.constant 0 : index
    %c2_19 = arith.constant 2 : index
    %c0_20 = arith.constant 0 : index
    %c0_21 = arith.constant 0 : index
    %26 = vector.load %arg3[%c0_18, %c2_19, %c0_20, %c0_21] : memref<3x3x3x32xf32, #tpu.memory_space<vmem>>, vector<1x1x3x32xf32>
    %27 = vector.shape_cast %26 : vector<1x1x3x32xf32> to vector<3x32xf32>
    %cst_22 = arith.constant dense<0.000000e+00> : vector<512x32xf32>
    %28 = tpu.matmul %25, %27, %cst_22 {dimension_numbers = #tpu.dot_dimension_numbers<[1], [0], [0], [1], [0, 0, 1, 1], [], []>} : vector<512x3xf32>, vector<3x32xf32>, vector<512x32xf32> -> vector<512x32xf32>
    %29 = arith.addf %20, %28 : vector<512x32xf32>
    %c1_i32 = arith.constant 1 : i32
    %30 = arith.addi %1, %c1_i32 : i32
    %c0_23 = arith.constant 0 : index
    %31 = arith.index_cast %30 : i32 to index
    %c0_24 = arith.constant 0 : index
    %c0_25 = arith.constant 0 : index
    %32 = vector.load %arg2[%c0_23, %31, %c0_24, %c0_25] : memref<1x34x34x3xf32, #tpu.memory_space<vmem>>, vector<1x16x32x3xf32>
    %33 = vector.shape_cast %32 : vector<1x16x32x3xf32> to vector<16x32x3xf32>
    %34 = vector.shape_cast %33 : vector<16x32x3xf32> to vector<512x3xf32>
    %c1_26 = arith.constant 1 : index
    %c0_27 = arith.constant 0 : index
    %c0_28 = arith.constant 0 : index
    %c0_29 = arith.constant 0 : index
    %35 = vector.load %arg3[%c1_26, %c0_27, %c0_28, %c0_29] : memref<3x3x3x32xf32, #tpu.memory_space<vmem>>, vector<1x1x3x32xf32>
    %36 = vector.shape_cast %35 : vector<1x1x3x32xf32> to vector<3x32xf32>
    %cst_30 = arith.constant dense<0.000000e+00> : vector<512x32xf32>
    %37 = tpu.matmul %34, %36, %cst_30 {dimension_numbers = #tpu.dot_dimension_numbers<[1], [0], [0], [1], [0, 0, 1, 1], [], []>} : vector<512x3xf32>, vector<3x32xf32>, vector<512x32xf32> -> vector<512x32xf32>
    %38 = arith.addf %29, %37 : vector<512x32xf32>
    %c1_i32_31 = arith.constant 1 : i32
    %39 = arith.addi %1, %c1_i32_31 : i32
    %c0_32 = arith.constant 0 : index
    %40 = arith.index_cast %39 : i32 to index
    %c1_33 = arith.constant 1 : index
    %c0_34 = arith.constant 0 : index
    %41 = vector.load %arg2[%c0_32, %40, %c1_33, %c0_34] : memref<1x34x34x3xf32, #tpu.memory_space<vmem>>, vector<1x16x32x3xf32>
    %42 = vector.shape_cast %41 : vector<1x16x32x3xf32> to vector<16x32x3xf32>
    %43 = vector.shape_cast %42 : vector<16x32x3xf32> to vector<512x3xf32>
    %c1_35 = arith.constant 1 : index
    %c1_36 = arith.constant 1 : index
    %c0_37 = arith.constant 0 : index
    %c0_38 = arith.constant 0 : index
    %44 = vector.load %arg3[%c1_35, %c1_36, %c0_37, %c0_38] : memref<3x3x3x32xf32, #tpu.memory_space<vmem>>, vector<1x1x3x32xf32>
    %45 = vector.shape_cast %44 : vector<1x1x3x32xf32> to vector<3x32xf32>
    %cst_39 = arith.constant dense<0.000000e+00> : vector<512x32xf32>
    %46 = tpu.matmul %43, %45, %cst_39 {dimension_numbers = #tpu.dot_dimension_numbers<[1], [0], [0], [1], [0, 0, 1, 1], [], []>} : vector<512x3xf32>, vector<3x32xf32>, vector<512x32xf32> -> vector<512x32xf32>
    %47 = arith.addf %38, %46 : vector<512x32xf32>
    %c1_i32_40 = arith.constant 1 : i32
    %48 = arith.addi %1, %c1_i32_40 : i32
    %c0_41 = arith.constant 0 : index
    %49 = arith.index_cast %48 : i32 to index
    %c2_42 = arith.constant 2 : index
    %c0_43 = arith.constant 0 : index
    %50 = vector.load %arg2[%c0_41, %49, %c2_42, %c0_43] : memref<1x34x34x3xf32, #tpu.memory_space<vmem>>, vector<1x16x32x3xf32>
    %51 = vector.shape_cast %50 : vector<1x16x32x3xf32> to vector<16x32x3xf32>
    %52 = vector.shape_cast %51 : vector<16x32x3xf32> to vector<512x3xf32>
    %c1_44 = arith.constant 1 : index
    %c2_45 = arith.constant 2 : index
    %c0_46 = arith.constant 0 : index
    %c0_47 = arith.constant 0 : index
    %53 = vector.load %arg3[%c1_44, %c2_45, %c0_46, %c0_47] : memref<3x3x3x32xf32, #tpu.memory_space<vmem>>, vector<1x1x3x32xf32>
    %54 = vector.shape_cast %53 : vector<1x1x3x32xf32> to vector<3x32xf32>
    %cst_48 = arith.constant dense<0.000000e+00> : vector<512x32xf32>
    %55 = tpu.matmul %52, %54, %cst_48 {dimension_numbers = #tpu.dot_dimension_numbers<[1], [0], [0], [1], [0, 0, 1, 1], [], []>} : vector<512x3xf32>, vector<3x32xf32>, vector<512x32xf32> -> vector<512x32xf32>
    %56 = arith.addf %47, %55 : vector<512x32xf32>
    %c2_i32 = arith.constant 2 : i32
    %57 = arith.addi %1, %c2_i32 : i32
    %c0_49 = arith.constant 0 : index
    %58 = arith.index_cast %57 : i32 to index
    %c0_50 = arith.constant 0 : index
    %c0_51 = arith.constant 0 : index
    %59 = vector.load %arg2[%c0_49, %58, %c0_50, %c0_51] : memref<1x34x34x3xf32, #tpu.memory_space<vmem>>, vector<1x16x32x3xf32>
    %60 = vector.shape_cast %59 : vector<1x16x32x3xf32> to vector<16x32x3xf32>
    %61 = vector.shape_cast %60 : vector<16x32x3xf32> to vector<512x3xf32>
    %c2_52 = arith.constant 2 : index
    %c0_53 = arith.constant 0 : index
    %c0_54 = arith.constant 0 : index
    %c0_55 = arith.constant 0 : index
    %62 = vector.load %arg3[%c2_52, %c0_53, %c0_54, %c0_55] : memref<3x3x3x32xf32, #tpu.memory_space<vmem>>, vector<1x1x3x32xf32>
    %63 = vector.shape_cast %62 : vector<1x1x3x32xf32> to vector<3x32xf32>
    %cst_56 = arith.constant dense<0.000000e+00> : vector<512x32xf32>
    %64 = tpu.matmul %61, %63, %cst_56 {dimension_numbers = #tpu.dot_dimension_numbers<[1], [0], [0], [1], [0, 0, 1, 1], [], []>} : vector<512x3xf32>, vector<3x32xf32>, vector<512x32xf32> -> vector<512x32xf32>
    %65 = arith.addf %56, %64 : vector<512x32xf32>
    %c2_i32_57 = arith.constant 2 : i32
    %66 = arith.addi %1, %c2_i32_57 : i32
    %c0_58 = arith.constant 0 : index
    %67 = arith.index_cast %66 : i32 to index
    %c1_59 = arith.constant 1 : index
    %c0_60 = arith.constant 0 : index
    %68 = vector.load %arg2[%c0_58, %67, %c1_59, %c0_60] : memref<1x34x34x3xf32, #tpu.memory_space<vmem>>, vector<1x16x32x3xf32>
    %69 = vector.shape_cast %68 : vector<1x16x32x3xf32> to vector<16x32x3xf32>
    %70 = vector.shape_cast %69 : vector<16x32x3xf32> to vector<512x3xf32>
    %c2_61 = arith.constant 2 : index
    %c1_62 = arith.constant 1 : index
    %c0_63 = arith.constant 0 : index
    %c0_64 = arith.constant 0 : index
    %71 = vector.load %arg3[%c2_61, %c1_62, %c0_63, %c0_64] : memref<3x3x3x32xf32, #tpu.memory_space<vmem>>, vector<1x1x3x32xf32>
    %72 = vector.shape_cast %71 : vector<1x1x3x32xf32> to vector<3x32xf32>
    %cst_65 = arith.constant dense<0.000000e+00> : vector<512x32xf32>
    %73 = tpu.matmul %70, %72, %cst_65 {dimension_numbers = #tpu.dot_dimension_numbers<[1], [0], [0], [1], [0, 0, 1, 1], [], []>} : vector<512x3xf32>, vector<3x32xf32>, vector<512x32xf32> -> vector<512x32xf32>
    %74 = arith.addf %65, %73 : vector<512x32xf32>
    %c2_i32_66 = arith.constant 2 : i32
    %75 = arith.addi %1, %c2_i32_66 : i32
    %c0_67 = arith.constant 0 : index
    %76 = arith.index_cast %75 : i32 to index
    %c2_68 = arith.constant 2 : index
    %c0_69 = arith.constant 0 : index
    %77 = vector.load %arg2[%c0_67, %76, %c2_68, %c0_69] : memref<1x34x34x3xf32, #tpu.memory_space<vmem>>, vector<1x16x32x3xf32>
    %78 = vector.shape_cast %77 : vector<1x16x32x3xf32> to vector<16x32x3xf32>
    %79 = vector.shape_cast %78 : vector<16x32x3xf32> to vector<512x3xf32>
    %c2_70 = arith.constant 2 : index
    %c2_71 = arith.constant 2 : index
    %c0_72 = arith.constant 0 : index
    %c0_73 = arith.constant 0 : index
    %80 = vector.load %arg3[%c2_70, %c2_71, %c0_72, %c0_73] : memref<3x3x3x32xf32, #tpu.memory_space<vmem>>, vector<1x1x3x32xf32>
    %81 = vector.shape_cast %80 : vector<1x1x3x32xf32> to vector<3x32xf32>
    %cst_74 = arith.constant dense<0.000000e+00> : vector<512x32xf32>
    %82 = tpu.matmul %79, %81, %cst_74 {dimension_numbers = #tpu.dot_dimension_numbers<[1], [0], [0], [1], [0, 0, 1, 1], [], []>} : vector<512x3xf32>, vector<3x32xf32>, vector<512x32xf32> -> vector<512x32xf32>
    %83 = arith.addf %74, %82 : vector<512x32xf32>
    %c0_75 = arith.constant 0 : index
    %c0_76 = arith.constant 0 : index
    %84 = vector.load %arg4[%c0_75, %c0_76] : memref<1x32xf32, #tpu.memory_space<vmem>>, vector<1x32xf32>
    %85 = vector.broadcast %84 : vector<1x32xf32> to vector<512x32xf32>
    %86 = arith.addf %83, %85 : vector<512x32xf32>
    %cst_77 = arith.constant 0.000000e+00 : f32
    %87 = vector.broadcast %cst_77 : f32 to vector<512x32xf32>
    %88 = arith.maximumf %86, %87 : vector<512x32xf32>
    %89 = vector.shape_cast %88 : vector<512x32xf32> to vector<16x32x32xf32>
    %c0_78 = arith.constant 0 : index
    %c0_79 = arith.constant 0 : index
    %c0_80 = arith.constant 0 : index
    %90 = vector.load %arg6[%c0_78, %c0_79, %c0_80] : memref<16x32x32xf32, #tpu.memory_space<vmem>>, vector<16x32x32xf32>
    tpu.vector_store %arg6[%c0_78, %c0_79, %c0_80], %89 {strides = array<i32>} : memref<16x32x32xf32, #tpu.memory_space<vmem>>, vector<16x32x32xf32>,
    %c0_81 = arith.constant 0 : index
    %c0_82 = arith.constant 0 : index
    %c0_83 = arith.constant 0 : index
    %91 = tpu.strided_load %arg6[%c0_81, %c0_82, %c0_83] {strides = array<i32: 2, 1, 1>} : memref<16x32x32xf32, #tpu.memory_space<vmem>>, vector<8x32x32xf32>
    %c1_84 = arith.constant 1 : index
    %c0_85 = arith.constant 0 : index
    %c0_86 = arith.constant 0 : index
    %92 = tpu.strided_load %arg6[%c1_84, %c0_85, %c0_86] {strides = array<i32: 2, 1, 1>} : memref<16x32x32xf32, #tpu.memory_space<vmem>>, vector<8x32x32xf32>
    %93 = arith.maximumf %91, %92 : vector<8x32x32xf32>
    %c0_87 = arith.constant 0 : index
    %c0_88 = arith.constant 0 : index
    %c0_89 = arith.constant 0 : index
    %94 = vector.load %arg7[%c0_87, %c0_88, %c0_89] : memref<8x32x32xf32, #tpu.memory_space<vmem>>, vector<8x32x32xf32>
    tpu.vector_store %arg7[%c0_87, %c0_88, %c0_89], %93 {strides = array<i32>} : memref<8x32x32xf32, #tpu.memory_space<vmem>>, vector<8x32x32xf32>,
    %c0_90 = arith.constant 0 : index
    %c0_91 = arith.constant 0 : index
    %c0_92 = arith.constant 0 : index
    %95 = tpu.strided_load %arg7[%c0_90, %c0_91, %c0_92] {strides = array<i32: 1, 2, 1>} : memref<8x32x32xf32, #tpu.memory_space<vmem>>, vector<8x16x32xf32>
    %c0_93 = arith.constant 0 : index
    %c1_94 = arith.constant 1 : index
    %c0_95 = arith.constant 0 : index
    %96 = tpu.strided_load %arg7[%c0_93, %c1_94, %c0_95] {strides = array<i32: 1, 2, 1>} : memref<8x32x32xf32, #tpu.memory_space<vmem>>, vector<8x16x32xf32>
    %97 = arith.maximumf %95, %96 : vector<8x16x32xf32>
    %c0_96 = arith.constant 0 : index
    %c0_97 = arith.constant 0 : index
    %c0_98 = arith.constant 0 : index
    %c0_99 = arith.constant 0 : index
    %98 = vector.load %arg5[%c0_96, %c0_97, %c0_98, %c0_99] : memref<1x8x16x32xf32, #tpu.memory_space<vmem>>, vector<1x8x16x32xf32>
    %99 = vector.shape_cast %98 : vector<1x8x16x32xf32> to vector<8x16x32xf32>
    %100 = vector.shape_cast %97 : vector<8x16x32xf32> to vector<1x8x16x32xf32>
    tpu.vector_store %arg5[%c0_96, %c0_97, %c0_98, %c0_99], %100 {strides = array<i32>} : memref<1x8x16x32xf32, #tpu.memory_space<vmem>>, vector<1x8x16x32xf32>,
    return
  }
  func.func @transform_0(%arg0: i32, %arg1: i32) -> (i32, i32, i32, i32) {
    %c0_i32 = arith.constant 0 : i32
    %c0_i32_0 = arith.constant 0 : i32
    %c0_i32_1 = arith.constant 0 : i32
    %c0_i32_2 = arith.constant 0 : i32
    return %arg0, %c0_i32, %c0_i32_0, %c0_i32_1 : i32, i32, i32, i32
  }
  func.func @transform_1(%arg0: i32, %arg1: i32) -> (i32, i32, i32, i32) {
    %c0_i32 = arith.constant 0 : i32
    %c0_i32_0 = arith.constant 0 : i32
    %c0_i32_1 = arith.constant 0 : i32
    %c0_i32_2 = arith.constant 0 : i32
    %c0_i32_3 = arith.constant 0 : i32
    return %c0_i32, %c0_i32_0, %c0_i32_1, %c0_i32_2 : i32, i32, i32, i32
  }
  func.func @transform_2(%arg0: i32, %arg1: i32) -> (i32, i32) {
    %c0_i32 = arith.constant 0 : i32
    %c0_i32_0 = arith.constant 0 : i32
    %c0_i32_1 = arith.constant 0 : i32
    return %c0_i32, %c0_i32_0 : i32, i32
  }
  func.func @transform_3(%arg0: i32, %arg1: i32) -> (i32, i32, i32, i32) {
    %c0_i32 = arith.constant 0 : i32
    %c0_i32_0 = arith.constant 0 : i32
    %c0_i32_1 = arith.constant 0 : i32
    return %arg0, %arg1, %c0_i32, %c0_i32_0 : i32, i32, i32, i32
  }
}

</mosaic_0001>

<bundles_post_ra>
// kernel: tpu_custom_call.1
= control target key start
LH: loop header
LB: loop body
LE: loop exit
PB: predicated region body
PF: predicated region fallthrough
CT: control target
= control target key end

     0   :  { %8 = vsyncpa [#allocation5], 0  ;;  %s8802_s0 = inlined_call_operand.vmem [shape: f32[2,34,34,3], index: 0, kind: input, shape index: {}]   ;;  %s8803_s1 = inlined_call_operand.vmem [shape: f32[3,3,3,32], index: 1, kind: input, shape index: {}]   ;;  %s8804_s2 = inlined_call_operand.vmem [shape: f32[1,32], index: 2, kind: input, shape index: {}]   ;;  %s8805_s3 = inlined_call_operand.hbm [shape: f32[2,16,16,32], index: 3, kind: output, shape index: {}]  }
   0x1   :  { %10 = vsyncpa [#allocation5 + $0x1], 0  ;;  %s6594_s12 = smov 0   ;;  %s6596_s13 = smov 0  }
   0x2   :  { %s6598_s14 = smov 0   ;;  %s6600_s15 = smov 0  }
   0x3   :  { %s6602_s16 = smov 0   ;;  %s6604_s17 = smov 0  }
   0x4   :  { %s6606_s18 = smov 0   ;;  %s6608_s19 = smov 0  }
   0x5 LB: > { %s5398_s20 = sadd.s32 4294967295, %s6570_s19   ;;  %s5399_s21 = sadd.s32 4294967294, %s6570_s19   ;;  %s6570_s19 = sphi %s6608_s19, %s16_s19   ;;  %s6566_s18 = sphi %s6606_s18, %s8912_s18   ;;  %s6562_s17 = sphi %s6604_s17, %s8911_s17   ;;  %s6558_s16 = sphi %s6602_s16, %s8910_s16   ;;  %s6554_s15 = sphi %s6600_s15, %s8909_s15   ;;  %s6550_s14 = sphi %s6598_s14, %s8908_s14   ;;  %s6546_s13 = sphi %s6596_s13, %s8907_s13   ;;  %s6542_s12 = sphi %s6594_s12, %s8906_s12  }
   0x6   : > { %s25_s22 = sadd.s32 1, %s6562_s17  ;;  %s28_s23 = sadd.s32 1, %s6566_s18 }
   0x7   : > { %p26_p0 = scmp.ge.s32.totalorder %s25_s22, 2  ;;  %p115_p1 = scmp.ne.s32.totalorder %s6550_s14, %s6546_s13 }
   0x8   : > { %p116_p2 = scmp.eq.s32.totalorder %s5398_s20, 3  ;;  %p121_p5 = scmp.ne.s32.totalorder %s6546_s13, %s6542_s12 }
   0x9   : > { %s8914_s22 = smov (%p26_p0, %s25_s22), 0  ;;  %s8916_s23 = smov (!%p26_p0, %s28_s23), %s6566_s18 }
   0xa   : > { %s101_s24 = ssub.s32 %s6562_s17, %s8914_s22  ;;  %p6645_p3 = por %p116_p2, %p115_p1 }
   0xb   : > { %p30_p4 = scmp.ge.s32.totalorder %s8916_s23, 2  ;;  %p122_p6 = scmp.eq.s32.totalorder %s5399_s21, 3 }
   0xc   : > { %p5402_p7 = scmp.ge.s32.totalorder %s6570_s19, 1  ;;  %p154_p9 = scmp.lt.s32.totalorder %s6570_s19, 5 }
   0xd   : > { %s8918_s23 = smov (%p30_p4, %s8916_s23), 0  ;;  %p6654_p8 = por %p122_p6, %p121_p5 }
   0xe   : > { %s100_s27 = ssub.s32 %s6566_s18, %s8918_s23  ;;  %s105_s28 = sadd.s32 1, %s6550_s14 }
   0xf   : > { %s102_s29 = sor.u32 %s101_s24, %s100_s27  ;;  %p155_p10 = pnand %p5402_p7, %p154_p9 }
  0x10   : > { %p103_p11 = scmp.eq.s32.totalorder %s102_s29, 0 }
  0x11   : > { %158 = sbr.rel (%p155_p10) target bundleno = 1342 (0x53e), region = 32 }
  0x12   : > { %s6663_s30 = scalar_select %p103_p11, %s6550_s14, %s105_s28  }
  0x16   : > { %v5407_v0 = vld [vmem:[%s8803_s1 + $0x4] sm:$0x7]  ;;  %vm511_vm0 = vcmask 1042432   ;;  %p178_p12 = scmp.lt.s32.totalorder %s6558_s16, 1  ;;  %v5538_v1 = vld [vmem:[%s8803_s1 + $0x8] sm:$0x7] }
  0x17   : > { %6396 = vmatpush.msk.msra.mxu1 %vm511_vm0, %v5407_v0  ;;  %6397 = vmatpush.msk.msra.mxu2 %vm511_vm0, %v5407_v0  ;;  %v5670_v2 = vld [vmem:[%s8803_s1 + $0xc] sm:$0x7]  ;;  %v251_v3 = vld [vmem:[%s8803_s1] sm:$0x7]  ;;  %v5800_v4 = vld [vmem:[%s8803_s1 + $0x10] sm:$0x7] }
  0x18   : > { %s179_s20 = scalar_select %p178_p12, %s6558_s16, 1  ;;  %6398 = vmatpush.msk.msra.mxu3 %vm511_vm0, %v5407_v0  ;;  %5408 = vmatpush.msk.msra.mxu0 %vm511_vm0, %v5407_v0  ;;  %vm318_vm1 = vcmask 23552   ;;  %v6062_v57 = vld [vmem:[%s8803_s1 + $0x18] sm:$0x7]  ;;  %v6192_v58 = vld [vmem:[%s8803_s1 + $0x1c] sm:$0x7] }
  0x19   : > { %5539 = vmatpush.msk.msrb.mxu2 %vm511_vm0, %v5538_v1  ;;  %s5406_s27 = smul.u32 640, %s6554_s15  ;;  %5473 = vmatpush.msk.msrb.mxu1 %vm511_vm0, %v251_v3  ;;  %v5930_v59 = vld [vmem:[%s8803_s1 + $0x14] sm:$0x7]  ;;  %v6322_v0 = vld [vmem:[%s8803_s1 + $0x20] sm:$0x7]  ;;  %vm5004_vm2 = vcmask 261120  }
  0x1a   : > { %5671 = vmatpush.msk.msrb.mxu3 %vm511_vm0, %v5670_v2  ;;  %s6399_s28 = smul.u32 1360, %s179_s20  ;;  %5801 = vmatpush.msk.msrb.mxu0 %vm511_vm0, %v5800_v4  ;;  %s175_s29 = sand.u32 1, %s6546_s13  }
  0x1b   : > { %s5403_s4 = sshll.u32 %s175_s29, 7  ;;  %s6395_s10 = sshll.u32 %s6554_s15, 4 }
  0x1c   : > { %s182_s5 = scalar_lea.vmem %s8802_s0, %s6399_s28  ;;  %s6391_s11 = sshll.u32 %s6558_s16, 5 }
  0x1d   : > { %s6694_s6 = scalar_lea.vmem %s182_s5, %s5406_s27  ;;  %s8110_s5 = scalar_lea.vmem [#allocation4], %s5403_s4 }
  0x1e   : > { %v6697_v5 = vld [vmem:[%s6694_s6 + $0xa1] sm:$0xff]  ;;  %v6708_v9 = vld [vmem:[%s6694_s6 + $0xa9] sm:$0xff]  ;;  %v6719_v13 = vld [vmem:[%s6694_s6 + $0xb1] sm:$0xff]  ;;  %s5306_s20 = sadd.s32 %s6395_s10, %s6391_s11  ;;  %s5309_s4 = sshll.u32 %s8110_s5, 4  ;;  %s5310_s4 = int_to_ptr.vmem [resolvable:$true] %s5309_s4 }
  0x1f   : > { %v284_v6 = vld [vmem:[%s6694_s6 + $0x141] sm:$0xff]  ;;  %5425 = vmatmul.msk.f32.vlgmr.msra.gmra.mxu1 %vm318_vm1, %v6697_v5  ;;  %v285_v10 = vld [vmem:[%s6694_s6 + $0x149] sm:$0xff]  ;;  %v286_v14 = vld [vmem:[%s6694_s6 + $0x151] sm:$0xff]  ;;  %s6392_s21 = sshll.u32 %s5306_s20, 3  ;;  %s5294_s15 = scalar_lea.sflag [#allocation5], %s175_s29 }
  0x20   : > { %v300_v7 = vld [vmem:[%s6694_s6 + $0x1e1] sm:$0xff]  ;;  %5441 = vmatmul.msk.f32.vlgmr.msra.gmra.mxu2 %vm318_vm1, %v284_v6  ;;  %v301_v11 = vld [vmem:[%s6694_s6 + $0x1e9] sm:$0xff]  ;;  %v302_v15 = vld [vmem:[%s6694_s6 + $0x1f1] sm:$0xff]  ;;  %5931 = vmatpush.msk.msra.mxu1 %vm511_vm0, %v5930_v59  ;;  %s5308_s28 = scalar_lea.hbm %s8805_s3, %s6392_s21  ;;  %s6496_s10 = scalar_lea.hbm %s8805_s3, 512 }
  0x21   : > { %v252_v8 = vld [vmem:[%s6694_s6 + $0x1] sm:$0xff]  ;;  %5457 = vmatmul.msk.f32.vlgmr.msra.gmra.mxu3 %vm318_vm1, %v300_v7  ;;  %v253_v12 = vld [vmem:[%s6694_s6 + $0x9] sm:$0xff]  ;;  %v254_v16 = vld [vmem:[%s6694_s6 + $0x11] sm:$0xff]  ;;  %6063 = vmatpush.msk.msra.mxu2 %vm511_vm0, %v6062_v57  ;;  %s5311_s7 = sshll.u32 %s5308_s28, 4  ;;  %s5312_s7 = int_to_ptr.hbm [resolvable:$true] %s5311_s7 }
  0x22   : > { %5409 = vmatmul.msk.f32.vlgmr.msra.gmra.mxu0 %vm318_vm1, %v252_v8  ;;  %v6730_v17 = vld [vmem:[%s6694_s6 + $0xb9] sm:$0xff]  ;;  %v6741_v21 = vld [vmem:[%s6694_s6 + $0xc9] sm:$0xff]  ;;  %v6755_v25 = vld [vmem:[%s6694_s6 + $0xd1] sm:$0xff]  ;;  %6193 = vmatpush.msk.msra.mxu3 %vm511_vm0, %v6192_v58  ;;  %s6490_s16 = sshra.s32 %s5312_s7, 4  ;;  %s6491_s16 = int_to_ptr.hbm [resolvable:$true] %s6490_s16 }
  0x23   : > { %v287_v18 = vld [vmem:[%s6694_s6 + $0x159] sm:$0xff]  ;;  %v288_v22 = vld [vmem:[%s6694_s6 + $0x169] sm:$0xff]  ;;  %v289_v26 = vld [vmem:[%s6694_s6 + $0x171] sm:$0xff]  ;;  %6323 = vmatpush.msk.msra.mxu0 %vm511_vm0, %v6322_v0  ;;  %s6492_s8 = scalar_lea.hbm %s6491_s16, 128  ;;  %p6497_p2 = scmp.lt.s32.totalorder %s6491_s16, %s8805_s3 }
  0x24   : > { %v303_v19 = vld [vmem:[%s6694_s6 + $0x1f9] sm:$0xff]  ;;  %v304_v23 = vld [vmem:[%s6694_s6 + $0x209] sm:$0xff]  ;;  %v305_v27 = vld [vmem:[%s6694_s6 + $0x211] sm:$0xff]  ;;  %p6493_p13 = scmp.ne.s32.totalorder %s6491_s16, %s6492_s8  ;;  %p6498_p4 = scmp.lt.s32.totalorder %s6496_s10, %s6492_s8 }
  0x25   : > { %v255_v20 = vld [vmem:[%s6694_s6 + $0x19] sm:$0xff]  ;;  %v6746_v24 = vld [vmem:[%s6694_s6 + $0x29] sm:$0xff]  ;;  %v6760_v28 = vld [vmem:[%s6694_s6 + $0x31] sm:$0xff] }
  0x26   : > { %v6769_v29 = vld [vmem:[%s6694_s6 + $0xd9] sm:$0xff]  ;;  %v6783_v33 = vld [vmem:[%s6694_s6 + $0xe1] sm:$0xff]  ;;  %v6797_v37 = vld [vmem:[%s6694_s6 + $0xf1] sm:$0xff]  ;;  %p6494_p0 = pnand %p6493_p13, %p6645_p3  ;;  %p6499_p5 = por %p6498_p4, %p6497_p2 }
  0x27   : > { %5426 = vmatmul.msk.f32.gmra.mxu1 %vm318_vm1, %v6708_v9  ;;  %v290_v30 = vld [vmem:[%s6694_s6 + $0x179] sm:$0xff]  ;;  %v291_v34 = vld [vmem:[%s6694_s6 + $0x181] sm:$0xff]  ;;  %v292_v38 = vld [vmem:[%s6694_s6 + $0x191] sm:$0xff] }
  0x28   : > { %5442 = vmatmul.msk.f32.gmra.mxu2 %vm318_vm1, %v285_v10  ;;  %v306_v31 = vld [vmem:[%s6694_s6 + $0x219] sm:$0xff]  ;;  %v307_v35 = vld [vmem:[%s6694_s6 + $0x221] sm:$0xff]  ;;  %v308_v39 = vld [vmem:[%s6694_s6 + $0x231] sm:$0xff]  ;;  %p6495_p1 = pneg %p6494_p0 }
  0x29   : > { %5458 = vmatmul.msk.f32.gmra.mxu3 %vm318_vm1, %v301_v11  ;;  %v6774_v32 = vld [vmem:[%s6694_s6 + $0x39] sm:$0xff]  ;;  %v6788_v36 = vld [vmem:[%s6694_s6 + $0x41] sm:$0xff]  ;;  %v6802_v40 = vld [vmem:[%s6694_s6 + $0x51] sm:$0xff] }
  0x2a   : > { %5410 = vmatmul.msk.f32.gmra.mxu0 %vm318_vm1, %v253_v12  ;;  %v6811_v41 = vld [vmem:[%s6694_s6 + $0xf9] sm:$0xff]  ;;  %v6825_v45 = vld [vmem:[%s6694_s6 + $0x101] sm:$0xff]  ;;  %v6839_v49 = vld [vmem:[%s6694_s6 + $0x109] sm:$0xff]  ;;  %p6500_p6 = pnand %p6499_p5, %p6495_p1 }
  0x2b   : > { %v293_v42 = vld [vmem:[%s6694_s6 + $0x199] sm:$0xff]  ;;  %v294_v46 = vld [vmem:[%s6694_s6 + $0x1a1] sm:$0xff]  ;;  %v295_v50 = vld [vmem:[%s6694_s6 + $0x1a9] sm:$0xff] }
  0x2c   : > { %v309_v43 = vld [vmem:[%s6694_s6 + $0x239] sm:$0xff]  ;;  %v310_v47 = vld [vmem:[%s6694_s6 + $0x241] sm:$0xff]  ;;  %v311_v51 = vld [vmem:[%s6694_s6 + $0x249] sm:$0xff] }
  0x2d   : > { %v6816_v44 = vld [vmem:[%s6694_s6 + $0x59] sm:$0xff]  ;;  %v6830_v48 = vld [vmem:[%s6694_s6 + $0x61] sm:$0xff]  ;;  %v6844_v52 = vld [vmem:[%s6694_s6 + $0x69] sm:$0xff] }
  0x2e   : > { %v6853_v53 = vld [vmem:[%s6694_s6 + $0x119] sm:$0xff]  ;;  %v6879_v60 = vld [vmem:[%s6694_s6 + $0x121] sm:$0xff]  ;;  %v6897_v1 = vld [vmem:[%s6694_s6 + $0x129] sm:$0xff] }
  0x2f   : > { %5427 = vmatmul.msk.f32.gmra.mxu1 %vm318_vm1, %v6719_v13  ;;  %v296_v54 = vld [vmem:[%s6694_s6 + $0x1b9] sm:$0xff]  ;;  %v297_v61 = vld [vmem:[%s6694_s6 + $0x1c1] sm:$0xff]  ;;  %v298_v2 = vld [vmem:[%s6694_s6 + $0x1c9] sm:$0xff] }
  0x30   : > { %5443 = vmatmul.msk.f32.gmra.mxu2 %vm318_vm1, %v286_v14  ;;  %v312_v55 = vld [vmem:[%s6694_s6 + $0x259] sm:$0xff]  ;;  %v313_v62 = vld [vmem:[%s6694_s6 + $0x261] sm:$0xff]  ;;  %v314_v3 = vld [vmem:[%s6694_s6 + $0x269] sm:$0xff] }
  0x31   : > { %5459 = vmatmul.msk.f32.gmra.mxu3 %vm318_vm1, %v302_v15  ;;  %v6858_v56 = vld [vmem:[%s6694_s6 + $0x79] sm:$0xff]  ;;  %v6884_v63 = vld [vmem:[%s6694_s6 + $0x81] sm:$0xff]  ;;  %v6902_v4 = vld [vmem:[%s6694_s6 + $0x89] sm:$0xff] }
  0x32   : > { %5411 = vmatmul.msk.f32.gmra.mxu0 %vm318_vm1, %v254_v16  ;;  %v6911_v6 = vld [vmem:[%s6694_s6 + $0x131] sm:$0xff]  ;;  %v187_v12 = vld [vmem:[%s6694_s6] sm:$0xff]  ;;  %v5606_v15 = vld [vmem:[%s6694_s6 + $0x28] sm:$0xff] }
  0x33   : > { %v299_v7 = vld [vmem:[%s6694_s6 + $0x1d1] sm:$0xff]  ;;  %v1128_v14 = vld [vmem:[%s6694_s6 + $0x2] sm:$0xff] }
  0x34   : > { %v315_v8 = vld [vmem:[%s6694_s6 + $0x271] sm:$0xff] }
  0x35   : > { %v6916_v10 = vld [vmem:[%s6694_s6 + $0x91] sm:$0xff] }
  0x36   : > { %v1132_v57 = vld [vmem:[%s6694_s6 + $0x2a] sm:$0xff]  ;;  %v1133_v0 = vld [vmem:[%s6694_s6 + $0x32] sm:$0xff] }
  0x37   : > { %5428 = vmatmul.msk.f32.gmra.mxu1 %vm318_vm1, %v6730_v17  ;;  %v5610_v58 = vld [vmem:[%s6694_s6 + $0x50] sm:$0xff] }
  0x38   : > { %5444 = vmatmul.msk.f32.gmra.mxu2 %vm318_vm1, %v287_v18 }
  0x39   : > { %5460 = vmatmul.msk.f32.gmra.mxu3 %vm318_vm1, %v303_v19 }
  0x3a   : > { %5412 = vmatmul.msk.f32.gmra.mxu0 %vm318_vm1, %v255_v20 }
  0x3f   : > { %5429 = vmatmul.msk.f32.gmra.mxu1 %vm318_vm1, %v6741_v21 }
  0x40   : > { %5445 = vmatmul.msk.f32.gmra.mxu2 %vm318_vm1, %v288_v22  ;;  %v188_v22 = vld [vmem:[%s6694_s6 + $0x8] sm:$0xff] }
  0x41   : > { %5461 = vmatmul.msk.f32.gmra.mxu3 %vm318_vm1, %v304_v23  ;;  %v1129_v23 = vld [vmem:[%s6694_s6 + $0xa] sm:$0xff] }
  0x42   : > { %5413 = vmatmul.msk.f32.gmra.mxu0 %vm318_vm1, %v6746_v24 }
  0x47   : > { %5430 = vmatmul.msk.f32.gmra.mxu1 %vm318_vm1, %v6755_v25 }
  0x48   : > { %5446 = vmatmul.msk.f32.gmra.mxu2 %vm318_vm1, %v289_v26  ;;  %v5607_v26 = vld [vmem:[%s6694_s6 + $0x30] sm:$0xff] }
  0x49   : > { %5462 = vmatmul.msk.f32.gmra.mxu3 %vm318_vm1, %v305_v27 }
  0x4a   : > { %5414 = vmatmul.msk.f32.gmra.mxu0 %vm318_vm1, %v6760_v28 }
  0x4f   : > { %5431 = vmatmul.msk.f32.gmra.mxu1 %vm318_vm1, %v6769_v29 }
  0x50   : > { %5447 = vmatmul.msk.f32.gmra.mxu2 %vm318_vm1, %v290_v30 }
  0x51   : > { %5463 = vmatmul.msk.f32.gmra.mxu3 %vm318_vm1, %v306_v31 }
  0x52   : > { %5415 = vmatmul.msk.f32.gmra.mxu0 %vm318_vm1, %v6774_v32 }
  0x57   : > { %5432 = vmatmul.msk.f32.gmra.mxu1 %vm318_vm1, %v6783_v33 }
  0x58   : > { %5448 = vmatmul.msk.f32.gmra.mxu2 %vm318_vm1, %v291_v34  ;;  %v189_v34 = vld [vmem:[%s6694_s6 + $0x10] sm:$0xff] }
  0x59   : > { %5464 = vmatmul.msk.f32.gmra.mxu3 %vm318_vm1, %v307_v35  ;;  %v1130_v35 = vld [vmem:[%s6694_s6 + $0x12] sm:$0xff] }
  0x5a   : > { %5416 = vmatmul.msk.f32.gmra.mxu0 %vm318_vm1, %v6788_v36 }
  0x5f   : > { %5433 = vmatmul.msk.f32.gmra.mxu1 %vm318_vm1, %v6797_v37 }
  0x60   : > { %5449 = vmatmul.msk.f32.gmra.mxu2 %vm318_vm1, %v292_v38  ;;  %v5608_v38 = vld [vmem:[%s6694_s6 + $0x38] sm:$0xff] }
  0x61   : > { %5465 = vmatmul.msk.f32.gmra.mxu3 %vm318_vm1, %v308_v39 }
  0x62   : > { %5417 = vmatmul.msk.f32.gmra.mxu0 %vm318_vm1, %v6802_v40 }
  0x67   : > { %5434 = vmatmul.msk.f32.gmra.mxu1 %vm318_vm1, %v6811_v41 }
  0x68   : > { %5450 = vmatmul.msk.f32.gmra.mxu2 %vm318_vm1, %v293_v42 }
  0x69   : > { %5466 = vmatmul.msk.f32.gmra.mxu3 %vm318_vm1, %v309_v43 }
  0x6a   : > { %5418 = vmatmul.msk.f32.gmra.mxu0 %vm318_vm1, %v6816_v44 }
  0x6f   : > { %5435 = vmatmul.msk.f32.gmra.mxu1 %vm318_vm1, %v6825_v45 }
  0x70   : > { %5451 = vmatmul.msk.f32.gmra.mxu2 %vm318_vm1, %v294_v46  ;;  %v190_v46 = vld [vmem:[%s6694_s6 + $0x18] sm:$0xff] }
  0x71   : > { %5467 = vmatmul.msk.f32.gmra.mxu3 %vm318_vm1, %v310_v47  ;;  %v1131_v47 = vld [vmem:[%s6694_s6 + $0x1a] sm:$0xff] }
  0x72   : > { %5419 = vmatmul.msk.f32.gmra.mxu0 %vm318_vm1, %v6830_v48 }
  0x77   : > { %5436 = vmatmul.msk.f32.gmra.mxu1 %vm318_vm1, %v6839_v49 }
  0x78   : > { %5452 = vmatmul.msk.f32.gmra.mxu2 %vm318_vm1, %v295_v50  ;;  %v5609_v50 = vld [vmem:[%s6694_s6 + $0x40] sm:$0xff] }
  0x79   : > { %5468 = vmatmul.msk.f32.gmra.mxu3 %vm318_vm1, %v311_v51 }
  0x7a   : > { %5420 = vmatmul.msk.f32.gmra.mxu0 %vm318_vm1, %v6844_v52 }
  0x7f   : > { %5437 = vmatmul.msk.f32.gmra.mxu1 %vm318_vm1, %v6853_v53 }
  0x80   : > { %5453 = vmatmul.msk.f32.gmra.mxu2 %vm318_vm1, %v296_v54 }
  0x81   : > { %5469 = vmatmul.msk.f32.gmra.mxu3 %vm318_vm1, %v312_v55 }
  0x82   : > { %5421 = vmatmul.msk.f32.gmra.mxu0 %vm318_vm1, %v6858_v56 }
  0x87   : > { %5438 = vmatmul.msk.f32.gmra.mxu1 %vm318_vm1, %v6879_v60 }
  0x88   : > { %5454 = vmatmul.msk.f32.gmra.mxu2 %vm318_vm1, %v297_v61 }
  0x89   : > { %5470 = vmatmul.msk.f32.gmra.mxu3 %vm318_vm1, %v313_v62 }
  0x8a   : > { %5422 = vmatmul.msk.f32.gmra.mxu0 %vm318_vm1, %v6884_v63 }
  0x8f   : > { %5439 = vmatmul.msk.f32.gmra.mxu1 %vm318_vm1, %v6897_v1 }
  0x90   : > { %5455 = vmatmul.msk.f32.gmra.mxu2 %vm318_vm1, %v298_v2  ;;  %v5611_v2 = vld [vmem:[%s6694_s6 + $0x58] sm:$0xff] }
  0x91   : > { %5471 = vmatmul.msk.f32.gmra.mxu3 %vm318_vm1, %v314_v3 }
  0x92   : > { %5423 = vmatmul.msk.f32.gmra.mxu0 %vm318_vm1, %v6902_v4 }
  0x97   : > { %5440 = vmatmul.msk.f32.gmra.mxu1 %vm318_vm1, %v6911_v6 }
  0x98   : > { %5456 = vmatmul.msk.f32.gmra.mxu2 %vm318_vm1, %v299_v7 }
  0x99   : > { %5472 = vmatmul.msk.f32.gmra.mxu3 %vm318_vm1, %v315_v8 }
  0x9a   : > { %5424 = vmatmul.msk.f32.gmra.mxu0 %vm318_vm1, %v6916_v10 }
  0x9c   : > { %v6924_v11 = vpop.f32.mrf.mxu1 }
  0x9f   : > { %v6929_v16 = vpop.f32.mrf.mxu0  ;;  %5474 = vmatmul.msk.f32.vlgmr.msrb.gmra.mxu1 %vm318_vm1, %v187_v12  ;;  %v1134_v12 = vld [vmem:[%s6694_s6 + $0x3a] sm:$0xff] }
  0xa0   : > { %5540 = vmatmul.msk.f32.vlgmr.msrb.gmra.mxu2 %vm318_vm1, %v1128_v14  ;;  %v5612_v14 = vld [vmem:[%s6694_s6 + $0x60] sm:$0xff] }
  0xa1   : > { %5672 = vmatmul.msk.f32.vlgmr.msrb.gmra.mxu3 %vm318_vm1, %v5606_v15 }
  0xa2   : > { %5802 = vmatmul.msk.f32.vlgmr.msrb.gmra.mxu0 %vm318_vm1, %v6746_v24 }
  0xa3   : > { %v6936_v18 = vpop.f32.mrf.mxu2 }
  0xa4   : > { %v6938_v19 = vpop.f32.mrf.mxu3  ;;  %v6940_v20 = vpop.f32.mrf.mxu1 }
  0xa5   : > { %8808 = vst [vmem:[#allocation7_spill] sm:$0xff] %v6938_v19 }
  0xa7   : > { %v6945_v27 = vpop.f32.mrf.mxu0  ;;  %5475 = vmatmul.msk.f32.gmra.mxu1 %vm318_vm1, %v188_v22 }
  0xa8   : > { %5541 = vmatmul.msk.f32.gmra.mxu2 %vm318_vm1, %v1129_v23 }
  0xa9   : > { %5673 = vmatmul.msk.f32.gmra.mxu3 %vm318_vm1, %v5607_v26 }
  0xaa   : > { %5803 = vmatmul.msk.f32.gmra.mxu0 %vm318_vm1, %v6760_v28 }
  0xab   : > { %v6952_v24 = vpop.f32.mrf.mxu2 }
  0xac   : > { %v6954_v30 = vpop.f32.mrf.mxu3  ;;  %v6956_v31 = vpop.f32.mrf.mxu1 }
  0xad   : > { %8809 = vst [vmem:[#allocation8_spill] sm:$0xff] %v6954_v30  ;;  %v5618_v30 = vld [vmem:[%s6694_s6 + $0xa0] sm:$0xff] }
  0xaf   : > { %v6961_v39 = vpop.f32.mrf.mxu0  ;;  %5476 = vmatmul.msk.f32.gmra.mxu1 %vm318_vm1, %v189_v34  ;;  %v5613_v34 = vld [vmem:[%s6694_s6 + $0x68] sm:$0xff] }
  0xb0   : > { %5542 = vmatmul.msk.f32.gmra.mxu2 %vm318_vm1, %v1130_v35 }
  0xb1   : > { %5674 = vmatmul.msk.f32.gmra.mxu3 %vm318_vm1, %v5608_v38 }
  0xb2   : > { %5804 = vmatmul.msk.f32.gmra.mxu0 %vm318_vm1, %v6774_v32 }
  0xb3   : > { %v6968_v28 = vpop.f32.mrf.mxu2 }
  0xb4   : > { %v6970_v42 = vpop.f32.mrf.mxu3  ;;  %v6972_v43 = vpop.f32.mrf.mxu1 }
  0xb5   : > { %8810 = vst [vmem:[#allocation9_spill] sm:$0xff] %v6970_v42 }
  0xb7   : > { %v6977_v51 = vpop.f32.mrf.mxu0  ;;  %5477 = vmatmul.msk.f32.gmra.mxu1 %vm318_vm1, %v190_v46 }
  0xb8   : > { %5543 = vmatmul.msk.f32.gmra.mxu2 %vm318_vm1, %v1131_v47  ;;  %v1136_v47 = vld [vmem:[%s6694_s6 + $0x52] sm:$0xff] }
  0xb9   : > { %5675 = vmatmul.msk.f32.gmra.mxu3 %vm318_vm1, %v5609_v50 }
  0xba   : > { %5805 = vmatmul.msk.f32.gmra.mxu0 %vm318_vm1, %v6788_v36 }
  0xbb   : > { %v6984_v32 = vpop.f32.mrf.mxu2 }
  0xbc   : > { %8811 = vst [vmem:[#allocation10_spill] sm:$0xff] %v6984_v32  ;;  %v6986_v54 = vpop.f32.mrf.mxu3  ;;  %v6988_v55 = vpop.f32.mrf.mxu1 }
  0xbd   : > { %8812 = vst [vmem:[#allocation11_spill] sm:$0xff] %v6986_v54  ;;  %v5617_v54 = vld [vmem:[%s6694_s6 + $0x90] sm:$0xff] }
  0xbf   : > { %v6992_v59 = vpop.f32.mrf.mxu0  ;;  %5478 = vmatmul.msk.f32.gmra.mxu1 %vm318_vm1, %v5606_v15 }
  0xc0   : > { %5544 = vmatmul.msk.f32.gmra.mxu2 %vm318_vm1, %v1132_v57  ;;  %v5614_v57 = vld [vmem:[%s6694_s6 + $0x78] sm:$0xff] }
  0xc1   : > { %5676 = vmatmul.msk.f32.gmra.mxu3 %vm318_vm1, %v5610_v58 }
  0xc2   : > { %5806 = vmatmul.msk.f32.gmra.mxu0 %vm318_vm1, %v6802_v40 }
  0xc3   : > { %v6999_v36 = vpop.f32.mrf.mxu2 }
  0xc4   : > { %8813 = vst [vmem:[#allocation12_spill] sm:$0xff] %v6999_v36  ;;  %v7001_v61 = vpop.f32.mrf.mxu3  ;;  %v7003_v62 = vpop.f32.mrf.mxu1  ;;  %v5623_v36 = vld [vmem:[%s6694_s6 + $0xd0] sm:$0xff] }
  0xc5   : > { %8814 = vst [vmem:[#allocation13_spill] sm:$0xff] %v7001_v61 }
  0xc7   : > { %v7007_v3 = vpop.f32.mrf.mxu0  ;;  %5479 = vmatmul.msk.f32.gmra.mxu1 %vm318_vm1, %v5607_v26  ;;  %v1135_v26 = vld [vmem:[%s6694_s6 + $0x42] sm:$0xff] }
  0xc8   : > { %5545 = vmatmul.msk.f32.gmra.mxu2 %vm318_vm1, %v1133_v0 }
  0xc9   : > { %5677 = vmatmul.msk.f32.gmra.mxu3 %vm318_vm1, %v5611_v2 }
  0xca   : > { %5807 = vmatmul.msk.f32.gmra.mxu0 %vm318_vm1, %v6816_v44 }
  0xcb   : > { %v7014_v40 = vpop.f32.mrf.mxu2 }
  0xcc   : > { %8815 = vst [vmem:[#allocation14_spill] sm:$0xff] %v7014_v40  ;;  %v7016_v7 = vpop.f32.mrf.mxu3  ;;  %v7018_v8 = vpop.f32.mrf.mxu1 }
  0xcd   : > { %8816 = vst [vmem:[#allocation15_spill] sm:$0xff] %v7016_v7  ;;  %v5616_v7 = vld [vmem:[%s6694_s6 + $0x88] sm:$0xff] }
  0xcf   : > { %v7022_v15 = vpop.f32.mrf.mxu0  ;;  %5480 = vmatmul.msk.f32.gmra.mxu1 %vm318_vm1, %v5608_v38 }
  0xd0   : > { %5546 = vmatmul.msk.f32.gmra.mxu2 %vm318_vm1, %v1134_v12 }
  0xd1   : > { %5678 = vmatmul.msk.f32.gmra.mxu3 %vm318_vm1, %v5612_v14 }
  0xd2   : > { %5808 = vmatmul.msk.f32.gmra.mxu0 %vm318_vm1, %v6830_v48 }
  0xd3   : > { %v7029_v44 = vpop.f32.mrf.mxu2 }
  0xd4   : > { %8817 = vst [vmem:[#allocation16_spill] sm:$0xff] %v7029_v44  ;;  %v7031_v22 = vpop.f32.mrf.mxu3  ;;  %v7033_v23 = vpop.f32.mrf.mxu1  ;;  %v1145_v44 = vld [vmem:[%s6694_s6 + $0xaa] sm:$0xff] }
  0xd5   : > { %8818 = vst [vmem:[#allocation17_spill] sm:$0xff] %v7031_v22 }
  0xd7   : > { %v7037_v35 = vpop.f32.mrf.mxu0  ;;  %5481 = vmatmul.msk.f32.gmra.mxu1 %vm318_vm1, %v5609_v50 }
  0xd8   : > { %5547 = vmatmul.msk.f32.gmra.mxu2 %vm318_vm1, %v1135_v26  ;;  %v1137_v26 = vld [vmem:[%s6694_s6 + $0x5a] sm:$0xff] }
  0xd9   : > { %5679 = vmatmul.msk.f32.gmra.mxu3 %vm318_vm1, %v5613_v34 }
  0xda   : > { %5809 = vmatmul.msk.f32.gmra.mxu0 %vm318_vm1, %v6844_v52 }
  0xdb   : > { %v7044_v48 = vpop.f32.mrf.mxu2 }
  0xdc   : > { %8819 = vst [vmem:[#allocation18_spill] sm:$0xff] %v7044_v48  ;;  %v7046_v38 = vpop.f32.mrf.mxu3  ;;  %v7048_v46 = vpop.f32.mrf.mxu1 }
  0xdd   : > { %8820 = vst [vmem:[#allocation19_spill] sm:$0xff] %v7046_v38  ;;  %v5615_v38 = vld [vmem:[%s6694_s6 + $0x80] sm:$0xff] }
  0xdf   : > { %v7052_v0 = vpop.f32.mrf.mxu0  ;;  %5482 = vmatmul.msk.f32.gmra.mxu1 %vm318_vm1, %v5610_v58 }
  0xe0   : > { %5548 = vmatmul.msk.f32.gmra.mxu2 %vm318_vm1, %v1136_v47 }
  0xe1   : > { %5680 = vmatmul.msk.f32.gmra.mxu3 %vm318_vm1, %v5614_v57 }
  0xe2   : > { %5810 = vmatmul.msk.f32.gmra.mxu0 %vm318_vm1, %v6858_v56 }
  0xe3   : > { %v7059_v52 = vpop.f32.mrf.mxu2 }
  0xe4   : > { %8821 = vst [vmem:[#allocation20_spill] sm:$0xff] %v7059_v52  ;;  %v7061_v50 = vpop.f32.mrf.mxu3  ;;  %v7063_v12 = vpop.f32.mrf.mxu1 }
  0xe5   : > { %8822 = vst [vmem:[#allocation21_spill] sm:$0xff] %v7061_v50  ;;  %v1138_v50 = vld [vmem:[%s6694_s6 + $0x62] sm:$0xff] }
  0xe7   : > { %v7067_v22 = vpop.f32.mrf.mxu0  ;;  %5483 = vmatmul.msk.f32.gmra.mxu1 %vm318_vm1, %v5611_v2 }
  0xe8   : > { %5549 = vmatmul.msk.f32.gmra.mxu2 %vm318_vm1, %v1137_v26 }
  0xe9   : > { %5681 = vmatmul.msk.f32.gmra.mxu3 %vm318_vm1, %v5615_v38 }
  0xea   : > { %5811 = vmatmul.msk.f32.gmra.mxu0 %vm318_vm1, %v6884_v63 }
  0xeb   : > { %v7074_v56 = vpop.f32.mrf.mxu2 }
  0xec   : > { %8823 = vst [vmem:[#allocation22_spill] sm:$0xff] %v7074_v56  ;;  %v7076_v58 = vpop.f32.mrf.mxu3  ;;  %v7078_v47 = vpop.f32.mrf.mxu1 }
  0xed   : > { %8824 = vst [vmem:[#allocation23_spill] sm:$0xff] %v7076_v58  ;;  %v1139_v58 = vld [vmem:[%s6694_s6 + $0x6a] sm:$0xff] }
  0xef   : > { %v7082_v61 = vpop.f32.mrf.mxu0  ;;  %5484 = vmatmul.msk.f32.gmra.mxu1 %vm318_vm1, %v5612_v14 }
  0xf0   : > { %5550 = vmatmul.msk.f32.gmra.mxu2 %vm318_vm1, %v1138_v50 }
  0xf1   : > { %5682 = vmatmul.msk.f32.gmra.mxu3 %vm318_vm1, %v5616_v7 }
  0xf2   : > { %5812 = vmatmul.msk.f32.gmra.mxu0 %vm318_vm1, %v6902_v4 }
  0xf3   : > { %v7089_v63 = vpop.f32.mrf.mxu2 }
  0xf4   : > { %8825 = vst [vmem:[#allocation24_spill] sm:$0xff] %v7089_v63  ;;  %v7091_v2 = vpop.f32.mrf.mxu3  ;;  %v7093_v26 = vpop.f32.mrf.mxu1 }
  0xf5   : > { %8826 = vst [vmem:[#allocation25_spill] sm:$0xff] %v7091_v2  ;;  %v1140_v2 = vld [vmem:[%s6694_s6 + $0x7a] sm:$0xff] }
  0xf7   : > { %v7097_v42 = vpop.f32.mrf.mxu0  ;;  %5485 = vmatmul.msk.f32.gmra.mxu1 %vm318_vm1, %v5613_v34 }
  0xf8   : > { %5551 = vmatmul.msk.f32.gmra.mxu2 %vm318_vm1, %v1139_v58 }
  0xf9   : > { %5683 = vmatmul.msk.f32.gmra.mxu3 %vm318_vm1, %v5617_v54 }
  0xfa   : > { %5813 = vmatmul.msk.f32.gmra.mxu0 %vm318_vm1, %v6916_v10 }
  0xfb   : > { %v7104_v4 = vpop.f32.mrf.mxu2 }
  0xfc   : > { %8827 = vst [vmem:[#allocation26_spill] sm:$0xff] %v7104_v4  ;;  %v7106_v14 = vpop.f32.mrf.mxu3  ;;  %v7108_v50 = vpop.f32.mrf.mxu1  ;;  %v5619_v4 = vld [vmem:[%s6694_s6 + $0xa8] sm:$0xff] }
  0xfd   : > { %8828 = vst [vmem:[#allocation27_spill] sm:$0xff] %v7106_v14  ;;  %v1141_v14 = vld [vmem:[%s6694_s6 + $0x82] sm:$0xff] }
  0xff   : > { %v7112_v19 = vpop.f32.mrf.mxu0  ;;  %5486 = vmatmul.msk.f32.gmra.mxu1 %vm318_vm1, %v5614_v57 }
 0x100   : > { %5552 = vmatmul.msk.f32.gmra.mxu2 %vm318_vm1, %v1140_v2 }
 0x101   : > { %5684 = vmatmul.msk.f32.gmra.mxu3 %vm318_vm1, %v5618_v30 }
 0x102   : > { %5814 = vmatmul.msk.f32.gmra.mxu0 %vm318_vm1, %v6697_v5 }
 0x103   : > { %v7119_v10 = vpop.f32.mrf.mxu2 }
 0x104   : > { %8829 = vst [vmem:[#allocation28_spill] sm:$0xff] %v7119_v10  ;;  %v7121_v34 = vpop.f32.mrf.mxu3  ;;  %v7123_v58 = vpop.f32.mrf.mxu1  ;;  %v5620_v10 = vld [vmem:[%s6694_s6 + $0xb0] sm:$0xff] }
 0x105   : > { %8830 = vst [vmem:[#allocation29_spill] sm:$0xff] %v7121_v34  ;;  %v1142_v34 = vld [vmem:[%s6694_s6 + $0x8a] sm:$0xff] }
 0x107   : > { %v7127_v63 = vpop.f32.mrf.mxu0  ;;  %5487 = vmatmul.msk.f32.gmra.mxu1 %vm318_vm1, %v5615_v38 }
 0x108   : > { %5553 = vmatmul.msk.f32.gmra.mxu2 %vm318_vm1, %v1141_v14 }
 0x109   : > { %5685 = vmatmul.msk.f32.gmra.mxu3 %vm318_vm1, %v5619_v4 }
 0x10a   : > { %5815 = vmatmul.msk.f32.gmra.mxu0 %vm318_vm1, %v6708_v9 }
 0x10b   : > { %v7134_v5 = vpop.f32.mrf.mxu2 }
 0x10c   : > { %8831 = vst [vmem:[#allocation30_spill] sm:$0xff] %v7134_v5  ;;  %v7136_v57 = vpop.f32.mrf.mxu3  ;;  %v7138_v2 = vpop.f32.mrf.mxu1  ;;  %v5621_v5 = vld [vmem:[%s6694_s6 + $0xb8] sm:$0xff] }
 0x10d   : > { %8832 = vst [vmem:[#allocation31_spill] sm:$0xff] %v7136_v57  ;;  %v1143_v57 = vld [vmem:[%s6694_s6 + $0x92] sm:$0xff] }
 0x10f   : > { %v7142_v56 = vpop.f32.mrf.mxu0  ;;  %5488 = vmatmul.msk.f32.gmra.mxu1 %vm318_vm1, %v5616_v7 }
 0x110   : > { %5554 = vmatmul.msk.f32.gmra.mxu2 %vm318_vm1, %v1142_v34 }
 0x111   : > { %5686 = vmatmul.msk.f32.gmra.mxu3 %vm318_vm1, %v5620_v10 }
 0x112   : > { %5816 = vmatmul.msk.f32.gmra.mxu0 %vm318_vm1, %v6719_v13 }
 0x113   : > { %v7149_v9 = vpop.f32.mrf.mxu2 }
 0x114   : > { %8833 = vst [vmem:[#allocation32_spill] sm:$0xff] %v7149_v9  ;;  %v7151_v38 = vpop.f32.mrf.mxu3  ;;  %v7153_v14 = vpop.f32.mrf.mxu1  ;;  %v5622_v9 = vld [vmem:[%s6694_s6 + $0xc8] sm:$0xff] }
 0x115   : > { %8834 = vst [vmem:[#allocation33_spill] sm:$0xff] %v7151_v38  ;;  %v1144_v38 = vld [vmem:[%s6694_s6 + $0xa2] sm:$0xff] }
 0x117   : > { %v7157_v52 = vpop.f32.mrf.mxu0  ;;  %5489 = vmatmul.msk.f32.gmra.mxu1 %vm318_vm1, %v5617_v54 }
 0x118   : > { %5555 = vmatmul.msk.f32.gmra.mxu2 %vm318_vm1, %v1143_v57 }
 0x119   : > { %5687 = vmatmul.msk.f32.gmra.mxu3 %vm318_vm1, %v5621_v5 }
 0x11a   : > { %5817 = vmatmul.msk.f32.gmra.mxu0 %vm318_vm1, %v6730_v17 }
 0x11b   : > { %v7164_v13 = vpop.f32.mrf.mxu2 }
 0x11c   : > { %8835 = vst [vmem:[#allocation34_spill] sm:$0xff] %v7164_v13  ;;  %v7166_v7 = vpop.f32.mrf.mxu3  ;;  %v936_v34 = vpop.f32.mrf.mxu1 }
 0x11d   : > { %8836 = vst [vmem:[#allocation35_spill] sm:$0xff] %v7166_v7  ;;  %v937_v17 = vadd.f32 %v936_v34, %v6929_v16 }
 0x11f   : > { %v2477_v48 = vpop.f32.mrf.mxu0  ;;  %5490 = vmatmul.msk.f32.gmra.mxu1 %vm318_vm1, %v5618_v30 }
 0x120   : > { %5556 = vmatmul.msk.f32.gmra.mxu2 %vm318_vm1, %v1144_v38 }
 0x121   : > { %5688 = vmatmul.msk.f32.gmra.mxu3 %vm318_vm1, %v5622_v9 }
 0x122   : > { %5818 = vmatmul.msk.f32.gmra.mxu0 %vm318_vm1, %v6741_v21 }
 0x123   : > { %v1406_v54 = vpop.f32.mrf.mxu2 }
 0x124   : > { %v1598_v57 = vadd.f32 %v1406_v54, %v937_v17  ;;  %v1943_v13 = vpop.f32.mrf.mxu3  ;;  %v939_v7 = vpop.f32.mrf.mxu1  ;;  %v1146_v17 = vld [vmem:[%s6694_s6 + $0xb2] sm:$0xff] }
 0x125   : > { %v940_v21 = vadd.f32 %v939_v7, %v6945_v27 }
 0x126   : > { %v2135_v40 = vadd.f32 %v1943_v13, %v1598_v57 }
 0x127   : > { %v2480_v32 = vpop.f32.mrf.mxu0  ;;  %5491 = vmatmul.msk.f32.gmra.mxu1 %vm318_vm1, %v5619_v4 }
 0x128   : > { %v7178_v30 = vadd.f32 %v2477_v48, %v2135_v40  ;;  %5557 = vmatmul.msk.f32.gmra.mxu2 %vm318_vm1, %v1145_v44  ;;  %v5624_v48 = vld [vmem:[%s6694_s6 + $0xd8] sm:$0xff] }
 0x129   : > { %5689 = vmatmul.msk.f32.gmra.mxu3 %vm318_vm1, %v5623_v36 }
 0x12a   : > { %5819 = vmatmul.msk.f32.gmra.mxu0 %vm318_vm1, %v6755_v25 }
 0x12b   : > { %v1409_v16 = vpop.f32.mrf.mxu2 }
 0x12c   : > { %v1599_v38 = vadd.f32 %v1409_v16, %v940_v21  ;;  %v1946_v34 = vpop.f32.mrf.mxu3  ;;  %v942_v13 = vpop.f32.mrf.mxu1  ;;  %v1147_v21 = vld [vmem:[%s6694_s6 + $0xba] sm:$0xff] }
 0x12d   : > { %v943_v25 = vadd.f32 %v942_v13, %v6961_v39  ;;  %v5625_v16 = vld [vmem:[%s6694_s6 + $0xe0] sm:$0xff] }
 0x12e   : > { %v2136_v40 = vadd.f32 %v1946_v34, %v1599_v38 }
 0x12f   : > { %v2483_v54 = vpop.f32.mrf.mxu0  ;;  %5492 = vmatmul.msk.f32.gmra.mxu1 %vm318_vm1, %v5620_v10 }
 0x130   : > { %v7188_v4 = vadd.f32 %v2480_v32, %v2136_v40  ;;  %5558 = vmatmul.msk.f32.gmra.mxu2 %vm318_vm1, %v1146_v17  ;;  %v1148_v40 = vld [vmem:[%s6694_s6 + $0xca] sm:$0xff] }
 0x131   : > { %5690 = vmatmul.msk.f32.gmra.mxu3 %vm318_vm1, %v5624_v48 }
 0x132   : > { %5820 = vmatmul.msk.f32.gmra.mxu0 %vm318_vm1, %v6769_v29 }
 0x133   : > { %v1412_v27 = vpop.f32.mrf.mxu2 }
 0x134   : > { %v1600_v44 = vadd.f32 %v1412_v27, %v943_v25  ;;  %v1949_v7 = vpop.f32.mrf.mxu3  ;;  %v945_v57 = vpop.f32.mrf.mxu1  ;;  %v5626_v25 = vld [vmem:[%s6694_s6 + $0xf0] sm:$0xff] }
 0x135   : > { %v946_v29 = vadd.f32 %v945_v57, %v6977_v51 }
 0x136   : > { %v2137_v32 = vadd.f32 %v1949_v7, %v1600_v44 }
 0x137   : > { %v2486_v38 = vpop.f32.mrf.mxu0  ;;  %5493 = vmatmul.msk.f32.gmra.mxu1 %vm318_vm1, %v5621_v5 }
 0x138   : > { %v7198_v10 = vadd.f32 %v2483_v54, %v2137_v32  ;;  %5559 = vmatmul.msk.f32.gmra.mxu2 %vm318_vm1, %v1147_v21  ;;  %v1149_v21 = vld [vmem:[%s6694_s6 + $0xd2] sm:$0xff] }
 0x139   : > { %5691 = vmatmul.msk.f32.gmra.mxu3 %vm318_vm1, %v5625_v16 }
 0x13a   : > { %5821 = vmatmul.msk.f32.gmra.mxu0 %vm318_vm1, %v6783_v33 }
 0x13b   : > { %v1415_v39 = vpop.f32.mrf.mxu2 }
 0x13c   : > { %v1601_v34 = vadd.f32 %v1415_v39, %v946_v29  ;;  %v1952_v13 = vpop.f32.mrf.mxu3  ;;  %v948_v17 = vpop.f32.mrf.mxu1 }
 0x13d   : > { %v949_v33 = vadd.f32 %v948_v17, %v6992_v59  ;;  %v1150_v17 = vld [vmem:[%s6694_s6 + $0xda] sm:$0xff] }
 0x13e   : > { %v2138_v54 = vadd.f32 %v1952_v13, %v1601_v34 }
 0x13f   : > { %v2489_v27 = vpop.f32.mrf.mxu0  ;;  %5494 = vmatmul.msk.f32.gmra.mxu1 %vm318_vm1, %v5622_v9 }
 0x140   : > { %v7208_v5 = vadd.f32 %v2486_v38, %v2138_v54  ;;  %5560 = vmatmul.msk.f32.gmra.mxu2 %vm318_vm1, %v1148_v40  ;;  %v5627_v38 = vld [vmem:[%s6694_s6 + $0xf8] sm:$0xff]  ;;  %v5628_v54 = vld [vmem:[%s6694_s6 + $0x100] sm:$0xff] }
 0x141   : > { %5692 = vmatmul.msk.f32.gmra.mxu3 %vm318_vm1, %v5626_v25 }
 0x142   : > { %5822 = vmatmul.msk.f32.gmra.mxu0 %vm318_vm1, %v6797_v37 }
 0x143   : > { %v1418_v51 = vpop.f32.mrf.mxu2 }
 0x144   : > { %v1602_v44 = vadd.f32 %v1418_v51, %v949_v33  ;;  %v1955_v7 = vpop.f32.mrf.mxu3  ;;  %v951_v57 = vpop.f32.mrf.mxu1 }
 0x145   : > { %v952_v37 = vadd.f32 %v951_v57, %v7007_v3 }
 0x146   : > { %v2139_v32 = vadd.f32 %v1955_v7, %v1602_v44  ;;  %v1151_v7 = vld [vmem:[%s6694_s6 + $0xe2] sm:$0xff] }
 0x147   : > { %v2492_v29 = vpop.f32.mrf.mxu0  ;;  %5495 = vmatmul.msk.f32.gmra.mxu1 %vm318_vm1, %v5623_v36 }
 0x148   : > { %v7218_v9 = vadd.f32 %v2489_v27, %v2139_v32  ;;  %5561 = vmatmul.msk.f32.gmra.mxu2 %vm318_vm1, %v1149_v21  ;;  %v5629_v21 = vld [vmem:[%s6694_s6 + $0x108] sm:$0xff] }
 0x149   : > { %5693 = vmatmul.msk.f32.gmra.mxu3 %vm318_vm1, %v5627_v38 }
 0x14a   : > { %5823 = vmatmul.msk.f32.gmra.mxu0 %vm318_vm1, %v6811_v41 }
 0x14b   : > { %v1421_v59 = vpop.f32.mrf.mxu2 }
 0x14c   : > { %v1603_v39 = vadd.f32 %v1421_v59, %v952_v37  ;;  %v1958_v34 = vpop.f32.mrf.mxu3  ;;  %v954_v13 = vpop.f32.mrf.mxu1 }
 0x14d   : > { %v955_v41 = vadd.f32 %v954_v13, %v7022_v15  ;;  %v5630_v13 = vld [vmem:[%s6694_s6 + $0x118] sm:$0xff] }
 0x14e   : > { %v2140_v40 = vadd.f32 %v1958_v34, %v1603_v39  ;;  %v1152_v39 = vld [vmem:[%s6694_s6 + $0xf2] sm:$0xff] }
 0x14f   : > { %v2495_v27 = vpop.f32.mrf.mxu0  ;;  %5496 = vmatmul.msk.f32.gmra.mxu1 %vm318_vm1, %v5624_v48 }
 0x150   : > { %v7228_v36 = vadd.f32 %v2492_v29, %v2140_v40  ;;  %5562 = vmatmul.msk.f32.gmra.mxu2 %vm318_vm1, %v1150_v17 }
 0x151   : > { %5694 = vmatmul.msk.f32.gmra.mxu3 %vm318_vm1, %v5628_v54 }
 0x152   : > { %5824 = vmatmul.msk.f32.gmra.mxu0 %vm318_vm1, %v6825_v45 }
 0x153   : > { %v1424_v3 = vpop.f32.mrf.mxu2 }
 0x154   : > { %v1604_v33 = vadd.f32 %v1424_v3, %v955_v41  ;;  %v1961_v51 = vpop.f32.mrf.mxu3  ;;  %v957_v44 = vpop.f32.mrf.mxu1  ;;  %v1153_v3 = vld [vmem:[%s6694_s6 + $0xfa] sm:$0xff] }
 0x155   : > { %v958_v45 = vadd.f32 %v957_v44, %v7037_v35 }
 0x156   : > { %v2141_v57 = vadd.f32 %v1961_v51, %v1604_v33  ;;  %v5631_v51 = vld [vmem:[%s6694_s6 + $0x120] sm:$0xff] }
 0x157   : > { %v2498_v32 = vpop.f32.mrf.mxu0  ;;  %5497 = vmatmul.msk.f32.gmra.mxu1 %vm318_vm1, %v5625_v16 }
 0x158   : > { %v7238_v48 = vadd.f32 %v2495_v27, %v2141_v57  ;;  %5563 = vmatmul.msk.f32.gmra.mxu2 %vm318_vm1, %v1151_v7 }
 0x159   : > { %5695 = vmatmul.msk.f32.gmra.mxu3 %vm318_vm1, %v5629_v21 }
 0x15a   : > { %5825 = vmatmul.msk.f32.gmra.mxu0 %vm318_vm1, %v6839_v49 }
 0x15b   : > { %v1427_v15 = vpop.f32.mrf.mxu2 }
 0x15c   : > { %v1605_v29 = vadd.f32 %v1427_v15, %v958_v45  ;;  %v1964_v37 = vpop.f32.mrf.mxu3  ;;  %v960_v59 = vpop.f32.mrf.mxu1  ;;  %v1154_v45 = vld [vmem:[%s6694_s6 + $0x102] sm:$0xff] }
 0x15d   : > { %v961_v49 = vadd.f32 %v960_v59, %v7052_v0 }
 0x15e   : > { %v2142_v34 = vadd.f32 %v1964_v37, %v1605_v29  ;;  %v5632_v29 = vld [vmem:[%s6694_s6 + $0x128] sm:$0xff] }
 0x15f   : > { %v2501_v17 = vpop.f32.mrf.mxu0  ;;  %5498 = vmatmul.msk.f32.gmra.mxu1 %vm318_vm1, %v5626_v25 }
 0x160   : > { %v7248_v16 = vadd.f32 %v2498_v32, %v2142_v34  ;;  %5564 = vmatmul.msk.f32.gmra.mxu2 %vm318_vm1, %v1152_v39 }
 0x161   : > { %5696 = vmatmul.msk.f32.gmra.mxu3 %vm318_vm1, %v5630_v13 }
 0x162   : > { %5826 = vmatmul.msk.f32.gmra.mxu0 %vm318_vm1, %v6853_v53 }
 0x163   : > { %v1430_v35 = vpop.f32.mrf.mxu2 }
 0x164   : > { %v1606_v40 = vadd.f32 %v1430_v35, %v961_v49  ;;  %v1967_v27 = vpop.f32.mrf.mxu3  ;;  %v963_v41 = vpop.f32.mrf.mxu1  ;;  %v7278_v35 = vld [vmem:[%s6694_s6 + $0x130] sm:$0xff] }
 0x165   : > { %v964_v53 = vadd.f32 %v963_v41, %v7067_v22 }
 0x166   : > { %v2143_v33 = vadd.f32 %v1967_v27, %v1606_v40 }
 0x167   : > { %v2504_v44 = vpop.f32.mrf.mxu0  ;;  %5499 = vmatmul.msk.f32.gmra.mxu1 %vm318_vm1, %v5627_v38 }
 0x168   : > { %v7258_v25 = vadd.f32 %v2501_v17, %v2143_v33  ;;  %5565 = vmatmul.msk.f32.gmra.mxu2 %vm318_vm1, %v1153_v3  ;;  %v1155_v17 = vld [vmem:[%s6694_s6 + $0x10a] sm:$0xff]  ;;  %v1156_v33 = vld [vmem:[%s6694_s6 + $0x11a] sm:$0xff] }
 0x169   : > { %5697 = vmatmul.msk.f32.gmra.mxu3 %vm318_vm1, %v5631_v51 }
 0x16a   : > { %5827 = vmatmul.msk.f32.gmra.mxu0 %vm318_vm1, %v6879_v60 }
 0x16b   : > { %v1433_v0 = vpop.f32.mrf.mxu2 }
 0x16c   : > { %v1607_v7 = vadd.f32 %v1433_v0, %v964_v53  ;;  %v1970_v57 = vpop.f32.mrf.mxu3  ;;  %v966_v32 = vpop.f32.mrf.mxu1  ;;  %v7291_v53 = vld [vmem:[%s6694_s6 + $0x140] sm:$0xff] }
 0x16d   : > { %v967_v60 = vadd.f32 %v966_v32, %v7082_v61  ;;  %v5764_v0 = vld [vmem:[%s6694_s6 + $0x141] sm:$0xff] }
 0x16e   : > { %v2144_v15 = vadd.f32 %v1970_v57, %v1607_v7 }
 0x16f   : > { %v2507_v37 = vpop.f32.mrf.mxu0  ;;  %5500 = vmatmul.msk.f32.gmra.mxu1 %vm318_vm1, %v5628_v54 }
 0x170   : > { %v7268_v38 = vadd.f32 %v2504_v44, %v2144_v15  ;;  %5566 = vmatmul.msk.f32.gmra.mxu2 %vm318_vm1, %v1154_v45  ;;  %v1157_v15 = vld [vmem:[%s6694_s6 + $0x122] sm:$0xff] }
 0x171   : > { %5698 = vmatmul.msk.f32.gmra.mxu3 %vm318_vm1, %v5632_v29 }
 0x172   : > { %5828 = vmatmul.msk.f32.gmra.mxu0 %vm318_vm1, %v6897_v1 }
 0x173   : > { %v1436_v22 = vpop.f32.mrf.mxu2 }
 0x174   : > { %v1608_v59 = vadd.f32 %v1436_v22, %v967_v60  ;;  %v1973_v39 = vpop.f32.mrf.mxu3  ;;  %v969_v34 = vpop.f32.mrf.mxu1  ;;  %v7304_v60 = vld [vmem:[%s6694_s6 + $0x148] sm:$0xff] }
 0x175   : > { %v970_v1 = vadd.f32 %v969_v34, %v7097_v42  ;;  %v5765_v22 = vld [vmem:[%s6694_s6 + $0x149] sm:$0xff] }
 0x176   : > { %v2145_v49 = vadd.f32 %v1973_v39, %v1608_v59 }
 0x177   : > { %v2510_v54 = vpop.f32.mrf.mxu0  ;;  %5501 = vmatmul.msk.f32.gmra.mxu1 %vm318_vm1, %v5629_v21 }
 0x178   : > { %v7280_v40 = vadd.f32 %v2507_v37, %v2145_v49  ;;  %5567 = vmatmul.msk.f32.gmra.mxu2 %vm318_vm1, %v1155_v17 }
 0x179   : > { %5699 = vmatmul.msk.f32.gmra.mxu3 %vm318_vm1, %v7278_v35 }
 0x17a   : > { %5829 = vmatmul.msk.f32.gmra.mxu0 %vm318_vm1, %v6911_v6 }
 0x17b   : > { %v1439_v61 = vpop.f32.mrf.mxu2 }
 0x17c   : > { %v1609_v27 = vadd.f32 %v1439_v61, %v970_v1  ;;  %v1976_v41 = vpop.f32.mrf.mxu3  ;;  %v972_v3 = vpop.f32.mrf.mxu1  ;;  %v7317_v61 = vld [vmem:[%s6694_s6 + $0x150] sm:$0xff] }
 0x17d   : > { %v973_v6 = vadd.f32 %v972_v3, %v7112_v19 }
 0x17e   : > { %v2146_v44 = vadd.f32 %v1976_v41, %v1609_v27  ;;  %v5766_v27 = vld [vmem:[%s6694_s6 + $0x151] sm:$0xff] }
 0x17f   : > { %v2513_v21 = vpop.f32.mrf.mxu0  ;;  %5502 = vmatmul.msk.f32.gmra.mxu1 %vm318_vm1, %v5630_v13 }
 0x180   : > { %v7294_v7 = vadd.f32 %v2510_v54, %v2146_v44  ;;  %5568 = vmatmul.msk.f32.gmra.mxu2 %vm318_vm1, %v1156_v33  ;;  %v1158_v54 = vld [vmem:[%s6694_s6 + $0x12a] sm:$0xff] }
 0x181   : > { %5700 = vmatmul.msk.f32.gmra.mxu3 %vm318_vm1, %v7291_v53 }
 0x182   : > { %5830 = vmatmul.msk.f32.gmra.mxu0 %vm318_vm1, %v5764_v0  ;;  %v1159_v0 = vld [vmem:[%s6694_s6 + $0x132] sm:$0xff] }
 0x183   : > { %v1442_v42 = vpop.f32.mrf.mxu2 }
 0x184   : > { %v1610_v57 = vadd.f32 %v1442_v42, %v973_v6  ;;  %v1979_v32 = vpop.f32.mrf.mxu3  ;;  %v975_v45 = vpop.f32.mrf.mxu1  ;;  %v7330_v42 = vld [vmem:[%s6694_s6 + $0x158] sm:$0xff] }
 0x185   : > { %v976_v19 = vadd.f32 %v975_v45, %v7127_v63 }
 0x186   : > { %v2147_v37 = vadd.f32 %v1979_v32, %v1610_v57  ;;  %v5767_v57 = vld [vmem:[%s6694_s6 + $0x159] sm:$0xff] }
 0x187   : > { %v2516_v13 = vpop.f32.mrf.mxu0  ;;  %5503 = vmatmul.msk.f32.gmra.mxu1 %vm318_vm1, %v5631_v51 }
 0x188   : > { %v7307_v59 = vadd.f32 %v2513_v21, %v2147_v37  ;;  %5569 = vmatmul.msk.f32.gmra.mxu2 %vm318_vm1, %v1157_v15 }
 0x189   : > { %5701 = vmatmul.msk.f32.gmra.mxu3 %vm318_vm1, %v7304_v60 }
 0x18a   : > { %5831 = vmatmul.msk.f32.gmra.mxu0 %vm318_vm1, %v5765_v22  ;;  %v1160_v22 = vld [vmem:[%s6694_s6 + $0x142] sm:$0xff] }
 0x18b   : > { %v1445_v39 = vpop.f32.mrf.mxu2 }
 0x18c   : > { %v1611_v34 = vadd.f32 %v1445_v39, %v976_v19  ;;  %v1982_v17 = vpop.f32.mrf.mxu3  ;;  %v978_v49 = vpop.f32.mrf.mxu1  ;;  %v7344_v39 = vld [vmem:[%s6694_s6 + $0x168] sm:$0xff] }
 0x18d   : > { %v979_v63 = vadd.f32 %v978_v49, %v7142_v56 }
 0x18e   : > { %v2148_v1 = vadd.f32 %v1982_v17, %v1611_v34  ;;  %v5768_v34 = vld [vmem:[%s6694_s6 + $0x169] sm:$0xff] }
 0x18f   : > { %v2519_v51 = vpop.f32.mrf.mxu0  ;;  %5504 = vmatmul.msk.f32.gmra.mxu1 %vm318_vm1, %v5632_v29 }
 0x190   : > { %v7320_v41 = vadd.f32 %v2516_v13, %v2148_v1  ;;  %5570 = vmatmul.msk.f32.gmra.mxu2 %vm318_vm1, %v1158_v54 }
 0x191   : > { %5702 = vmatmul.msk.f32.gmra.mxu3 %vm318_vm1, %v7317_v61 }
 0x192   : > { %5832 = vmatmul.msk.f32.gmra.mxu0 %vm318_vm1, %v5766_v27  ;;  %v1161_v27 = vld [vmem:[%s6694_s6 + $0x14a] sm:$0xff] }
 0x193   : > { %v1448_v3 = vpop.f32.mrf.mxu2 }
 0x194   : > { %v1612_v33 = vadd.f32 %v1448_v3, %v979_v63  ;;  %v1985_v44 = vpop.f32.mrf.mxu3  ;;  %v981_v21 = vpop.f32.mrf.mxu1  ;;  %v7358_v3 = vld [vmem:[%s6694_s6 + $0x170] sm:$0xff] }
 0x195   : > { %v982_v56 = vadd.f32 %v981_v21, %v7157_v52 }
 0x196   : > { %v2149_v6 = vadd.f32 %v1985_v44, %v1612_v33  ;;  %v5769_v33 = vld [vmem:[%s6694_s6 + $0x171] sm:$0xff] }
 0x197   : > { %v2522_v29 = vpop.f32.mrf.mxu0  ;;  %5505 = vmatmul.msk.f32.gmra.mxu1 %vm318_vm1, %v7278_v35 }
 0x198   : > { %v7333_v32 = vadd.f32 %v2519_v51, %v2149_v6  ;;  %5571 = vmatmul.msk.f32.gmra.mxu2 %vm318_vm1, %v1159_v0 }
 0x199   : > { %5703 = vmatmul.msk.f32.gmra.mxu3 %vm318_vm1, %v7330_v42 }
 0x19a   : > { %5833 = vmatmul.msk.f32.gmra.mxu0 %vm318_vm1, %v5767_v57  ;;  %v1162_v57 = vld [vmem:[%s6694_s6 + $0x152] sm:$0xff] }
 0x19b   : > { %v1451_v45 = vpop.f32.mrf.mxu2 }
 0x19c   : > { %v1613_v15 = vadd.f32 %v1451_v45, %v982_v56  ;;  %v1988_v37 = vpop.f32.mrf.mxu3  ;;  %v984_v13 = vpop.f32.mrf.mxu1  ;;  %v7372_v45 = vld [vmem:[%s6694_s6 + $0x178] sm:$0xff] }
 0x19d   : > { %v985_v52 = vadd.f32 %v984_v13, %v6924_v11 }
 0x19e   : > { %v2150_v19 = vadd.f32 %v1988_v37, %v1613_v15  ;;  %v5770_v15 = vld [vmem:[%s6694_s6 + $0x179] sm:$0xff] }
 0x19f   : > { %v2525_v35 = vpop.f32.mrf.mxu0  ;;  %5506 = vmatmul.msk.f32.gmra.mxu1 %vm318_vm1, %v7291_v53 }
 0x1a0   : > { %v7347_v17 = vadd.f32 %v2522_v29, %v2150_v19  ;;  %5572 = vmatmul.msk.f32.gmra.mxu2 %vm318_vm1, %v1160_v22 }
 0x1a1   : > { %5704 = vmatmul.msk.f32.gmra.mxu3 %vm318_vm1, %v7344_v39 }
 0x1a2   : > { %5834 = vmatmul.msk.f32.gmra.mxu0 %vm318_vm1, %v5768_v34  ;;  %v1163_v34 = vld [vmem:[%s6694_s6 + $0x15a] sm:$0xff] }
 0x1a3   : > { %v1454_v49 = vpop.f32.mrf.mxu2 }
 0x1a4   : > { %v1614_v54 = vadd.f32 %v1454_v49, %v985_v52  ;;  %v1991_v1 = vpop.f32.mrf.mxu3  ;;  %v987_v51 = vpop.f32.mrf.mxu1  ;;  %v7386_v49 = vld [vmem:[%s6694_s6 + $0x180] sm:$0xff] }
 0x1a5   : > { %v988_v11 = vadd.f32 %v987_v51, %v6940_v20 }
 0x1a6   : > { %v2151_v63 = vadd.f32 %v1991_v1, %v1614_v54  ;;  %v5771_v54 = vld [vmem:[%s6694_s6 + $0x181] sm:$0xff] }
 0x1a7   : > { %v2528_v53 = vpop.f32.mrf.mxu0  ;;  %5507 = vmatmul.msk.f32.gmra.mxu1 %vm318_vm1, %v7304_v60 }
 0x1a8   : > { %v7361_v44 = vadd.f32 %v2525_v35, %v2151_v63  ;;  %5573 = vmatmul.msk.f32.gmra.mxu2 %vm318_vm1, %v1161_v27 }
 0x1a9   : > { %5705 = vmatmul.msk.f32.gmra.mxu3 %vm318_vm1, %v7358_v3 }
 0x1aa   : > { %5835 = vmatmul.msk.f32.gmra.mxu0 %vm318_vm1, %v5769_v33  ;;  %v1164_v33 = vld [vmem:[%s6694_s6 + $0x16a] sm:$0xff] }
 0x1ab   : > { %v1457_v21 = vpop.f32.mrf.mxu2 }
 0x1ac   : > { %v1615_v0 = vadd.f32 %v1457_v21, %v988_v11  ;;  %v1994_v6 = vpop.f32.mrf.mxu3  ;;  %v990_v29 = vpop.f32.mrf.mxu1  ;;  %v7400_v21 = vld [vmem:[%s6694_s6 + $0x190] sm:$0xff] }
 0x1ad   : > { %v991_v20 = vadd.f32 %v990_v29, %v6956_v31 }
 0x1ae   : > { %v2152_v56 = vadd.f32 %v1994_v6, %v1615_v0  ;;  %v5772_v0 = vld [vmem:[%s6694_s6 + $0x191] sm:$0xff] }
 0x1af   : > { %v2531_v60 = vpop.f32.mrf.mxu0  ;;  %5508 = vmatmul.msk.f32.gmra.mxu1 %vm318_vm1, %v7317_v61 }
 0x1b0   : > { %v7375_v37 = vadd.f32 %v2528_v53, %v2152_v56  ;;  %5574 = vmatmul.msk.f32.gmra.mxu2 %vm318_vm1, %v1162_v57 }
 0x1b1   : > { %5706 = vmatmul.msk.f32.gmra.mxu3 %vm318_vm1, %v7372_v45 }
 0x1b2   : > { %5836 = vmatmul.msk.f32.gmra.mxu0 %vm318_vm1, %v5770_v15  ;;  %v1165_v15 = vld [vmem:[%s6694_s6 + $0x172] sm:$0xff] }
 0x1b3   : > { %v1460_v13 = vpop.f32.mrf.mxu2 }
 0x1b4   : > { %v1616_v22 = vadd.f32 %v1460_v13, %v991_v20  ;;  %v1997_v19 = vpop.f32.mrf.mxu3  ;;  %v993_v35 = vpop.f32.mrf.mxu1  ;;  %v7414_v13 = vld [vmem:[%s6694_s6 + $0x198] sm:$0xff] }
 0x1b5   : > { %v994_v31 = vadd.f32 %v993_v35, %v6972_v43 }
 0x1b6   : > { %v2153_v52 = vadd.f32 %v1997_v19, %v1616_v22  ;;  %v5773_v22 = vld [vmem:[%s6694_s6 + $0x199] sm:$0xff] }
 0x1b7   : > { %v2534_v61 = vpop.f32.mrf.mxu0  ;;  %5509 = vmatmul.msk.f32.gmra.mxu1 %vm318_vm1, %v7330_v42 }
 0x1b8   : > { %v7389_v1 = vadd.f32 %v2531_v60, %v2153_v52  ;;  %5575 = vmatmul.msk.f32.gmra.mxu2 %vm318_vm1, %v1163_v34 }
 0x1b9   : > { %5707 = vmatmul.msk.f32.gmra.mxu3 %vm318_vm1, %v7386_v49 }
 0x1ba   : > { %5837 = vmatmul.msk.f32.gmra.mxu0 %vm318_vm1, %v5771_v54  ;;  %v1166_v54 = vld [vmem:[%s6694_s6 + $0x17a] sm:$0xff] }
 0x1bb   : > { %v1463_v51 = vpop.f32.mrf.mxu2 }
 0x1bc   : > { %v1617_v27 = vadd.f32 %v1463_v51, %v994_v31  ;;  %v2000_v63 = vpop.f32.mrf.mxu3  ;;  %v996_v53 = vpop.f32.mrf.mxu1  ;;  %v7428_v51 = vld [vmem:[%s6694_s6 + $0x1a0] sm:$0xff] }
 0x1bd   : > { %v997_v43 = vadd.f32 %v996_v53, %v6988_v55 }
 0x1be   : > { %v2154_v11 = vadd.f32 %v2000_v63, %v1617_v27  ;;  %v5774_v27 = vld [vmem:[%s6694_s6 + $0x1a1] sm:$0xff] }
 0x1bf   : > { %v2537_v42 = vpop.f32.mrf.mxu0  ;;  %5510 = vmatmul.msk.f32.gmra.mxu1 %vm318_vm1, %v7344_v39 }
 0x1c0   : > { %v7403_v6 = vadd.f32 %v2534_v61, %v2154_v11  ;;  %5576 = vmatmul.msk.f32.gmra.mxu2 %vm318_vm1, %v1164_v33 }
 0x1c1   : > { %5708 = vmatmul.msk.f32.gmra.mxu3 %vm318_vm1, %v7400_v21 }
 0x1c2   : > { %5838 = vmatmul.msk.f32.gmra.mxu0 %vm318_vm1, %v5772_v0  ;;  %v1167_v0 = vld [vmem:[%s6694_s6 + $0x182] sm:$0xff] }
 0x1c3   : > { %v1466_v29 = vpop.f32.mrf.mxu2 }
 0x1c4   : > { %v1618_v57 = vadd.f32 %v1466_v29, %v997_v43  ;;  %v2003_v56 = vpop.f32.mrf.mxu3  ;;  %v999_v60 = vpop.f32.mrf.mxu1  ;;  %v7442_v29 = vld [vmem:[%s6694_s6 + $0x1a8] sm:$0xff] }
 0x1c5   : > { %v1000_v55 = vadd.f32 %v999_v60, %v7003_v62 }
 0x1c6   : > { %v2155_v20 = vadd.f32 %v2003_v56, %v1618_v57  ;;  %v5775_v57 = vld [vmem:[%s6694_s6 + $0x1a9] sm:$0xff] }
 0x1c7   : > { %v2540_v39 = vpop.f32.mrf.mxu0  ;;  %5511 = vmatmul.msk.f32.gmra.mxu1 %vm318_vm1, %v7358_v3 }
 0x1c8   : > { %v7417_v19 = vadd.f32 %v2537_v42, %v2155_v20  ;;  %5577 = vmatmul.msk.f32.gmra.mxu2 %vm318_vm1, %v1165_v15 }
 0x1c9   : > { %5709 = vmatmul.msk.f32.gmra.mxu3 %vm318_vm1, %v7414_v13 }
 0x1ca   : > { %5839 = vmatmul.msk.f32.gmra.mxu0 %vm318_vm1, %v5773_v22  ;;  %v1168_v22 = vld [vmem:[%s6694_s6 + $0x192] sm:$0xff] }
 0x1cb   : > { %v1469_v35 = vpop.f32.mrf.mxu2 }
 0x1cc   : > { %v1619_v34 = vadd.f32 %v1469_v35, %v1000_v55  ;;  %v2006_v52 = vpop.f32.mrf.mxu3  ;;  %v1002_v61 = vpop.f32.mrf.mxu1  ;;  %v7456_v35 = vld [vmem:[%s6694_s6 + $0x1b8] sm:$0xff] }
 0x1cd   : > { %v1003_v62 = vadd.f32 %v1002_v61, %v7018_v8 }
 0x1ce   : > { %v2156_v31 = vadd.f32 %v2006_v52, %v1619_v34  ;;  %v5776_v34 = vld [vmem:[%s6694_s6 + $0x1b9] sm:$0xff] }
 0x1cf   : > { %v2543_v3 = vpop.f32.mrf.mxu0  ;;  %5512 = vmatmul.msk.f32.gmra.mxu1 %vm318_vm1, %v7372_v45 }
 0x1d0   : > { %v7431_v63 = vadd.f32 %v2540_v39, %v2156_v31  ;;  %5578 = vmatmul.msk.f32.gmra.mxu2 %vm318_vm1, %v1166_v54 }
 0x1d1   : > { %5710 = vmatmul.msk.f32.gmra.mxu3 %vm318_vm1, %v7428_v51 }
 0x1d2   : > { %5840 = vmatmul.msk.f32.gmra.mxu0 %vm318_vm1, %v5774_v27  ;;  %v1169_v27 = vld [vmem:[%s6694_s6 + $0x19a] sm:$0xff] }
 0x1d3   : > { %v1472_v53 = vpop.f32.mrf.mxu2 }
 0x1d4   : > { %v1620_v33 = vadd.f32 %v1472_v53, %v1003_v62  ;;  %v2009_v11 = vpop.f32.mrf.mxu3  ;;  %v1005_v42 = vpop.f32.mrf.mxu1  ;;  %v7470_v53 = vld [vmem:[%s6694_s6 + $0x1c0] sm:$0xff] }
 0x1d5   : > { %v1006_v8 = vadd.f32 %v1005_v42, %v7033_v23 }
 0x1d6   : > { %v2157_v43 = vadd.f32 %v2009_v11, %v1620_v33  ;;  %v5777_v33 = vld [vmem:[%s6694_s6 + $0x1c1] sm:$0xff] }
 0x1d7   : > { %v2546_v45 = vpop.f32.mrf.mxu0  ;;  %5513 = vmatmul.msk.f32.gmra.mxu1 %vm318_vm1, %v7386_v49 }
 0x1d8   : > { %v7445_v56 = vadd.f32 %v2543_v3, %v2157_v43  ;;  %5579 = vmatmul.msk.f32.gmra.mxu2 %vm318_vm1, %v1167_v0 }
 0x1d9   : > { %5711 = vmatmul.msk.f32.gmra.mxu3 %vm318_vm1, %v7442_v29 }
 0x1da   : > { %5841 = vmatmul.msk.f32.gmra.mxu0 %vm318_vm1, %v5775_v57  ;;  %v1170_v57 = vld [vmem:[%s6694_s6 + $0x1a2] sm:$0xff] }
 0x1db   : > { %v1475_v60 = vpop.f32.mrf.mxu2 }
 0x1dc   : > { %v1621_v15 = vadd.f32 %v1475_v60, %v1006_v8  ;;  %v2012_v20 = vpop.f32.mrf.mxu3  ;;  %v1008_v39 = vpop.f32.mrf.mxu1  ;;  %v7484_v60 = vld [vmem:[%s6694_s6 + $0x1c8] sm:$0xff] }
 0x1dd   : > { %v1009_v23 = vadd.f32 %v1008_v39, %v7048_v46 }
 0x1de   : > { %v2158_v55 = vadd.f32 %v2012_v20, %v1621_v15  ;;  %v5778_v15 = vld [vmem:[%s6694_s6 + $0x1c9] sm:$0xff] }
 0x1df   : > { %v2549_v49 = vpop.f32.mrf.mxu0  ;;  %5514 = vmatmul.msk.f32.gmra.mxu1 %vm318_vm1, %v7400_v21 }
 0x1e0   : > { %v7459_v52 = vadd.f32 %v2546_v45, %v2158_v55  ;;  %5580 = vmatmul.msk.f32.gmra.mxu2 %vm318_vm1, %v1168_v22 }
 0x1e1   : > { %5712 = vmatmul.msk.f32.gmra.mxu3 %vm318_vm1, %v7456_v35 }
 0x1e2   : > { %5842 = vmatmul.msk.f32.gmra.mxu0 %vm318_vm1, %v5776_v34  ;;  %v1171_v34 = vld [vmem:[%s6694_s6 + $0x1aa] sm:$0xff] }
 0x1e3   : > { %v1478_v61 = vpop.f32.mrf.mxu2 }
 0x1e4   : > { %v1622_v54 = vadd.f32 %v1478_v61, %v1009_v23  ;;  %v2015_v31 = vpop.f32.mrf.mxu3  ;;  %v1011_v3 = vpop.f32.mrf.mxu1  ;;  %v7498_v61 = vld [vmem:[%s6694_s6 + $0x1d0] sm:$0xff] }
 0x1e5   : > { %v1012_v46 = vadd.f32 %v1011_v3, %v7063_v12 }
 0x1e6   : > { %v2159_v62 = vadd.f32 %v2015_v31, %v1622_v54  ;;  %v5779_v54 = vld [vmem:[%s6694_s6 + $0x1d1] sm:$0xff] }
 0x1e7   : > { %v2552_v21 = vpop.f32.mrf.mxu0  ;;  %5515 = vmatmul.msk.f32.gmra.mxu1 %vm318_vm1, %v7414_v13 }
 0x1e8   : > { %v7473_v11 = vadd.f32 %v2549_v49, %v2159_v62  ;;  %5581 = vmatmul.msk.f32.gmra.mxu2 %vm318_vm1, %v1169_v27 }
 0x1e9   : > { %5713 = vmatmul.msk.f32.gmra.mxu3 %vm318_vm1, %v7470_v53 }
 0x1ea   : > { %5843 = vmatmul.msk.f32.gmra.mxu0 %vm318_vm1, %v5777_v33  ;;  %v1172_v33 = vld [vmem:[%s6694_s6 + $0x1ba] sm:$0xff] }
 0x1eb   : > { %v1481_v42 = vpop.f32.mrf.mxu2 }
 0x1ec   : > { %v1623_v0 = vadd.f32 %v1481_v42, %v1012_v46  ;;  %v2018_v43 = vpop.f32.mrf.mxu3  ;;  %v1014_v45 = vpop.f32.mrf.mxu1  ;;  %v7512_v42 = vld [vmem:[%s6694_s6 + $0x1e0] sm:$0xff] }
 0x1ed   : > { %v1015_v12 = vadd.f32 %v1014_v45, %v7078_v47 }
 0x1ee   : > { %v2160_v8 = vadd.f32 %v2018_v43, %v1623_v0  ;;  %v5780_v0 = vld [vmem:[%s6694_s6 + $0x1e1] sm:$0xff] }
 0x1ef   : > { %v2555_v13 = vpop.f32.mrf.mxu0  ;;  %5516 = vmatmul.msk.f32.gmra.mxu1 %vm318_vm1, %v7428_v51 }
 0x1f0   : > { %v7487_v20 = vadd.f32 %v2552_v21, %v2160_v8  ;;  %5582 = vmatmul.msk.f32.gmra.mxu2 %vm318_vm1, %v1170_v57 }
 0x1f1   : > { %5714 = vmatmul.msk.f32.gmra.mxu3 %vm318_vm1, %v7484_v60 }
 0x1f2   : > { %5844 = vmatmul.msk.f32.gmra.mxu0 %vm318_vm1, %v5778_v15  ;;  %v1173_v15 = vld [vmem:[%s6694_s6 + $0x1c2] sm:$0xff] }
 0x1f3   : > { %v1484_v39 = vpop.f32.mrf.mxu2 }
 0x1f4   : > { %v1624_v22 = vadd.f32 %v1484_v39, %v1015_v12  ;;  %v2021_v55 = vpop.f32.mrf.mxu3  ;;  %v1017_v49 = vpop.f32.mrf.mxu1  ;;  %v7526_v39 = vld [vmem:[%s6694_s6 + $0x1e8] sm:$0xff] }
 0x1f5   : > { %v1018_v47 = vadd.f32 %v1017_v49, %v7093_v26 }
 0x1f6   : > { %v2161_v23 = vadd.f32 %v2021_v55, %v1624_v22  ;;  %v5781_v22 = vld [vmem:[%s6694_s6 + $0x1e9] sm:$0xff] }
 0x1f7   : > { %v2558_v51 = vpop.f32.mrf.mxu0  ;;  %5517 = vmatmul.msk.f32.gmra.mxu1 %vm318_vm1, %v7442_v29 }
 0x1f8   : > { %v7501_v31 = vadd.f32 %v2555_v13, %v2161_v23  ;;  %5583 = vmatmul.msk.f32.gmra.mxu2 %vm318_vm1, %v1171_v34 }
 0x1f9   : > { %5715 = vmatmul.msk.f32.gmra.mxu3 %vm318_vm1, %v7498_v61 }
 0x1fa   : > { %5845 = vmatmul.msk.f32.gmra.mxu0 %vm318_vm1, %v5779_v54  ;;  %v1174_v54 = vld [vmem:[%s6694_s6 + $0x1ca] sm:$0xff] }
 0x1fb   : > { %v1487_v3 = vpop.f32.mrf.mxu2 }
 0x1fc   : > { %v1625_v27 = vadd.f32 %v1487_v3, %v1018_v47  ;;  %v2024_v62 = vpop.f32.mrf.mxu3  ;;  %v1020_v21 = vpop.f32.mrf.mxu1  ;;  %v7540_v3 = vld [vmem:[%s6694_s6 + $0x1f0] sm:$0xff] }
 0x1fd   : > { %v1021_v26 = vadd.f32 %v1020_v21, %v7108_v50 }
 0x1fe   : > { %v2162_v46 = vadd.f32 %v2024_v62, %v1625_v27  ;;  %v5782_v27 = vld [vmem:[%s6694_s6 + $0x1f1] sm:$0xff] }
 0x1ff   : > { %v2561_v29 = vpop.f32.mrf.mxu0  ;;  %5518 = vmatmul.msk.f32.gmra.mxu1 %vm318_vm1, %v7456_v35 }
 0x200   : > { %v7515_v43 = vadd.f32 %v2558_v51, %v2162_v46  ;;  %5584 = vmatmul.msk.f32.gmra.mxu2 %vm318_vm1, %v1172_v33 }
 0x201   : > { %5716 = vmatmul.msk.f32.gmra.mxu3 %vm318_vm1, %v7512_v42 }
 0x202   : > { %5846 = vmatmul.msk.f32.gmra.mxu0 %vm318_vm1, %v5780_v0  ;;  %v1175_v0 = vld [vmem:[%s6694_s6 + $0x1d2] sm:$0xff] }
 0x203   : > { %v1490_v45 = vpop.f32.mrf.mxu2 }
 0x204   : > { %v1626_v57 = vadd.f32 %v1490_v45, %v1021_v26  ;;  %v2027_v8 = vpop.f32.mrf.mxu3  ;;  %v1023_v13 = vpop.f32.mrf.mxu1  ;;  %v7554_v45 = vld [vmem:[%s6694_s6 + $0x1f8] sm:$0xff] }
 0x205   : > { %v1024_v50 = vadd.f32 %v1023_v13, %v7123_v58 }
 0x206   : > { %v2163_v12 = vadd.f32 %v2027_v8, %v1626_v57  ;;  %v5783_v57 = vld [vmem:[%s6694_s6 + $0x1f9] sm:$0xff] }
 0x207   : > { %v2564_v35 = vpop.f32.mrf.mxu0  ;;  %5519 = vmatmul.msk.f32.gmra.mxu1 %vm318_vm1, %v7470_v53 }
 0x208   : > { %v7529_v55 = vadd.f32 %v2561_v29, %v2163_v12  ;;  %5585 = vmatmul.msk.f32.gmra.mxu2 %vm318_vm1, %v1173_v15 }
 0x209   : > { %5717 = vmatmul.msk.f32.gmra.mxu3 %vm318_vm1, %v7526_v39 }
 0x20a   : > { %5847 = vmatmul.msk.f32.gmra.mxu0 %vm318_vm1, %v5781_v22  ;;  %v1176_v22 = vld [vmem:[%s6694_s6 + $0x1e2] sm:$0xff] }
 0x20b   : > { %v1493_v49 = vpop.f32.mrf.mxu2 }
 0x20c   : > { %v1627_v34 = vadd.f32 %v1493_v49, %v1024_v50  ;;  %v2030_v23 = vpop.f32.mrf.mxu3  ;;  %v1026_v51 = vpop.f32.mrf.mxu1  ;;  %v7568_v49 = vld [vmem:[%s6694_s6 + $0x208] sm:$0xff] }
 0x20d   : > { %v1027_v58 = vadd.f32 %v1026_v51, %v7138_v2 }
 0x20e   : > { %v2164_v47 = vadd.f32 %v2030_v23, %v1627_v34  ;;  %v5784_v34 = vld [vmem:[%s6694_s6 + $0x209] sm:$0xff] }
 0x20f   : > { %v2567_v53 = vpop.f32.mrf.mxu0  ;;  %5520 = vmatmul.msk.f32.gmra.mxu1 %vm318_vm1, %v7484_v60 }
 0x210   : > { %v7543_v62 = vadd.f32 %v2564_v35, %v2164_v47  ;;  %5586 = vmatmul.msk.f32.gmra.mxu2 %vm318_vm1, %v1174_v54 }
 0x211   : > { %5718 = vmatmul.msk.f32.gmra.mxu3 %vm318_vm1, %v7540_v3 }
 0x212   : > { %5848 = vmatmul.msk.f32.gmra.mxu0 %vm318_vm1, %v5782_v27  ;;  %v1177_v27 = vld [vmem:[%s6694_s6 + $0x1ea] sm:$0xff] }
 0x213   : > { %v1496_v21 = vpop.f32.mrf.mxu2 }
 0x214   : > { %v1628_v33 = vadd.f32 %v1496_v21, %v1027_v58  ;;  %v2033_v46 = vpop.f32.mrf.mxu3  ;;  %v1029_v29 = vpop.f32.mrf.mxu1  ;;  %v7582_v21 = vld [vmem:[%s6694_s6 + $0x210] sm:$0xff] }
 0x215   : > { %v1030_v2 = vadd.f32 %v1029_v29, %v7153_v14 }
 0x216   : > { %v2165_v26 = vadd.f32 %v2033_v46, %v1628_v33  ;;  %v5785_v33 = vld [vmem:[%s6694_s6 + $0x211] sm:$0xff] }
 0x217   : > { %v2570_v60 = vpop.f32.mrf.mxu0  ;;  %5521 = vmatmul.msk.f32.gmra.mxu1 %vm318_vm1, %v7498_v61 }
 0x218   : > { %v7557_v8 = vadd.f32 %v2567_v53, %v2165_v26  ;;  %5587 = vmatmul.msk.f32.gmra.mxu2 %vm318_vm1, %v1175_v0 }
 0x219   : > { %5719 = vmatmul.msk.f32.gmra.mxu3 %vm318_vm1, %v7554_v45 }
 0x21a   : > { %5849 = vmatmul.msk.f32.gmra.mxu0 %vm318_vm1, %v5783_v57  ;;  %v1178_v57 = vld [vmem:[%s6694_s6 + $0x1f2] sm:$0xff] }
 0x21b   : > { %v1499_v13 = vpop.f32.mrf.mxu2 }
 0x21c   : > { %v1629_v15 = vadd.f32 %v1499_v13, %v1030_v2  ;;  %v2036_v12 = vpop.f32.mrf.mxu3  ;;  %v1032_v35 = vpop.f32.mrf.mxu1  ;;  %v7596_v13 = vld [vmem:[%s6694_s6 + $0x218] sm:$0xff] }
 0x21d   : > { %v1033_v14 = vadd.f32 %v1032_v35, %v6936_v18 }
 0x21e   : > { %v2166_v50 = vadd.f32 %v2036_v12, %v1629_v15  ;;  %v5786_v15 = vld [vmem:[%s6694_s6 + $0x219] sm:$0xff] }
 0x21f   : > { %v2573_v61 = vpop.f32.mrf.mxu0  ;;  %5522 = vmatmul.msk.f32.gmra.mxu1 %vm318_vm1, %v7512_v42 }
 0x220   : > { %v7571_v23 = vadd.f32 %v2570_v60, %v2166_v50  ;;  %5588 = vmatmul.msk.f32.gmra.mxu2 %vm318_vm1, %v1176_v22 }
 0x221   : > { %5720 = vmatmul.msk.f32.gmra.mxu3 %vm318_vm1, %v7568_v49 }
 0x222   : > { %5850 = vmatmul.msk.f32.gmra.mxu0 %vm318_vm1, %v5784_v34  ;;  %v1179_v34 = vld [vmem:[%s6694_s6 + $0x1fa] sm:$0xff] }
 0x223   : > { %v1502_v51 = vpop.f32.mrf.mxu2 }
 0x224   : > { %v1630_v54 = vadd.f32 %v1502_v51, %v1033_v14  ;;  %v2039_v47 = vpop.f32.mrf.mxu3  ;;  %v1035_v53 = vpop.f32.mrf.mxu1  ;;  %v7610_v51 = vld [vmem:[%s6694_s6 + $0x220] sm:$0xff] }
 0x225   : > { %v1036_v18 = vadd.f32 %v1035_v53, %v6952_v24 }
 0x226   : > { %v2167_v58 = vadd.f32 %v2039_v47, %v1630_v54  ;;  %v5787_v54 = vld [vmem:[%s6694_s6 + $0x221] sm:$0xff] }
 0x227   : > { %v2576_v42 = vpop.f32.mrf.mxu0  ;;  %5523 = vmatmul.msk.f32.gmra.mxu1 %vm318_vm1, %v7526_v39 }
 0x228   : > { %v7585_v46 = vadd.f32 %v2573_v61, %v2167_v58  ;;  %5589 = vmatmul.msk.f32.gmra.mxu2 %vm318_vm1, %v1177_v27 }
 0x229   : > { %5721 = vmatmul.msk.f32.gmra.mxu3 %vm318_vm1, %v7582_v21 }
 0x22a   : > { %5851 = vmatmul.msk.f32.gmra.mxu0 %vm318_vm1, %v5785_v33 }
 0x22b   : > { %v1505_v29 = vpop.f32.mrf.mxu2 }
 0x22c   : > { %v1631_v0 = vadd.f32 %v1505_v29, %v1036_v18  ;;  %v2042_v26 = vpop.f32.mrf.mxu3  ;;  %v1038_v60 = vpop.f32.mrf.mxu1  ;;  %v1180_v18 = vld [vmem:[%s6694_s6 + $0x20a] sm:$0xff] }
 0x22d   : > { %v1039_v24 = vadd.f32 %v1038_v60, %v6968_v28  ;;  %v8837_v28 = vld [vmem:[#allocation10_spill] sm:$0xff] }
 0x22e   : > { %v2168_v2 = vadd.f32 %v2042_v26, %v1631_v0  ;;  %v7624_v0 = vld [vmem:[%s6694_s6 + $0x230] sm:$0xff] }
 0x22f   : > { %v2579_v39 = vpop.f32.mrf.mxu0  ;;  %5524 = vmatmul.msk.f32.gmra.mxu1 %vm318_vm1, %v7540_v3  ;;  %v5788_v26 = vld [vmem:[%s6694_s6 + $0x231] sm:$0xff] }
 0x230   : > { %v7599_v12 = vadd.f32 %v2576_v42, %v2168_v2  ;;  %5590 = vmatmul.msk.f32.gmra.mxu2 %vm318_vm1, %v1178_v57  ;;  %v8838_v57 = vld [vmem:[#allocation12_spill] sm:$0xff] }
 0x231   : > { %5722 = vmatmul.msk.f32.gmra.mxu3 %vm318_vm1, %v7596_v13 }
 0x232   : > { %5852 = vmatmul.msk.f32.gmra.mxu0 %vm318_vm1, %v5786_v15 }
 0x233   : > { %v1508_v35 = vpop.f32.mrf.mxu2 }
 0x234   : > { %v1632_v22 = vadd.f32 %v1508_v35, %v1039_v24  ;;  %v2045_v50 = vpop.f32.mrf.mxu3  ;;  %v1041_v61 = vpop.f32.mrf.mxu1 }
 0x235   : > { %v1042_v53 = vadd.f32 %v1041_v61, %v8837_v28  ;;  %v7638_v61 = vld [vmem:[%s6694_s6 + $0x238] sm:$0xff] }
 0x236   : > { %v2169_v14 = vadd.f32 %v2045_v50, %v1632_v22  ;;  %v1181_v22 = vld [vmem:[%s6694_s6 + $0x212] sm:$0xff] }
 0x237   : > { %v2582_v3 = vpop.f32.mrf.mxu0  ;;  %5525 = vmatmul.msk.f32.gmra.mxu1 %vm318_vm1, %v7554_v45 }
 0x238   : > { %v7613_v47 = vadd.f32 %v2579_v39, %v2169_v14  ;;  %5591 = vmatmul.msk.f32.gmra.mxu2 %vm318_vm1, %v1179_v34  ;;  %v5789_v34 = vld [vmem:[%s6694_s6 + $0x239] sm:$0xff] }
 0x239   : > { %5723 = vmatmul.msk.f32.gmra.mxu3 %vm318_vm1, %v7610_v51 }
 0x23a   : > { %5853 = vmatmul.msk.f32.gmra.mxu0 %vm318_vm1, %v5787_v54 }
 0x23b   : > { %v1511_v27 = vpop.f32.mrf.mxu2 }
 0x23c   : > { %v1633_v58 = vadd.f32 %v1511_v27, %v1042_v53  ;;  %v2048_v42 = vpop.f32.mrf.mxu3  ;;  %v1044_v33 = vpop.f32.mrf.mxu1 }
 0x23d   : > { %v1045_v2 = vadd.f32 %v1044_v33, %v8838_v57 }
 0x23e   : > { %v2170_v29 = vadd.f32 %v2048_v42, %v1633_v58  ;;  %v1182_v42 = vld [vmem:[%s6694_s6 + $0x21a] sm:$0xff] }
 0x23f   : > { %v2585_v45 = vpop.f32.mrf.mxu0  ;;  %5526 = vmatmul.msk.f32.gmra.mxu1 %vm318_vm1, %v7568_v49 }
 0x240   : > { %v7627_v60 = vadd.f32 %v2582_v3, %v2170_v29  ;;  %5592 = vmatmul.msk.f32.gmra.mxu2 %vm318_vm1, %v1180_v18  ;;  %v8839_v3 = vld [vmem:[#allocation14_spill] sm:$0xff]  ;;  %v7652_v18 = vld [vmem:[%s6694_s6 + $0x240] sm:$0xff] }
 0x241   : > { %5724 = vmatmul.msk.f32.gmra.mxu3 %vm318_vm1, %v7624_v0  ;;  %v5790_v29 = vld [vmem:[%s6694_s6 + $0x241] sm:$0xff] }
 0x242   : > { %5854 = vmatmul.msk.f32.gmra.mxu0 %vm318_vm1, %v5788_v26  ;;  %v8840_v26 = vld [vmem:[#allocation16_spill] sm:$0xff] }
 0x243   : > { %v1514_v39 = vpop.f32.mrf.mxu2 }
 0x244   : > { %v1634_v15 = vadd.f32 %v1514_v39, %v1045_v2  ;;  %v2051_v24 = vpop.f32.mrf.mxu3  ;;  %v1047_v35 = vpop.f32.mrf.mxu1 }
 0x245   : > { %v1048_v54 = vadd.f32 %v1047_v35, %v8839_v3  ;;  %v1183_v35 = vld [vmem:[%s6694_s6 + $0x222] sm:$0xff]  ;;  %v8841_v3 = vld [vmem:[#allocation18_spill] sm:$0xff] }
 0x246   : > { %v2171_v50 = vadd.f32 %v2051_v24, %v1634_v15 }
 0x247   : > { %v2588_v49 = vpop.f32.mrf.mxu0  ;;  %5527 = vmatmul.msk.f32.gmra.mxu1 %vm318_vm1, %v7582_v21 }
 0x248   : > { %v7641_v14 = vadd.f32 %v2585_v45, %v2171_v50  ;;  %5593 = vmatmul.msk.f32.gmra.mxu2 %vm318_vm1, %v1181_v22  ;;  %v7666_v50 = vld [vmem:[%s6694_s6 + $0x248] sm:$0xff] }
 0x249   : > { %5725 = vmatmul.msk.f32.gmra.mxu3 %vm318_vm1, %v7638_v61 }
 0x24a   : > { %5855 = vmatmul.msk.f32.gmra.mxu0 %vm318_vm1, %v5789_v34 }
 0x24b   : > { %v1517_v28 = vpop.f32.mrf.mxu2 }
 0x24c   : > { %v1635_v53 = vadd.f32 %v1517_v28, %v1048_v54  ;;  %v2054_v27 = vpop.f32.mrf.mxu3  ;;  %v1050_v58 = vpop.f32.mrf.mxu1 }
 0x24d   : > { %v1051_v57 = vadd.f32 %v1050_v58, %v8840_v26 }
 0x24e   : > { %v2172_v33 = vadd.f32 %v2054_v27, %v1635_v53 }
 0x24f   : > { %v2591_v21 = vpop.f32.mrf.mxu0  ;;  %5528 = vmatmul.msk.f32.gmra.mxu1 %vm318_vm1, %v7596_v13 }
 0x250   : > { %v7655_v45 = vadd.f32 %v2588_v49, %v2172_v33  ;;  %5594 = vmatmul.msk.f32.gmra.mxu2 %vm318_vm1, %v1182_v42  ;;  %v5791_v49 = vld [vmem:[%s6694_s6 + $0x249] sm:$0xff]  ;;  %v1184_v42 = vld [vmem:[%s6694_s6 + $0x232] sm:$0xff] }
 0x251   : > { %5726 = vmatmul.msk.f32.gmra.mxu3 %vm318_vm1, %v7652_v18 }
 0x252   : > { %5856 = vmatmul.msk.f32.gmra.mxu0 %vm318_vm1, %v5790_v29  ;;  %v5792_v29 = vld [vmem:[%s6694_s6 + $0x259] sm:$0xff] }
 0x253   : > { %v1520_v2 = vpop.f32.mrf.mxu2 }
 0x254   : > { %v1636_v39 = vadd.f32 %v1520_v2, %v1051_v57  ;;  %v2057_v15 = vpop.f32.mrf.mxu3  ;;  %v1053_v24 = vpop.f32.mrf.mxu1  ;;  %v8842_v57 = vld [vmem:[#allocation20_spill] sm:$0xff] }
 0x255   : > { %v1054_v54 = vadd.f32 %v1053_v24, %v8841_v3  ;;  %v5793_v3 = vld [vmem:[%s6694_s6 + $0x261] sm:$0xff] }
 0x256   : > { %v2173_v22 = vadd.f32 %v2057_v15, %v1636_v39 }
 0x257   : > { %v2594_v13 = vpop.f32.mrf.mxu0  ;;  %5529 = vmatmul.msk.f32.gmra.mxu1 %vm318_vm1, %v7610_v51 }
 0x258   : > { %v7669_v34 = vadd.f32 %v2591_v21, %v2173_v22  ;;  %5595 = vmatmul.msk.f32.gmra.mxu2 %vm318_vm1, %v1183_v35  ;;  %v7680_v21 = vld [vmem:[%s6694_s6 + $0x258] sm:$0xff] }
 0x259   : > { %5727 = vmatmul.msk.f32.gmra.mxu3 %vm318_vm1, %v7666_v50  ;;  %v1185_v22 = vld [vmem:[%s6694_s6 + $0x23a] sm:$0xff] }
 0x25a   : > { %5857 = vmatmul.msk.f32.gmra.mxu0 %vm318_vm1, %v5791_v49  ;;  %v7694_v49 = vld [vmem:[%s6694_s6 + $0x260] sm:$0xff] }
 0x25b   : > { %v1523_v28 = vpop.f32.mrf.mxu2 }
 0x25c   : > { %v1637_v53 = vadd.f32 %v1523_v28, %v1054_v54  ;;  %v2060_v27 = vpop.f32.mrf.mxu3  ;;  %v1056_v58 = vpop.f32.mrf.mxu1  ;;  %v8843_v28 = vld [vmem:[#allocation22_spill] sm:$0xff] }
 0x25d   : > { %v1057_v2 = vadd.f32 %v1056_v58, %v8842_v57  ;;  %v7708_v57 = vld [vmem:[%s6694_s6 + $0x268] sm:$0xff] }
 0x25e   : > { %v2174_v33 = vadd.f32 %v2060_v27, %v1637_v53 }
 0x25f   : > { %v2597_v51 = vpop.f32.mrf.mxu0  ;;  %5530 = vmatmul.msk.f32.gmra.mxu1 %vm318_vm1, %v7624_v0 }
 0x260   : > { %v7683_v26 = vadd.f32 %v2594_v13, %v2174_v33  ;;  %5596 = vmatmul.msk.f32.gmra.mxu2 %vm318_vm1, %v1184_v42 }
 0x261   : > { %5728 = vmatmul.msk.f32.gmra.mxu3 %vm318_vm1, %v7680_v21 }
 0x262   : > { %5858 = vmatmul.msk.f32.gmra.mxu0 %vm318_vm1, %v5792_v29  ;;  %v1186_v29 = vld [vmem:[%s6694_s6 + $0x242] sm:$0xff] }
 0x263   : > { %v1526_v39 = vpop.f32.mrf.mxu2 }
 0x264   : > { %v1638_v15 = vadd.f32 %v1526_v39, %v1057_v2  ;;  %v2063_v24 = vpop.f32.mrf.mxu3  ;;  %v1059_v35 = vpop.f32.mrf.mxu1  ;;  %v5794_v2 = vld [vmem:[%s6694_s6 + $0x269] sm:$0xff] }
 0x265   : > { %v1060_v53 = vadd.f32 %v1059_v35, %v8843_v28  ;;  %v1187_v28 = vld [vmem:[%s6694_s6 + $0x24a] sm:$0xff] }
 0x266   : > { %v2175_v13 = vadd.f32 %v2063_v24, %v1638_v15  ;;  %v8844_v15 = vld [vmem:[#allocation24_spill] sm:$0xff] }
 0x267   : > { %v2600_v0 = vpop.f32.mrf.mxu0  ;;  %5531 = vmatmul.msk.f32.gmra.mxu1 %vm318_vm1, %v7638_v61 }
 0x268   : > { %v7697_v54 = vadd.f32 %v2597_v51, %v2175_v13  ;;  %5597 = vmatmul.msk.f32.gmra.mxu2 %vm318_vm1, %v1185_v22 }
 0x269   : > { %5729 = vmatmul.msk.f32.gmra.mxu3 %vm318_vm1, %v7694_v49 }
 0x26a   : > { %5859 = vmatmul.msk.f32.gmra.mxu0 %vm318_vm1, %v5793_v3 }
 0x26b   : > { %v1529_v27 = vpop.f32.mrf.mxu2 }
 0x26c   : > { %v1639_v58 = vadd.f32 %v1529_v27, %v1060_v53  ;;  %v2066_v42 = vpop.f32.mrf.mxu3  ;;  %v1062_v33 = vpop.f32.mrf.mxu1  ;;  %v7722_v53 = vld [vmem:[%s6694_s6 + $0x270] sm:$0xff] }
 0x26d   : > { %v1063_v24 = vadd.f32 %v1062_v33, %v8844_v15  ;;  %v5795_v27 = vld [vmem:[%s6694_s6 + $0x271] sm:$0xff] }
 0x26e   : > { %v2176_v51 = vadd.f32 %v2066_v42, %v1639_v58  ;;  %v8845_v42 = vld [vmem:[#allocation26_spill] sm:$0xff] }
 0x26f   : > { %v2603_v61 = vpop.f32.mrf.mxu0  ;;  %5532 = vmatmul.msk.f32.gmra.mxu1 %vm318_vm1, %v7652_v18 }
 0x270   : > { %v7711_v39 = vadd.f32 %v2600_v0, %v2176_v51  ;;  %5598 = vmatmul.msk.f32.gmra.mxu2 %vm318_vm1, %v1186_v29 }
 0x271   : > { %5730 = vmatmul.msk.f32.gmra.mxu3 %vm318_vm1, %v7708_v57 }
 0x272   : > { %5860 = vmatmul.msk.f32.gmra.mxu0 %vm318_vm1, %v5794_v2 }
 0x273   : > { %v1532_v35 = vpop.f32.mrf.mxu2 }
 0x274   : > { %v1640_v22 = vadd.f32 %v1532_v35, %v1063_v24  ;;  %v2069_v13 = vpop.f32.mrf.mxu3  ;;  %v1065_v3 = vpop.f32.mrf.mxu1  ;;  %v1188_v24 = vld [vmem:[%s6694_s6 + $0x25a] sm:$0xff] }
 0x275   : > { %v1066_v33 = vadd.f32 %v1065_v3, %v8845_v42  ;;  %v5666_v35 = vld [vmem:[%s6694_s6 + $0x280] sm:$0xff]  ;;  %v8846_v3 = vld [vmem:[#allocation28_spill] sm:$0xff] }
 0x276   : > { %v2177_v0 = vadd.f32 %v2069_v13, %v1640_v22 }
 0x277   : > { %v2606_v18 = vpop.f32.mrf.mxu0  ;;  %5533 = vmatmul.msk.f32.gmra.mxu1 %vm318_vm1, %v7666_v50  ;;  %v5796_v50 = vld [vmem:[%s6694_s6 + $0x281] sm:$0xff] }
 0x278   : > { %v7725_v58 = vadd.f32 %v2603_v61, %v2177_v0  ;;  %5599 = vmatmul.msk.f32.gmra.mxu2 %vm318_vm1, %v1187_v28 }
 0x279   : > { %5731 = vmatmul.msk.f32.gmra.mxu3 %vm318_vm1, %v7722_v53 }
 0x27a   : > { %5861 = vmatmul.msk.f32.gmra.mxu0 %vm318_vm1, %v5795_v27 }
 0x27b   : > { %v1535_v29 = vpop.f32.mrf.mxu2 }
 0x27c   : > { %v1641_v51 = vadd.f32 %v1535_v29, %v1066_v33  ;;  %v2072_v2 = vpop.f32.mrf.mxu3  ;;  %v1068_v15 = vpop.f32.mrf.mxu1  ;;  %v1189_v29 = vld [vmem:[%s6694_s6 + $0x262] sm:$0xff] }
 0x27d   : > { %v1069_v28 = vadd.f32 %v1068_v15, %v8846_v3  ;;  %v8848_v15 = vld [vmem:[#allocation30_spill] sm:$0xff] }
 0x27e   : > { %v2178_v61 = vadd.f32 %v2072_v2, %v1641_v51 }
 0x27f   : > { %v2609_v22 = vpop.f32.mrf.mxu0  ;;  %5534 = vmatmul.msk.f32.gmra.mxu1 %vm318_vm1, %v7680_v21  ;;  %v5797_v21 = vld [vmem:[%s6694_s6 + $0x289] sm:$0xff] }
 0x280   : > { %v7737_v13 = vadd.f32 %v2606_v18, %v2178_v61  ;;  %5600 = vmatmul.msk.f32.gmra.mxu2 %vm318_vm1, %v1188_v24  ;;  %v5667_v18 = vld [vmem:[%s6694_s6 + $0x288] sm:$0xff] }
 0x281   : > { %5732 = vmatmul.msk.f32.gmra.mxu3 %vm318_vm1, %v5666_v35 }
 0x282   : > { %5862 = vmatmul.msk.f32.gmra.mxu0 %vm318_vm1, %v5796_v50 }
 0x283   : > { %v1538_v0 = vpop.f32.mrf.mxu2 }
 0x284   : > { %v1642_v27 = vadd.f32 %v1538_v0, %v1069_v28  ;;  %v2075_v42 = vpop.f32.mrf.mxu3  ;;  %v1071_v33 = vpop.f32.mrf.mxu1  ;;  %v1190_v0 = vld [vmem:[%s6694_s6 + $0x26a] sm:$0xff] }
 0x285   : > { %v1072_v24 = vadd.f32 %v1071_v33, %v8848_v15  ;;  %v8850_v33 = vld [vmem:[#allocation32_spill] sm:$0xff] }
 0x286   : > { %v2179_v51 = vadd.f32 %v2075_v42, %v1642_v27 }
 0x287   : > { %v2612_v2 = vpop.f32.mrf.mxu0  ;;  %5535 = vmatmul.msk.f32.gmra.mxu1 %vm318_vm1, %v7694_v49  ;;  %v5798_v49 = vld [vmem:[%s6694_s6 + $0x291] sm:$0xff] }
 0x288   : > { %v7748_v61 = vadd.f32 %v2609_v22, %v2179_v51  ;;  %5601 = vmatmul.msk.f32.gmra.mxu2 %vm318_vm1, %v1189_v29  ;;  %v5668_v22 = vld [vmem:[%s6694_s6 + $0x290] sm:$0xff] }
 0x289   : > { %5733 = vmatmul.msk.f32.gmra.mxu3 %vm318_vm1, %v5667_v18 }
 0x28a   : > { %8847 = vst [vmem:[#allocation10_spill] sm:$0xff] %v7748_v61  ;;  %5863 = vmatmul.msk.f32.gmra.mxu0 %vm318_vm1, %v5797_v21 }
 0x28b   : > { %v1541_v35 = vpop.f32.mrf.mxu2 }
 0x28c   : > { %v1643_v50 = vadd.f32 %v1541_v35, %v1072_v24  ;;  %v2078_v3 = vpop.f32.mrf.mxu3  ;;  %v1074_v28 = vpop.f32.mrf.mxu1  ;;  %v1191_v35 = vld [vmem:[%s6694_s6 + $0x272] sm:$0xff] }
 0x28d   : > { %v1075_v29 = vadd.f32 %v1074_v28, %v8850_v33  ;;  %v8852_v28 = vld [vmem:[#allocation34_spill] sm:$0xff] }
 0x28e   : > { %v2180_v27 = vadd.f32 %v2078_v3, %v1643_v50  ;;  %v5669_v50 = vld [vmem:[%s6694_s6 + $0x298] sm:$0xff] }
 0x28f   : > { %v2615_v42 = vpop.f32.mrf.mxu0  ;;  %5536 = vmatmul.msk.f32.gmra.mxu1 %vm318_vm1, %v7708_v57  ;;  %v5799_v57 = vld [vmem:[%s6694_s6 + $0x299] sm:$0xff] }
 0x290   : > { %v7759_v51 = vadd.f32 %v2612_v2, %v2180_v27  ;;  %5602 = vmatmul.msk.f32.gmra.mxu2 %vm318_vm1, %v1190_v0 }
 0x291   : > { %5734 = vmatmul.msk.f32.gmra.mxu3 %vm318_vm1, %v5668_v22 }
 0x292   : > { %8849 = vst [vmem:[#allocation12_spill] sm:$0xff] %v7759_v51  ;;  %5864 = vmatmul.msk.f32.gmra.mxu0 %vm318_vm1, %v5798_v49  ;;  %v6001_v51 = vld [vmem:[%s6694_s6 + $0x68] sm:$0xff] }
 0x293   : > { %v1544_v18 = vpop.f32.mrf.mxu2 }
 0x294   : > { %v1644_v21 = vadd.f32 %v1544_v18, %v1075_v29  ;;  %v2081_v15 = vpop.f32.mrf.mxu3  ;;  %v1077_v24 = vpop.f32.mrf.mxu1  ;;  %v5866_v18 = vld [vmem:[%s6694_s6 + $0x2a] sm:$0xff] }
 0x295   : > { %v1078_v27 = vadd.f32 %v1077_v24, %v8852_v28  ;;  %v8854_v24 = vld [vmem:[#allocation7_spill] sm:$0xff] }
 0x296   : > { %v2181_v2 = vadd.f32 %v2081_v15, %v1644_v21  ;;  %v5998_v21 = vld [vmem:[%s6694_s6 + $0x50] sm:$0xff] }
 0x297   : > { %v2618_v3 = vpop.f32.mrf.mxu0  ;;  %5537 = vmatmul.msk.f32.gmra.mxu1 %vm318_vm1, %v7722_v53  ;;  %v6128_v15 = vld [vmem:[%s6694_s6 + $0x51] sm:$0xff] }
 0x298   : > { %v7770_v0 = vadd.f32 %v2615_v42, %v2181_v2  ;;  %5603 = vmatmul.msk.f32.gmra.mxu2 %vm318_vm1, %v1191_v35  ;;  %v7782_v2 = vld [vmem:[%s6694_s6 + $0x52] sm:$0xff] }
 0x299   : > { %5735 = vmatmul.msk.f32.gmra.mxu3 %vm318_vm1, %v5669_v50 }
 0x29a   : > { %8851 = vst [vmem:[#allocation14_spill] sm:$0xff] %v7770_v0  ;;  %5865 = vmatmul.msk.f32.gmra.mxu0 %vm318_vm1, %v5799_v57  ;;  %v6000_v0 = vld [vmem:[%s6694_s6 + $0x60] sm:$0xff] }
 0x29b   : > { %v1547_v22 = vpop.f32.mrf.mxu2 }
 0x29c   : > { %v1645_v49 = vadd.f32 %v1547_v22, %v1078_v27  ;;  %v2084_v33 = vpop.f32.mrf.mxu3  ;;  %v1080_v29 = vpop.f32.mrf.mxu1 }
 0x29d   : > { %v1081_v50 = vadd.f32 %v1080_v29, %v8854_v24  ;;  %v8856_v29 = vld [vmem:[#allocation8_spill] sm:$0xff] }
 0x29e   : > { %v2182_v42 = vadd.f32 %v2084_v33, %v1645_v49  ;;  %v5867_v49 = vld [vmem:[%s6694_s6 + $0x32] sm:$0xff] }
 0x29f   : > { %v2621_v53 = vpop.f32.mrf.mxu0  ;;  %5932 = vmatmul.msk.f32.vlgmr.msra.gmra.mxu1 %vm318_vm1, %v5866_v18  ;;  %v5999_v33 = vld [vmem:[%s6694_s6 + $0x58] sm:$0xff] }
 0x2a0   : > { %v7784_v35 = vadd.f32 %v2618_v3, %v2182_v42  ;;  %6064 = vmatmul.msk.f32.vlgmr.msra.gmra.mxu2 %vm318_vm1, %v5998_v21  ;;  %v6129_v42 = vld [vmem:[%s6694_s6 + $0x59] sm:$0xff] }
 0x2a1   : > { %6194 = vmatmul.msk.f32.vlgmr.msra.gmra.mxu3 %vm318_vm1, %v6128_v15  ;;  %v7796_v21 = vld [vmem:[%s6694_s6 + $0x5a] sm:$0xff] }
 0x2a2   : > { %8853 = vst [vmem:[#allocation16_spill] sm:$0xff] %v7784_v35  ;;  %6324 = vmatmul.msk.f32.vlgmr.msra.gmra.mxu0 %vm318_vm1, %v7782_v2  ;;  %v5868_v35 = vld [vmem:[%s6694_s6 + $0x3a] sm:$0xff] }
 0x2a3   : > { %v1550_v57 = vpop.f32.mrf.mxu2 }
 0x2a4   : > { %v1646_v28 = vadd.f32 %v1550_v57, %v1081_v50  ;;  %v2087_v27 = vpop.f32.mrf.mxu3  ;;  %v1083_v22 = vpop.f32.mrf.mxu1 }
 0x2a5   : > { %v1084_v24 = vadd.f32 %v1083_v22, %v8856_v29  ;;  %v8858_v22 = vld [vmem:[#allocation9_spill] sm:$0xff] }
 0x2a6   : > { %v2183_v3 = vadd.f32 %v2087_v27, %v1646_v28 }
 0x2a7   : > { %v2624_v18 = vpop.f32.mrf.mxu0  ;;  %5933 = vmatmul.msk.f32.gmra.mxu1 %vm318_vm1, %v5867_v49 }
 0x2a8   : > { %v7798_v15 = vadd.f32 %v2621_v53, %v2183_v3  ;;  %6065 = vmatmul.msk.f32.gmra.mxu2 %vm318_vm1, %v5999_v33  ;;  %v6130_v3 = vld [vmem:[%s6694_s6 + $0x61] sm:$0xff] }
 0x2a9   : > { %6195 = vmatmul.msk.f32.gmra.mxu3 %vm318_vm1, %v6129_v42  ;;  %v7810_v33 = vld [vmem:[%s6694_s6 + $0x62] sm:$0xff] }
 0x2aa   : > { %8855 = vst [vmem:[#allocation18_spill] sm:$0xff] %v7798_v15  ;;  %6325 = vmatmul.msk.f32.gmra.mxu0 %vm318_vm1, %v7796_v21  ;;  %v5869_v15 = vld [vmem:[%s6694_s6 + $0x42] sm:$0xff] }
 0x2ab   : > { %v1553_v50 = vpop.f32.mrf.mxu2 }
 0x2ac   : > { %v1647_v57 = vadd.f32 %v1553_v50, %v1084_v24  ;;  %v2090_v28 = vpop.f32.mrf.mxu3  ;;  %v1086_v27 = vpop.f32.mrf.mxu1 }
 0x2ad   : > { %v1087_v29 = vadd.f32 %v1086_v27, %v8858_v22  ;;  %v8860_v27 = vld [vmem:[#allocation11_spill] sm:$0xff] }
 0x2ae   : > { %v2184_v53 = vadd.f32 %v2090_v28, %v1647_v57 }
 0x2af   : > { %v2627_v49 = vpop.f32.mrf.mxu0  ;;  %5934 = vmatmul.msk.f32.gmra.mxu1 %vm318_vm1, %v5868_v35 }
 0x2b0   : > { %v7812_v42 = vadd.f32 %v2624_v18, %v2184_v53  ;;  %6066 = vmatmul.msk.f32.gmra.mxu2 %vm318_vm1, %v6000_v0  ;;  %v6131_v53 = vld [vmem:[%s6694_s6 + $0x69] sm:$0xff] }
 0x2b1   : > { %6196 = vmatmul.msk.f32.gmra.mxu3 %vm318_vm1, %v6130_v3  ;;  %v6261_v0 = vld [vmem:[%s6694_s6 + $0x6a] sm:$0xff] }
 0x2b2   : > { %8857 = vst [vmem:[#allocation20_spill] sm:$0xff] %v7812_v42  ;;  %6326 = vmatmul.msk.f32.gmra.mxu0 %vm318_vm1, %v7810_v33 }
 0x2b3   : > { %v1556_v24 = vpop.f32.mrf.mxu2 }
 0x2b4   : > { %v1648_v50 = vadd.f32 %v1556_v24, %v1087_v29  ;;  %v2093_v57 = vpop.f32.mrf.mxu3  ;;  %v1089_v28 = vpop.f32.mrf.mxu1 }
 0x2b5   : > { %v1090_v3 = vadd.f32 %v1089_v28, %v8860_v27 }
 0x2b6   : > { %v2185_v18 = vadd.f32 %v2093_v57, %v1648_v50  ;;  %v6002_v57 = vld [vmem:[%s6694_s6 + $0x78] sm:$0xff] }
 0x2b7   : > { %v2630_v35 = vpop.f32.mrf.mxu0  ;;  %5935 = vmatmul.msk.f32.gmra.mxu1 %vm318_vm1, %v5869_v15  ;;  %v6262_v15 = vld [vmem:[%s6694_s6 + $0x7a] sm:$0xff] }
 0x2b8   : > { %v7824_v42 = vadd.f32 %v2627_v49, %v2185_v18  ;;  %6067 = vmatmul.msk.f32.gmra.mxu2 %vm318_vm1, %v6001_v51  ;;  %v6132_v49 = vld [vmem:[%s6694_s6 + $0x79] sm:$0xff]  ;;  %v8862_v51 = vld [vmem:[#allocation13_spill] sm:$0xff] }
 0x2b9   : > { %6197 = vmatmul.msk.f32.gmra.mxu3 %vm318_vm1, %v6131_v53 }
 0x2ba   : > { %8859 = vst [vmem:[#allocation22_spill] sm:$0xff] %v7824_v42  ;;  %6327 = vmatmul.msk.f32.gmra.mxu0 %vm318_vm1, %v6261_v0 }
 0x2bb   : > { %v1559_v22 = vpop.f32.mrf.mxu2 }
 0x2bc   : > { %v1649_v29 = vadd.f32 %v1559_v22, %v1090_v3  ;;  %v2096_v24 = vpop.f32.mrf.mxu3  ;;  %v1092_v50 = vpop.f32.mrf.mxu1 }
 0x2bd   : > { %v1093_v28 = vadd.f32 %v1092_v50, %v8862_v51  ;;  %v8864_v50 = vld [vmem:[#allocation15_spill] sm:$0xff] }
 0x2be   : > { %v2186_v61 = vadd.f32 %v2096_v24, %v1649_v29  ;;  %v6003_v29 = vld [vmem:[%s6694_s6 + $0x80] sm:$0xff] }
 0x2bf   : > { %v2633_v18 = vpop.f32.mrf.mxu0  ;;  %5936 = vmatmul.msk.f32.gmra.mxu1 %vm318_vm1, %v7782_v2  ;;  %v6263_v2 = vld [vmem:[%s6694_s6 + $0x82] sm:$0xff] }
 0x2c0   : > { %v7834_v42 = vadd.f32 %v2630_v35, %v2186_v61  ;;  %6068 = vmatmul.msk.f32.gmra.mxu2 %vm318_vm1, %v6002_v57  ;;  %v6133_v61 = vld [vmem:[%s6694_s6 + $0x81] sm:$0xff] }
 0x2c1   : > { %6198 = vmatmul.msk.f32.gmra.mxu3 %vm318_vm1, %v6132_v49 }
 0x2c2   : > { %8861 = vst [vmem:[#allocation24_spill] sm:$0xff] %v7834_v42  ;;  %6328 = vmatmul.msk.f32.gmra.mxu0 %vm318_vm1, %v6262_v15 }
 0x2c3   : > { %v1562_v53 = vpop.f32.mrf.mxu2 }
 0x2c4   : > { %v1650_v27 = vadd.f32 %v1562_v53, %v1093_v28  ;;  %v2099_v3 = vpop.f32.mrf.mxu3  ;;  %v1095_v22 = vpop.f32.mrf.mxu1 }
 0x2c5   : > { %v1096_v57 = vadd.f32 %v1095_v22, %v8864_v50  ;;  %v8866_v22 = vld [vmem:[#allocation17_spill] sm:$0xff] }
 0x2c6   : > { %v2187_v24 = vadd.f32 %v2099_v3, %v1650_v27  ;;  %v6004_v27 = vld [vmem:[%s6694_s6 + $0x88] sm:$0xff] }
 0x2c7   : > { %v2636_v35 = vpop.f32.mrf.mxu0  ;;  %5937 = vmatmul.msk.f32.gmra.mxu1 %vm318_vm1, %v7796_v21  ;;  %v6264_v21 = vld [vmem:[%s6694_s6 + $0x8a] sm:$0xff] }
 0x2c8   : > { %v7845_v42 = vadd.f32 %v2633_v18, %v2187_v24  ;;  %6069 = vmatmul.msk.f32.gmra.mxu2 %vm318_vm1, %v6003_v29  ;;  %v6134_v18 = vld [vmem:[%s6694_s6 + $0x89] sm:$0xff] }
 0x2c9   : > { %6199 = vmatmul.msk.f32.gmra.mxu3 %vm318_vm1, %v6133_v61 }
 0x2ca   : > { %8863 = vst [vmem:[#allocation26_spill] sm:$0xff] %v7845_v42  ;;  %6329 = vmatmul.msk.f32.gmra.mxu0 %vm318_vm1, %v6263_v2 }
 0x2cb   : > { %v1565_v49 = vpop.f32.mrf.mxu2 }
 0x2cc   : > { %v1651_v51 = vadd.f32 %v1565_v49, %v1096_v57  ;;  %v2102_v28 = vpop.f32.mrf.mxu3  ;;  %v1098_v53 = vpop.f32.mrf.mxu1 }
 0x2cd   : > { %v1099_v29 = vadd.f32 %v1098_v53, %v8866_v22  ;;  %v8868_v53 = vld [vmem:[#allocation19_spill] sm:$0xff] }
 0x2ce   : > { %v2188_v3 = vadd.f32 %v2102_v28, %v1651_v51  ;;  %v6005_v51 = vld [vmem:[%s6694_s6 + $0x90] sm:$0xff] }
 0x2cf   : > { %v2639_v24 = vpop.f32.mrf.mxu0  ;;  %5938 = vmatmul.msk.f32.gmra.mxu1 %vm318_vm1, %v7810_v33  ;;  %v6265_v33 = vld [vmem:[%s6694_s6 + $0x92] sm:$0xff] }
 0x2d0   : > { %v7856_v42 = vadd.f32 %v2636_v35, %v2188_v3  ;;  %6070 = vmatmul.msk.f32.gmra.mxu2 %vm318_vm1, %v6004_v27  ;;  %v6135_v35 = vld [vmem:[%s6694_s6 + $0x91] sm:$0xff] }
 0x2d1   : > { %6200 = vmatmul.msk.f32.gmra.mxu3 %vm318_vm1, %v6134_v18 }
 0x2d2   : > { %8865 = vst [vmem:[#allocation28_spill] sm:$0xff] %v7856_v42  ;;  %6330 = vmatmul.msk.f32.gmra.mxu0 %vm318_vm1, %v6264_v21 }
 0x2d3   : > { %v1568_v61 = vpop.f32.mrf.mxu2 }
 0x2d4   : > { %v1652_v50 = vadd.f32 %v1568_v61, %v1099_v29  ;;  %v2105_v57 = vpop.f32.mrf.mxu3  ;;  %v1101_v49 = vpop.f32.mrf.mxu1 }
 0x2d5   : > { %v1102_v27 = vadd.f32 %v1101_v49, %v8868_v53  ;;  %v8870_v49 = vld [vmem:[#allocation21_spill] sm:$0xff] }
 0x2d6   : > { %v2189_v28 = vadd.f32 %v2105_v57, %v1652_v50  ;;  %v6006_v50 = vld [vmem:[%s6694_s6 + $0xa0] sm:$0xff] }
 0x2d7   : > { %v2642_v3 = vpop.f32.mrf.mxu0  ;;  %5939 = vmatmul.msk.f32.gmra.mxu1 %vm318_vm1, %v6261_v0  ;;  %v6266_v0 = vld [vmem:[%s6694_s6 + $0xa2] sm:$0xff] }
 0x2d8   : > { %v7867_v42 = vadd.f32 %v2639_v24, %v2189_v28  ;;  %6071 = vmatmul.msk.f32.gmra.mxu2 %vm318_vm1, %v6005_v51  ;;  %v6136_v24 = vld [vmem:[%s6694_s6 + $0xa1] sm:$0xff] }
 0x2d9   : > { %6201 = vmatmul.msk.f32.gmra.mxu3 %vm318_vm1, %v6135_v35 }
 0x2da   : > { %8867 = vst [vmem:[#allocation30_spill] sm:$0xff] %v7867_v42  ;;  %6331 = vmatmul.msk.f32.gmra.mxu0 %vm318_vm1, %v6265_v33 }
 0x2db   : > { %v1571_v18 = vpop.f32.mrf.mxu2 }
 0x2dc   : > { %v1653_v22 = vadd.f32 %v1571_v18, %v1102_v27  ;;  %v2108_v29 = vpop.f32.mrf.mxu3  ;;  %v1104_v61 = vpop.f32.mrf.mxu1 }
 0x2dd   : > { %v1105_v51 = vadd.f32 %v1104_v61, %v8870_v49  ;;  %v8872_v61 = vld [vmem:[#allocation23_spill] sm:$0xff] }
 0x2de   : > { %v2190_v57 = vadd.f32 %v2108_v29, %v1653_v22  ;;  %v6007_v22 = vld [vmem:[%s6694_s6 + $0xa8] sm:$0xff] }
 0x2df   : > { %v2645_v28 = vpop.f32.mrf.mxu0  ;;  %5940 = vmatmul.msk.f32.gmra.mxu1 %vm318_vm1, %v6262_v15  ;;  %v6267_v15 = vld [vmem:[%s6694_s6 + $0xaa] sm:$0xff] }
 0x2e0   : > { %v7877_v42 = vadd.f32 %v2642_v3, %v2190_v57  ;;  %6072 = vmatmul.msk.f32.gmra.mxu2 %vm318_vm1, %v6006_v50  ;;  %v6137_v3 = vld [vmem:[%s6694_s6 + $0xa9] sm:$0xff] }
 0x2e1   : > { %6202 = vmatmul.msk.f32.gmra.mxu3 %vm318_vm1, %v6136_v24 }
 0x2e2   : > { %8869 = vst [vmem:[#allocation32_spill] sm:$0xff] %v7877_v42  ;;  %6332 = vmatmul.msk.f32.gmra.mxu0 %vm318_vm1, %v6266_v0 }
 0x2e3   : > { %v1574_v35 = vpop.f32.mrf.mxu2 }
 0x2e4   : > { %v1654_v53 = vadd.f32 %v1574_v35, %v1105_v51  ;;  %v2111_v27 = vpop.f32.mrf.mxu3  ;;  %v1107_v18 = vpop.f32.mrf.mxu1 }
 0x2e5   : > { %v1108_v50 = vadd.f32 %v1107_v18, %v8872_v61  ;;  %v8874_v18 = vld [vmem:[#allocation25_spill] sm:$0xff] }
 0x2e6   : > { %v2191_v29 = vadd.f32 %v2111_v27, %v1654_v53  ;;  %v6008_v53 = vld [vmem:[%s6694_s6 + $0xb0] sm:$0xff] }
 0x2e7   : > { %v2648_v57 = vpop.f32.mrf.mxu0  ;;  %5941 = vmatmul.msk.f32.gmra.mxu1 %vm318_vm1, %v6263_v2  ;;  %v6268_v2 = vld [vmem:[%s6694_s6 + $0xb2] sm:$0xff] }
 0x2e8   : > { %v7887_v42 = vadd.f32 %v2645_v28, %v2191_v29  ;;  %6073 = vmatmul.msk.f32.gmra.mxu2 %vm318_vm1, %v6007_v22  ;;  %v6138_v28 = vld [vmem:[%s6694_s6 + $0xb1] sm:$0xff] }
 0x2e9   : > { %6203 = vmatmul.msk.f32.gmra.mxu3 %vm318_vm1, %v6137_v3 }
 0x2ea   : > { %8871 = vst [vmem:[#allocation34_spill] sm:$0xff] %v7887_v42  ;;  %6333 = vmatmul.msk.f32.gmra.mxu0 %vm318_vm1, %v6267_v15 }
 0x2eb   : > { %v1577_v24 = vpop.f32.mrf.mxu2 }
 0x2ec   : > { %v1655_v49 = vadd.f32 %v1577_v24, %v1108_v50  ;;  %v2114_v51 = vpop.f32.mrf.mxu3  ;;  %v1110_v35 = vpop.f32.mrf.mxu1 }
 0x2ed   : > { %v1111_v22 = vadd.f32 %v1110_v35, %v8874_v18  ;;  %v8876_v35 = vld [vmem:[#allocation27_spill] sm:$0xff] }
 0x2ee   : > { %v2192_v27 = vadd.f32 %v2114_v51, %v1655_v49  ;;  %v6009_v49 = vld [vmem:[%s6694_s6 + $0xb8] sm:$0xff] }
 0x2ef   : > { %v2651_v29 = vpop.f32.mrf.mxu0  ;;  %5942 = vmatmul.msk.f32.gmra.mxu1 %vm318_vm1, %v6264_v21  ;;  %v6269_v21 = vld [vmem:[%s6694_s6 + $0xba] sm:$0xff] }
 0x2f0   : > { %v7897_v42 = vadd.f32 %v2648_v57, %v2192_v27  ;;  %6074 = vmatmul.msk.f32.gmra.mxu2 %vm318_vm1, %v6008_v53  ;;  %v6139_v57 = vld [vmem:[%s6694_s6 + $0xb9] sm:$0xff] }
 0x2f1   : > { %6204 = vmatmul.msk.f32.gmra.mxu3 %vm318_vm1, %v6138_v28 }
 0x2f2   : > { %8873 = vst [vmem:[#allocation7_spill] sm:$0xff] %v7897_v42  ;;  %6334 = vmatmul.msk.f32.gmra.mxu0 %vm318_vm1, %v6268_v2 }
 0x2f3   : > { %v1580_v3 = vpop.f32.mrf.mxu2 }
 0x2f4   : > { %v1656_v61 = vadd.f32 %v1580_v3, %v1111_v22  ;;  %v2117_v50 = vpop.f32.mrf.mxu3  ;;  %v1113_v24 = vpop.f32.mrf.mxu1 }
 0x2f5   : > { %v1114_v53 = vadd.f32 %v1113_v24, %v8876_v35  ;;  %v8878_v24 = vld [vmem:[#allocation29_spill] sm:$0xff] }
 0x2f6   : > { %v2193_v51 = vadd.f32 %v2117_v50, %v1656_v61  ;;  %v6010_v61 = vld [vmem:[%s6694_s6 + $0xc8] sm:$0xff] }
 0x2f7   : > { %v2654_v27 = vpop.f32.mrf.mxu0  ;;  %5943 = vmatmul.msk.f32.gmra.mxu1 %vm318_vm1, %v6265_v33  ;;  %v6270_v33 = vld [vmem:[%s6694_s6 + $0xca] sm:$0xff] }
 0x2f8   : > { %v7907_v42 = vadd.f32 %v2651_v29, %v2193_v51  ;;  %6075 = vmatmul.msk.f32.gmra.mxu2 %vm318_vm1, %v6009_v49  ;;  %v6140_v29 = vld [vmem:[%s6694_s6 + $0xc9] sm:$0xff] }
 0x2f9   : > { %6205 = vmatmul.msk.f32.gmra.mxu3 %vm318_vm1, %v6139_v57 }
 0x2fa   : > { %8875 = vst [vmem:[#allocation8_spill] sm:$0xff] %v7907_v42  ;;  %6335 = vmatmul.msk.f32.gmra.mxu0 %vm318_vm1, %v6269_v21 }
 0x2fb   : > { %v1583_v28 = vpop.f32.mrf.mxu2 }
 0x2fc   : > { %v1657_v18 = vadd.f32 %v1583_v28, %v1114_v53  ;;  %v2120_v22 = vpop.f32.mrf.mxu3  ;;  %v1116_v3 = vpop.f32.mrf.mxu1 }
 0x2fd   : > { %v1117_v49 = vadd.f32 %v1116_v3, %v8878_v24  ;;  %v8880_v3 = vld [vmem:[#allocation31_spill] sm:$0xff] }
 0x2fe   : > { %v2194_v50 = vadd.f32 %v2120_v22, %v1657_v18  ;;  %v6011_v18 = vld [vmem:[%s6694_s6 + $0xd0] sm:$0xff] }
 0x2ff   : > { %v2657_v51 = vpop.f32.mrf.mxu0  ;;  %5944 = vmatmul.msk.f32.gmra.mxu1 %vm318_vm1, %v6266_v0  ;;  %v7927_v0 = vld [vmem:[%s6694_s6 + $0xd2] sm:$0xff] }
 0x300   : > { %v7917_v42 = vadd.f32 %v2654_v27, %v2194_v50  ;;  %6076 = vmatmul.msk.f32.gmra.mxu2 %vm318_vm1, %v6010_v61  ;;  %v6141_v27 = vld [vmem:[%s6694_s6 + $0xd1] sm:$0xff] }
 0x301   : > { %6206 = vmatmul.msk.f32.gmra.mxu3 %vm318_vm1, %v6140_v29 }
 0x302   : > { %8877 = vst [vmem:[#allocation9_spill] sm:$0xff] %v7917_v42  ;;  %6336 = vmatmul.msk.f32.gmra.mxu0 %vm318_vm1, %v6270_v33 }
 0x303   : > { %v1586_v57 = vpop.f32.mrf.mxu2 }
 0x304   : > { %v1658_v35 = vadd.f32 %v1586_v57, %v1117_v49  ;;  %v2123_v53 = vpop.f32.mrf.mxu3  ;;  %v1119_v28 = vpop.f32.mrf.mxu1 }
 0x305   : > { %v1120_v29 = vadd.f32 %v1119_v28, %v8880_v3  ;;  %v8882_v28 = vld [vmem:[#allocation33_spill] sm:$0xff] }
 0x306   : > { %v2195_v22 = vadd.f32 %v2123_v53, %v1658_v35  ;;  %v6012_v53 = vld [vmem:[%s6694_s6 + $0xd8] sm:$0xff] }
 0x307   : > { %v2660_v50 = vpop.f32.mrf.mxu0  ;;  %5945 = vmatmul.msk.f32.gmra.mxu1 %vm318_vm1, %v6267_v15  ;;  %v7940_v15 = vld [vmem:[%s6694_s6 + $0xda] sm:$0xff] }
 0x308   : > { %v7929_v61 = vadd.f32 %v2657_v51, %v2195_v22  ;;  %6077 = vmatmul.msk.f32.gmra.mxu2 %vm318_vm1, %v6011_v18  ;;  %v6142_v51 = vld [vmem:[%s6694_s6 + $0xd9] sm:$0xff] }
 0x309   : > { %6207 = vmatmul.msk.f32.gmra.mxu3 %vm318_vm1, %v6141_v27 }
 0x30a   : > { %8879 = vst [vmem:[#allocation11_spill] sm:$0xff] %v7929_v61  ;;  %6337 = vmatmul.msk.f32.gmra.mxu0 %vm318_vm1, %v7927_v0 }
 0x30b   : > { %v1589_v24 = vpop.f32.mrf.mxu2 }
 0x30c   : > { %v1659_v49 = vadd.f32 %v1589_v24, %v1120_v29  ;;  %v2126_v57 = vpop.f32.mrf.mxu3  ;;  %v1122_v35 = vpop.f32.mrf.mxu1 }
 0x30d   : > { %v1123_v27 = vadd.f32 %v1122_v35, %v8882_v28  ;;  %v8884_v35 = vld [vmem:[#allocation35_spill] sm:$0xff] }
 0x30e   : > { %v2196_v42 = vadd.f32 %v2126_v57, %v1659_v49  ;;  %v6013_v57 = vld [vmem:[%s6694_s6 + $0xe0] sm:$0xff] }
 0x30f   : > { %v2663_v22 = vpop.f32.mrf.mxu0  ;;  %5946 = vmatmul.msk.f32.gmra.mxu1 %vm318_vm1, %v6268_v2  ;;  %v7953_v2 = vld [vmem:[%s6694_s6 + $0xe2] sm:$0xff] }
 0x310   : > { %v7942_v18 = vadd.f32 %v2660_v50, %v2196_v42  ;;  %6078 = vmatmul.msk.f32.gmra.mxu2 %vm318_vm1, %v6012_v53  ;;  %v6143_v42 = vld [vmem:[%s6694_s6 + $0xe1] sm:$0xff] }
 0x311   : > { %6208 = vmatmul.msk.f32.gmra.mxu3 %vm318_vm1, %v6142_v51 }
 0x312   : > { %8881 = vst [vmem:[#allocation13_spill] sm:$0xff] %v7942_v18  ;;  %6338 = vmatmul.msk.f32.gmra.mxu0 %vm318_vm1, %v7940_v15 }
 0x313   : > { %v1592_v3 = vpop.f32.mrf.mxu2 }
 0x314   : > { %v1660_v29 = vadd.f32 %v1592_v3, %v1123_v27  ;;  %v2129_v24 = vpop.f32.mrf.mxu3  ;;  %v1125_v49 = vpop.f32.mrf.mxu1 }
 0x315   : > { %v1126_v51 = vadd.f32 %v1125_v49, %v8884_v35 }
 0x316   : > { %v2197_v61 = vadd.f32 %v2129_v24, %v1660_v29  ;;  %v6014_v24 = vld [vmem:[%s6694_s6 + $0xf0] sm:$0xff] }
 0x317   : > { %v2666_v50 = vpop.f32.mrf.mxu0  ;;  %5947 = vmatmul.msk.f32.gmra.mxu1 %vm318_vm1, %v6269_v21  ;;  %v7966_v21 = vld [vmem:[%s6694_s6 + $0xf2] sm:$0xff] }
 0x318   : > { %v7955_v53 = vadd.f32 %v2663_v22, %v2197_v61  ;;  %6079 = vmatmul.msk.f32.gmra.mxu2 %vm318_vm1, %v6013_v57  ;;  %v6144_v61 = vld [vmem:[%s6694_s6 + $0xf1] sm:$0xff] }
 0x319   : > { %6209 = vmatmul.msk.f32.gmra.mxu3 %vm318_vm1, %v6143_v42 }
 0x31a   : > { %8883 = vst [vmem:[#allocation15_spill] sm:$0xff] %v7955_v53  ;;  %6339 = vmatmul.msk.f32.gmra.mxu0 %vm318_vm1, %v7953_v2 }
 0x31b   : > { %v1595_v28 = vpop.f32.mrf.mxu2 }
 0x31c   : > { %v1661_v27 = vadd.f32 %v1595_v28, %v1126_v51  ;;  %v2132_v3 = vpop.f32.mrf.mxu3  ;;  %v3011_v29 = vpop.f32.mrf.mxu1 }
 0x31d   : > { %v3203_v49 = vadd.f32 %v3011_v29, %v7178_v30 }
 0x31e   : > { %v2198_v18 = vadd.f32 %v2132_v3, %v1661_v27  ;;  %v6015_v27 = vld [vmem:[%s6694_s6 + $0xf8] sm:$0xff] }
 0x31f   : > { %v4616_v22 = vpop.f32.mrf.mxu0  ;;  %5948 = vmatmul.msk.f32.gmra.mxu1 %vm318_vm1, %v6270_v33  ;;  %v6145_v33 = vld [vmem:[%s6694_s6 + $0xf9] sm:$0xff] }
 0x320   : > { %v7968_v57 = vadd.f32 %v2666_v50, %v2198_v18  ;;  %6080 = vmatmul.msk.f32.gmra.mxu2 %vm318_vm1, %v6014_v24  ;;  %v7980_v18 = vld [vmem:[%s8804_s2] ss:$0 sm:$0xff] }
 0x321   : > { %6210 = vmatmul.msk.f32.gmra.mxu3 %vm318_vm1, %v6144_v61  ;;  %v7984_v24 = vld [vmem:[%s6694_s6 + $0xfa] sm:$0xff] }
 0x322   : > { %8885 = vst [vmem:[#allocation17_spill] sm:$0xff] %v7968_v57  ;;  %6340 = vmatmul.msk.f32.gmra.mxu0 %vm318_vm1, %v7966_v21  ;;  %v7998_v57 = vld [vmem:[%s6694_s6 + $0x102] sm:$0xff] }
 0x323   : > { %v3548_v42 = vpop.f32.mrf.mxu2 }
 0x324   : > { %v3740_v35 = vadd.f32 %v3548_v42, %v3203_v49  ;;  %v4082_v51 = vpop.f32.mrf.mxu3  ;;  %v3014_v28 = vpop.f32.mrf.mxu1 }
 0x325   : > { %v3204_v30 = vadd.f32 %v3014_v28, %v7188_v4 }
 0x326   : > { %v4274_v3 = vadd.f32 %v4082_v51, %v3740_v35 }
 0x327   : > { %v4619_v50 = vpop.f32.mrf.mxu0  ;;  %5949 = vmatmul.msk.f32.gmra.mxu1 %vm318_vm1, %v7927_v0 }
 0x328   : > { %v4808_v61 = vadd.f32 %v4616_v22, %v4274_v3  ;;  %6081 = vmatmul.msk.f32.gmra.mxu2 %vm318_vm1, %v6015_v27  ;;  %v6016_v3 = vld [vmem:[%s6694_s6 + $0x100] sm:$0xff] }
 0x329   : > { %6211 = vmatmul.msk.f32.gmra.mxu3 %vm318_vm1, %v6145_v33  ;;  %v6146_v27 = vld [vmem:[%s6694_s6 + $0x101] sm:$0xff] }
 0x32a   : > { %6341 = vmatmul.msk.f32.gmra.mxu0 %vm318_vm1, %v7984_v24  ;;  %v4876_v29 = vadd.f32 %v7980_v18, %v4808_v61 }
 0x32b   : > { %v3551_v49 = vpop.f32.mrf.mxu2 }
 0x32c   : > { %v4940_v42 = vmax.f32 %v4876_v29, 0.0  ;;  %v3741_v22 = vadd.f32 %v3551_v49, %v3204_v30  ;;  %v4085_v35 = vpop.f32.mrf.mxu3  ;;  %v3017_v51 = vpop.f32.mrf.mxu1 }
 0x32d   : > { %v3205_v4 = vadd.f32 %v3017_v51, %v7198_v10 }
 0x32e   : > { %5005 = vst.msk [vmem:[#allocation2] sm:$0xff] %vm5004_vm2, %v4940_v42  ;;  %v4275_v0 = vadd.f32 %v4085_v35, %v3741_v22  ;;  %v6017_v42 = vld [vmem:[%s6694_s6 + $0x108] sm:$0xff] }
 0x32f   : > { %v4622_v33 = vpop.f32.mrf.mxu0  ;;  %5950 = vmatmul.msk.f32.gmra.mxu1 %vm318_vm1, %v7940_v15  ;;  %v6147_v22 = vld [vmem:[%s6694_s6 + $0x109] sm:$0xff] }
 0x330   : > { %v4809_v53 = vadd.f32 %v4619_v50, %v4275_v0  ;;  %6082 = vmatmul.msk.f32.gmra.mxu2 %vm318_vm1, %v6016_v3  ;;  %v8012_v3 = vld [vmem:[%s6694_s6 + $0x10a] sm:$0xff] }
 0x331   : > { %6212 = vmatmul.msk.f32.gmra.mxu3 %vm318_vm1, %v6146_v27 }
 0x332   : > { %6342 = vmatmul.msk.f32.gmra.mxu0 %vm318_vm1, %v7998_v57  ;;  %v4877_v28 = vadd.f32 %v7980_v18, %v4809_v53 }
 0x333   : > { %v3554_v61 = vpop.f32.mrf.mxu2 }
 0x334   : > { %v4941_v30 = vmax.f32 %v4877_v28, 0.0  ;;  %v3742_v29 = vadd.f32 %v3554_v61, %v3205_v4  ;;  %v4088_v49 = vpop.f32.mrf.mxu3  ;;  %v3020_v50 = vpop.f32.mrf.mxu1  ;;  %v6018_v61 = vld [vmem:[%s6694_s6 + $0x118] sm:$0xff] }
 0x335   : > { %v3206_v10 = vadd.f32 %v3020_v50, %v7208_v5 }
 0x336   : > { %5006 = vst.msk [vmem:[#allocation2 + $0x8] sm:$0xff] %vm5004_vm2, %v4941_v30  ;;  %v4276_v15 = vadd.f32 %v4088_v49, %v3742_v29  ;;  %v6148_v30 = vld [vmem:[%s6694_s6 + $0x119] sm:$0xff] }
 0x337   : > { %v4625_v35 = vpop.f32.mrf.mxu0  ;;  %5951 = vmatmul.msk.f32.gmra.mxu1 %vm318_vm1, %v7953_v2  ;;  %v8026_v49 = vld [vmem:[%s6694_s6 + $0x11a] sm:$0xff] }
 0x338   : > { %v4810_v0 = vadd.f32 %v4622_v33, %v4276_v15  ;;  %6083 = vmatmul.msk.f32.gmra.mxu2 %vm318_vm1, %v6017_v42 }
 0x339   : > { %6213 = vmatmul.msk.f32.gmra.mxu3 %vm318_vm1, %v6147_v22 }
 0x33a   : > { %6343 = vmatmul.msk.f32.gmra.mxu0 %vm318_vm1, %v8012_v3  ;;  %v4878_v53 = vadd.f32 %v7980_v18, %v4810_v0 }
 0x33b   : > { %v3557_v51 = vpop.f32.mrf.mxu2 }
 0x33c   : > { %v4942_v27 = vmax.f32 %v4878_v53, 0.0  ;;  %v3743_v4 = vadd.f32 %v3557_v51, %v3206_v10  ;;  %v4091_v28 = vpop.f32.mrf.mxu3  ;;  %v3023_v33 = vpop.f32.mrf.mxu1  ;;  %v6019_v53 = vld [vmem:[%s6694_s6 + $0x120] sm:$0xff] }
 0x33d   : > { %v3207_v5 = vadd.f32 %v3023_v33, %v7218_v9  ;;  %v6149_v51 = vld [vmem:[%s6694_s6 + $0x121] sm:$0xff] }
 0x33e   : > { %5007 = vst.msk [vmem:[#allocation2 + $0x10] sm:$0xff] %vm5004_vm2, %v4942_v27  ;;  %v4277_v2 = vadd.f32 %v4091_v28, %v3743_v4  ;;  %v8040_v4 = vld [vmem:[%s6694_s6 + $0x122] sm:$0xff] }
 0x33f   : > { %v4628_v29 = vpop.f32.mrf.mxu0  ;;  %5952 = vmatmul.msk.f32.gmra.mxu1 %vm318_vm1, %v7966_v21 }
 0x340   : > { %v4811_v42 = vadd.f32 %v4625_v35, %v4277_v2  ;;  %6084 = vmatmul.msk.f32.gmra.mxu2 %vm318_vm1, %v6018_v61 }
 0x341   : > { %6214 = vmatmul.msk.f32.gmra.mxu3 %vm318_vm1, %v6148_v30 }
 0x342   : > { %6344 = vmatmul.msk.f32.gmra.mxu0 %vm318_vm1, %v8026_v49  ;;  %v4879_v50 = vadd.f32 %v7980_v18, %v4811_v42 }
 0x343   : > { %v3560_v15 = vpop.f32.mrf.mxu2 }
 0x344   : > { %v4943_v22 = vmax.f32 %v4879_v50, 0.0  ;;  %v3744_v0 = vadd.f32 %v3560_v15, %v3207_v5  ;;  %v4094_v10 = vpop.f32.mrf.mxu3  ;;  %v3026_v35 = vpop.f32.mrf.mxu1  ;;  %v6020_v5 = vld [vmem:[%s6694_s6 + $0x128] sm:$0xff] }
 0x345   : > { %v3208_v9 = vadd.f32 %v3026_v35, %v7228_v36  ;;  %v6150_v50 = vld [vmem:[%s6694_s6 + $0x129] sm:$0xff] }
 0x346   : > { %5008 = vst.msk [vmem:[#allocation2 + $0x18] sm:$0xff] %vm5004_vm2, %v4943_v22  ;;  %v4278_v21 = vadd.f32 %v4094_v10, %v3744_v0  ;;  %v8054_v22 = vld [vmem:[%s6694_s6 + $0x12a] sm:$0xff] }
 0x347   : > { %v4631_v27 = vpop.f32.mrf.mxu0  ;;  %5953 = vmatmul.msk.f32.gmra.mxu1 %vm318_vm1, %v7984_v24 }
 0x348   : > { %v4812_v28 = vadd.f32 %v4628_v29, %v4278_v21  ;;  %6085 = vmatmul.msk.f32.gmra.mxu2 %vm318_vm1, %v6019_v53 }
 0x349   : > { %6215 = vmatmul.msk.f32.gmra.mxu3 %vm318_vm1, %v6149_v51 }
 0x34a   : > { %6345 = vmatmul.msk.f32.gmra.mxu0 %vm318_vm1, %v8040_v4  ;;  %v4880_v33 = vadd.f32 %v7980_v18, %v4812_v28 }
 0x34b   : > { %v3563_v61 = vpop.f32.mrf.mxu2 }
 0x34c   : > { %v4944_v2 = vmax.f32 %v4880_v33, 0.0  ;;  %v3745_v30 = vadd.f32 %v3563_v61, %v3208_v9  ;;  %v4097_v42 = vpop.f32.mrf.mxu3  ;;  %v3029_v29 = vpop.f32.mrf.mxu1  ;;  %v6021_v9 = vld [vmem:[%s6694_s6 + $0x130] sm:$0xff] }
 0x34d   : > { %v3209_v36 = vadd.f32 %v3029_v29, %v7238_v48 }
 0x34e   : > { %5009 = vst.msk [vmem:[#allocation2 + $0x20] sm:$0xff] %vm5004_vm2, %v4944_v2  ;;  %v4279_v24 = vadd.f32 %v4097_v42, %v3745_v30  ;;  %v6151_v2 = vld [vmem:[%s6694_s6 + $0x131] sm:$0xff] }
 0x34f   : > { %v4634_v15 = vpop.f32.mrf.mxu0  ;;  %5954 = vmatmul.msk.f32.gmra.mxu1 %vm318_vm1, %v7998_v57  ;;  %v8068_v42 = vld [vmem:[%s6694_s6 + $0x132] sm:$0xff] }
 0x350   : > { %v4813_v0 = vadd.f32 %v4631_v27, %v4279_v24  ;;  %6086 = vmatmul.msk.f32.gmra.mxu2 %vm318_vm1, %v6020_v5  ;;  %v5069_v27 = vld [vmem:[#allocation2] sm:$0xff] }
 0x351   : > { %6216 = vmatmul.msk.f32.gmra.mxu3 %vm318_vm1, %v6150_v50 }
 0x352   : > { %6346 = vmatmul.msk.f32.gmra.mxu0 %vm318_vm1, %v8054_v22  ;;  %v4881_v10 = vadd.f32 %v7980_v18, %v4813_v0 }
 0x353   : > { %v3566_v35 = vpop.f32.mrf.mxu2 }
 0x354   : > { %v4945_v53 = vmax.f32 %v4881_v10, 0.0  ;;  %v3746_v21 = vadd.f32 %v3566_v35, %v3209_v36  ;;  %v4100_v51 = vpop.f32.mrf.mxu3  ;;  %v3032_v57 = vpop.f32.mrf.mxu1  ;;  %v5070_v36 = vld [vmem:[#allocation2 + $0x8] sm:$0xff]  ;;  %v6022_v35 = vld [vmem:[%s6694_s6 + $0x140] sm:$0xff] }
 0x355   : > { %v5102_v28 = vld [vmem:[#allocation2 + $0x20] sm:$0xff]  ;;  %v3210_v29 = vadd.f32 %v3032_v57, %v7248_v16 }
 0x356   : > { %v5134_v33 = vmax.f32 %v5069_v27, %v5102_v28  ;;  %5010 = vst.msk [vmem:[#allocation2 + $0x28] sm:$0xff] %vm5004_vm2, %v4945_v53  ;;  %v4280_v61 = vadd.f32 %v4100_v51, %v3746_v21  ;;  %v6152_v51 = vld [vmem:[%s6694_s6 + $0x141] sm:$0xff] }
 0x357   : > { %v4637_v30 = vpop.f32.mrf.mxu0  ;;  %5955 = vmatmul.msk.f32.gmra.mxu1 %vm318_vm1, %v8012_v3  ;;  %v8083_v28 = vld [vmem:[%s6694_s6 + $0x142] sm:$0xff] }
 0x358   : > { %5166 = vst.msk [vmem:[#allocation3] sm:$0xff] %vm5004_vm2, %v5134_v33  ;;  %v4814_v48 = vadd.f32 %v4634_v15, %v4280_v61  ;;  %6087 = vmatmul.msk.f32.gmra.mxu2 %vm318_vm1, %v6021_v9 }
 0x359   : > { %6217 = vmatmul.msk.f32.gmra.mxu3 %vm318_vm1, %v6151_v2 }
 0x35a   : > { %6347 = vmatmul.msk.f32.gmra.mxu0 %vm318_vm1, %v8068_v42  ;;  %v4882_v5 = vadd.f32 %v7980_v18, %v4814_v48 }
 0x35b   : > { %v3569_v24 = vpop.f32.mrf.mxu2 }
 0x35c   : > { %v4946_v50 = vmax.f32 %v4882_v5, 0.0  ;;  %v3747_v0 = vadd.f32 %v3569_v24, %v3210_v29  ;;  %v4103_v15 = vpop.f32.mrf.mxu3  ;;  %v3035_v10 = vpop.f32.mrf.mxu1  ;;  %v6023_v5 = vld [vmem:[%s6694_s6 + $0x148] sm:$0xff] }
 0x35d   : > { %v5103_v3 = vld [vmem:[#allocation2 + $0x28] sm:$0xff]  ;;  %v3211_v57 = vadd.f32 %v3035_v10, %v7258_v25 }
 0x35e   : > { %v5135_v53 = vmax.f32 %v5070_v36, %v5103_v3  ;;  %5011 = vst.msk [vmem:[#allocation2 + $0x30] sm:$0xff] %vm5004_vm2, %v4946_v50  ;;  %v4281_v21 = vadd.f32 %v4103_v15, %v3747_v0  ;;  %v6153_v0 = vld [vmem:[%s6694_s6 + $0x149] sm:$0xff] }
 0x35f   : > { %v4640_v27 = vpop.f32.mrf.mxu0  ;;  %5956 = vmatmul.msk.f32.gmra.mxu1 %vm318_vm1, %v8026_v49  ;;  %v8101_v25 = vld [vmem:[%s6694_s6 + $0x14a] sm:$0xff] }
 0x360   : > { %5167 = vst.msk [vmem:[#allocation3 + $0x8] sm:$0xff] %vm5004_vm2, %v5135_v53  ;;  %v4815_v16 = vadd.f32 %v4637_v30, %v4281_v21  ;;  %6088 = vmatmul.msk.f32.gmra.mxu2 %vm318_vm1, %v6022_v35  ;;  %v5071_v30 = vld [vmem:[#allocation2 + $0x10] sm:$0xff] }
 0x361   : > { %6218 = vmatmul.msk.f32.gmra.mxu3 %vm318_vm1, %v6152_v51 }
 0x362   : > { %6348 = vmatmul.msk.f32.gmra.mxu0 %vm318_vm1, %v8083_v28  ;;  %v4883_v9 = vadd.f32 %v7980_v18, %v4815_v16 }
 0x363   : > { %v3572_v33 = vpop.f32.mrf.mxu2 }
 0x364   : > { %v4947_v61 = vmax.f32 %v4883_v9, 0.0  ;;  %v3748_v2 = vadd.f32 %v3572_v33, %v3211_v57  ;;  %v4106_v49 = vpop.f32.mrf.mxu3  ;;  %v3038_v29 = vpop.f32.mrf.mxu1  ;;  %v5072_v57 = vld [vmem:[#allocation2 + $0x18] sm:$0xff] }
 0x365   : > { %v5104_v48 = vld [vmem:[#allocation2 + $0x30] sm:$0xff]  ;;  %v3212_v53 = vadd.f32 %v3038_v29, %v7268_v38 }
 0x366   : > { %v5136_v24 = vmax.f32 %v5071_v30, %v5104_v48  ;;  %5012 = vst.msk [vmem:[#allocation2 + $0x38] sm:$0xff] %vm5004_vm2, %v4947_v61  ;;  %v4282_v50 = vadd.f32 %v4106_v49, %v3748_v2  ;;  %v6024_v61 = vld [vmem:[%s6694_s6 + $0x150] sm:$0xff] }
 0x367   : > { %v4643_v15 = vpop.f32.mrf.mxu0  ;;  %v5198_v36 = vld [vmem:[#allocation3] ss:$2 sm:$0xff]  ;;  %v5230_v3 = vld [vmem:[#allocation3 + $0x1] ss:$2 sm:$0xff]  ;;  %5957 = vmatmul.msk.f32.gmra.mxu1 %vm318_vm1, %v8040_v4  ;;  %v6154_v30 = vld [vmem:[%s6694_s6 + $0x151] sm:$0xff] }
 0x368   : > { %v5261_v10 = vmax.f32 %v5198_v36, %v5230_v3  ;;  %5168 = vst.msk [vmem:[#allocation3 + $0x10] sm:$0xff] %vm5004_vm2, %v5136_v24  ;;  %v4816_v35 = vadd.f32 %v4640_v27, %v4282_v50  ;;  %6089 = vmatmul.msk.f32.gmra.mxu2 %vm318_vm1, %v6023_v5  ;;  %v8120_v5 = vld [vmem:[%s6694_s6 + $0x152] sm:$0xff] }
 0x369   : > { %6219 = vmatmul.msk.f32.gmra.mxu3 %vm318_vm1, %v6153_v0 }
 0x36a   : > { %6349 = vmatmul.msk.f32.gmra.mxu0 %vm318_vm1, %v8101_v25  ;;  %5277 = vst.msk [vmem:[%s8110_s5] sm:$0xff] %vm5004_vm2, %v5261_v10  ;;  %v4884_v21 = vadd.f32 %v7980_v18, %v4816_v35  ;;  %v6025_v10 = vld [vmem:[%s6694_s6 + $0x158] sm:$0xff] }
 0x36b   : > { %v3575_v51 = vpop.f32.mrf.mxu2  ;;  %v6155_v35 = vld [vmem:[%s6694_s6 + $0x159] sm:$0xff] }
 0x36c   : > { %v4948_v4 = vmax.f32 %v4884_v21, 0.0  ;;  %v3749_v27 = vadd.f32 %v3575_v51, %v3212_v53  ;;  %v4109_v16 = vpop.f32.mrf.mxu3  ;;  %v3041_v33 = vpop.f32.mrf.mxu1  ;;  %v8135_v21 = vld [vmem:[%s6694_s6 + $0x15a] sm:$0xff] }
 0x36d   : > { %v5105_v9 = vld [vmem:[#allocation2 + $0x38] sm:$0xff]  ;;  %v3213_v29 = vadd.f32 %v3041_v33, %v7280_v40 }
 0x36e   : > { %v5137_v2 = vmax.f32 %v5072_v57, %v5105_v9  ;;  %5013 = vst.msk [vmem:[#allocation2 + $0x40] sm:$0xff] %vm5004_vm2, %v4948_v4  ;;  %v4283_v49 = vadd.f32 %v4109_v16, %v3749_v27 }
 0x36f   : > { %v4646_v48 = vpop.f32.mrf.mxu0  ;;  %5958 = vmatmul.msk.f32.gmra.mxu1 %vm318_vm1, %v8054_v22 }
 0x370   : > { %5169 = vst.msk [vmem:[#allocation3 + $0x18] sm:$0xff] %vm5004_vm2, %v5137_v2  ;;  %v4817_v38 = vadd.f32 %v4643_v15, %v4283_v49  ;;  %6090 = vmatmul.msk.f32.gmra.mxu2 %vm318_vm1, %v6024_v61 }
 0x371   : > { %6220 = vmatmul.msk.f32.gmra.mxu3 %vm318_vm1, %v6154_v30 }
 0x372   : > { %6350 = vmatmul.msk.f32.gmra.mxu0 %vm318_vm1, %v8120_v5  ;;  %v4885_v24 = vadd.f32 %v7980_v18, %v4817_v38 }
 0x373   : > { %v3578_v50 = vpop.f32.mrf.mxu2 }
 0x374   : > { %v4949_v0 = vmax.f32 %v4885_v24, 0.0  ;;  %v3750_v36 = vadd.f32 %v3578_v50, %v3213_v29  ;;  %v4112_v3 = vpop.f32.mrf.mxu3  ;;  %v3044_v15 = vpop.f32.mrf.mxu1  ;;  %v8151_v29 = vld [vmem:[%s6694_s6 + $0x16a] sm:$0xff] }
 0x375   : > { %v3214_v16 = vadd.f32 %v3044_v15, %v7294_v7 }
 0x376   : > { %5014 = vst.msk [vmem:[#allocation2 + $0x48] sm:$0xff] %vm5004_vm2, %v4949_v0  ;;  %v4284_v22 = vadd.f32 %v4112_v3, %v3750_v36 }
 0x377   : > { %v4649_v53 = vpop.f32.mrf.mxu0  ;;  %v5200_v51 = vld [vmem:[#allocation3 + $0x10] ss:$2 sm:$0xff]  ;;  %v5232_v4 = vld [vmem:[#allocation3 + $0x11] ss:$2 sm:$0xff]  ;;  %5959 = vmatmul.msk.f32.gmra.mxu1 %vm318_vm1, %v8068_v42  ;;  %v6026_v42 = vld [vmem:[%s6694_s6 + $0x168] sm:$0xff] }
 0x378   : > { %v5262_v40 = vmax.f32 %v5200_v51, %v5232_v4  ;;  %v4818_v27 = vadd.f32 %v4646_v48, %v4284_v22  ;;  %6091 = vmatmul.msk.f32.gmra.mxu2 %vm318_vm1, %v6025_v10  ;;  %v6156_v48 = vld [vmem:[%s6694_s6 + $0x169] sm:$0xff]  ;;  %v8165_v51 = vld [vmem:[%s6694_s6 + $0x172] sm:$0xff] }
 0x379   : > { %6221 = vmatmul.msk.f32.gmra.mxu3 %vm318_vm1, %v6155_v35  ;;  %v6027_v22 = vld [vmem:[%s6694_s6 + $0x170] sm:$0xff] }
 0x37a   : > { %6351 = vmatmul.msk.f32.gmra.mxu0 %vm318_vm1, %v8135_v21  ;;  %5278 = vst.msk [vmem:[%s8110_s5 + $0x8] sm:$0xff] %vm5004_vm2, %v5262_v40  ;;  %v4886_v57 = vadd.f32 %v7980_v18, %v4818_v27  ;;  %v6157_v35 = vld [vmem:[%s6694_s6 + $0x171] sm:$0xff] }
 0x37b   : > { %v3581_v9 = vpop.f32.mrf.mxu2 }
 0x37c   : > { %v4950_v33 = vmax.f32 %v4886_v57, 0.0  ;;  %v3751_v61 = vadd.f32 %v3581_v9, %v3214_v16  ;;  %v4115_v2 = vpop.f32.mrf.mxu3  ;;  %v3047_v49 = vpop.f32.mrf.mxu1 }
 0x37d   : > { %v3215_v7 = vadd.f32 %v3047_v49, %v7307_v59 }
 0x37e   : > { %5015 = vst.msk [vmem:[#allocation2 + $0x50] sm:$0xff] %vm5004_vm2, %v4950_v33  ;;  %v4285_v30 = vadd.f32 %v4115_v2, %v3751_v61  ;;  %v6028_v61 = vld [vmem:[%s6694_s6 + $0x178] sm:$0xff] }
 0x37f   : > { %v4652_v38 = vpop.f32.mrf.mxu0  ;;  %5960 = vmatmul.msk.f32.gmra.mxu1 %vm318_vm1, %v8083_v28  ;;  %v6158_v2 = vld [vmem:[%s6694_s6 + $0x179] sm:$0xff] }
 0x380   : > { %v4819_v24 = vadd.f32 %v4649_v53, %v4285_v30  ;;  %6092 = vmatmul.msk.f32.gmra.mxu2 %vm318_vm1, %v6026_v42  ;;  %v8179_v42 = vld [vmem:[%s6694_s6 + $0x17a] sm:$0xff] }
 0x381   : > { %6222 = vmatmul.msk.f32.gmra.mxu3 %vm318_vm1, %v6156_v48 }
 0x382   : > { %6352 = vmatmul.msk.f32.gmra.mxu0 %vm318_vm1, %v8151_v29  ;;  %v4887_v50 = vadd.f32 %v7980_v18, %v4819_v24 }
 0x383   : > { %v3584_v0 = vpop.f32.mrf.mxu2 }
 0x384   : > { %v4951_v36 = vmax.f32 %v4887_v50, 0.0  ;;  %v3752_v3 = vadd.f32 %v3584_v0, %v3215_v7  ;;  %v4118_v15 = vpop.f32.mrf.mxu3  ;;  %v3050_v10 = vpop.f32.mrf.mxu1  ;;  %v5073_v0 = vld [vmem:[#allocation2 + $0x40] sm:$0xff] }
 0x385   : > { %v3216_v59 = vadd.f32 %v3050_v10, %v7320_v41 }
 0x386   : > { %5016 = vst.msk [vmem:[#allocation2 + $0x58] sm:$0xff] %vm5004_vm2, %v4951_v36  ;;  %v4286_v28 = vadd.f32 %v4118_v15, %v3752_v3  ;;  %v6029_v3 = vld [vmem:[%s6694_s6 + $0x180] sm:$0xff] }
 0x387   : > { %v4655_v53 = vpop.f32.mrf.mxu0  ;;  %5961 = vmatmul.msk.f32.gmra.mxu1 %vm318_vm1, %v8101_v25 }
 0x388   : > { %v4820_v4 = vadd.f32 %v4652_v38, %v4286_v28  ;;  %6093 = vmatmul.msk.f32.gmra.mxu2 %vm318_vm1, %v6027_v22  ;;  %v6159_v22 = vld [vmem:[%s6694_s6 + $0x181] sm:$0xff] }
 0x389   : > { %6223 = vmatmul.msk.f32.gmra.mxu3 %vm318_vm1, %v6157_v35  ;;  %v8193_v35 = vld [vmem:[%s6694_s6 + $0x182] sm:$0xff] }
 0x38a   : > { %6353 = vmatmul.msk.f32.gmra.mxu0 %vm318_vm1, %v8165_v51  ;;  %v4888_v40 = vadd.f32 %v7980_v18, %v4820_v4 }
 0x38b   : > { %v3587_v27 = vpop.f32.mrf.mxu2 }
 0x38c   : > { %v4952_v16 = vmax.f32 %v4888_v40, 0.0  ;;  %v3753_v57 = vadd.f32 %v3587_v27, %v3216_v59  ;;  %v4121_v9 = vpop.f32.mrf.mxu3  ;;  %v3053_v33 = vpop.f32.mrf.mxu1 }
 0x38d   : > { %v3217_v41 = vadd.f32 %v3053_v33, %v7333_v32  ;;  %v6030_v33 = vld [vmem:[%s6694_s6 + $0x190] sm:$0xff] }
 0x38e   : > { %5017 = vst.msk [vmem:[#allocation2 + $0x60] sm:$0xff] %vm5004_vm2, %v4952_v16  ;;  %v4287_v25 = vadd.f32 %v4121_v9, %v3753_v57  ;;  %v5074_v57 = vld [vmem:[#allocation2 + $0x48] sm:$0xff] }
 0x38f   : > { %v4658_v49 = vpop.f32.mrf.mxu0  ;;  %5962 = vmatmul.msk.f32.gmra.mxu1 %vm318_vm1, %v8120_v5 }
 0x390   : > { %v4821_v30 = vadd.f32 %v4655_v53, %v4287_v25  ;;  %6094 = vmatmul.msk.f32.gmra.mxu2 %vm318_vm1, %v6028_v61 }
 0x391   : > { %6224 = vmatmul.msk.f32.gmra.mxu3 %vm318_vm1, %v6158_v2  ;;  %v6160_v2 = vld [vmem:[%s6694_s6 + $0x191] sm:$0xff] }
 0x392   : > { %6354 = vmatmul.msk.f32.gmra.mxu0 %vm318_vm1, %v8179_v42  ;;  %v4889_v48 = vadd.f32 %v7980_v18, %v4821_v30  ;;  %v8208_v30 = vld [vmem:[%s6694_s6 + $0x192] sm:$0xff] }
 0x393   : > { %v3590_v38 = vpop.f32.mrf.mxu2 }
 0x394   : > { %v4953_v24 = vmax.f32 %v4889_v48, 0.0  ;;  %v3754_v7 = vadd.f32 %v3590_v38, %v3217_v41  ;;  %v4124_v50 = vpop.f32.mrf.mxu3  ;;  %v3056_v5 = vpop.f32.mrf.mxu1 }
 0x395   : > { %v5106_v36 = vld [vmem:[#allocation2 + $0x60] sm:$0xff]  ;;  %v3218_v53 = vadd.f32 %v3056_v5, %v7347_v17  ;;  %v6031_v5 = vld [vmem:[%s6694_s6 + $0x198] sm:$0xff] }
 0x396   : > { %v5138_v15 = vmax.f32 %v5073_v0, %v5106_v36  ;;  %5018 = vst.msk [vmem:[#allocation2 + $0x68] sm:$0xff] %vm5004_vm2, %v4953_v24  ;;  %v4288_v10 = vadd.f32 %v4124_v50, %v3754_v7  ;;  %v5075_v0 = vld [vmem:[#allocation2 + $0x50] sm:$0xff] }
 0x397   : > { %v4661_v28 = vpop.f32.mrf.mxu0  ;;  %5963 = vmatmul.msk.f32.gmra.mxu1 %vm318_vm1, %v8135_v21 }
 0x398   : > { %5170 = vst.msk [vmem:[#allocation3 + $0x20] sm:$0xff] %vm5004_vm2, %v5138_v15  ;;  %v4822_v32 = vadd.f32 %v4658_v49, %v4288_v10  ;;  %6095 = vmatmul.msk.f32.gmra.mxu2 %vm318_vm1, %v6029_v3  ;;  %v6161_v10 = vld [vmem:[%s6694_s6 + $0x199] sm:$0xff] }
 0x399   : > { %6225 = vmatmul.msk.f32.gmra.mxu3 %vm318_vm1, %v6159_v22 }
 0x39a   : > { %6355 = vmatmul.msk.f32.gmra.mxu0 %vm318_vm1, %v8193_v35  ;;  %v4890_v4 = vadd.f32 %v7980_v18, %v4822_v32 }
 0x39b   : > { %v3593_v59 = vpop.f32.mrf.mxu2 }
 0x39c   : > { %v4954_v40 = vmax.f32 %v4890_v4, 0.0  ;;  %v3755_v27 = vadd.f32 %v3593_v59, %v3218_v53  ;;  %v4127_v16 = vpop.f32.mrf.mxu3  ;;  %v3059_v21 = vpop.f32.mrf.mxu1 }
 0x39d   : > { %v5107_v9 = vld [vmem:[#allocation2 + $0x68] sm:$0xff]  ;;  %v3219_v41 = vadd.f32 %v3059_v21, %v7361_v44 }
 0x39e   : > { %v5139_v61 = vmax.f32 %v5074_v57, %v5107_v9  ;;  %5019 = vst.msk [vmem:[#allocation2 + $0x70] sm:$0xff] %vm5004_vm2, %v4954_v40  ;;  %v4289_v25 = vadd.f32 %v4127_v16, %v3755_v27 }
 0x39f   : > { %v4664_v49 = vpop.f32.mrf.mxu0  ;;  %5964 = vmatmul.msk.f32.gmra.mxu1 %vm318_vm1, %v8151_v29 }
 0x3a0   : > { %5171 = vst.msk [vmem:[#allocation3 + $0x28] sm:$0xff] %vm5004_vm2, %v5139_v61  ;;  %v4823_v17 = vadd.f32 %v4661_v28, %v4289_v25  ;;  %6096 = vmatmul.msk.f32.gmra.mxu2 %vm318_vm1, %v6030_v33  ;;  %v8223_v28 = vld [vmem:[%s6694_s6 + $0x19a] sm:$0xff] }
 0x3a1   : > { %6226 = vmatmul.msk.f32.gmra.mxu3 %vm318_vm1, %v6160_v2  ;;  %v6032_v61 = vld [vmem:[%s6694_s6 + $0x1a0] sm:$0xff] }
 0x3a2   : > { %6356 = vmatmul.msk.f32.gmra.mxu0 %vm318_vm1, %v8208_v30  ;;  %v4891_v48 = vadd.f32 %v7980_v18, %v4823_v17 }
 0x3a3   : > { %v3596_v38 = vpop.f32.mrf.mxu2 }
 0x3a4   : > { %v4955_v24 = vmax.f32 %v4891_v48, 0.0  ;;  %v3756_v7 = vadd.f32 %v3596_v38, %v3219_v41  ;;  %v4130_v50 = vpop.f32.mrf.mxu3  ;;  %v3062_v29 = vpop.f32.mrf.mxu1  ;;  %v8240_v41 = vld [vmem:[%s6694_s6 + $0x1a2] sm:$0xff] }
 0x3a5   : > { %v5108_v36 = vld [vmem:[#allocation2 + $0x70] sm:$0xff]  ;;  %v3220_v59 = vadd.f32 %v3062_v29, %v7375_v37  ;;  %v6033_v29 = vld [vmem:[%s6694_s6 + $0x1a8] sm:$0xff] }
 0x3a6   : > { %v5140_v3 = vmax.f32 %v5075_v0, %v5108_v36  ;;  %5020 = vst.msk [vmem:[#allocation2 + $0x78] sm:$0xff] %vm5004_vm2, %v4955_v24  ;;  %v4290_v15 = vadd.f32 %v4130_v50, %v3756_v7 }
 0x3a7   : > { %v4667_v22 = vpop.f32.mrf.mxu0  ;;  %v5202_v44 = vld [vmem:[#allocation3 + $0x20] ss:$2 sm:$0xff]  ;;  %v5234_v32 = vld [vmem:[#allocation3 + $0x21] ss:$2 sm:$0xff]  ;;  %5965 = vmatmul.msk.f32.gmra.mxu1 %vm318_vm1, %v8165_v51  ;;  %v5076_v51 = vld [vmem:[#allocation2 + $0x58] sm:$0xff] }
 0x3a8   : > { %v5263_v53 = vmax.f32 %v5202_v44, %v5234_v32  ;;  %5172 = vst.msk [vmem:[#allocation3 + $0x30] sm:$0xff] %vm5004_vm2, %v5140_v3  ;;  %v4824_v4 = vadd.f32 %v4664_v49, %v4290_v15  ;;  %6097 = vmatmul.msk.f32.gmra.mxu2 %vm318_vm1, %v6031_v5  ;;  %v6162_v49 = vld [vmem:[%s6694_s6 + $0x1a1] sm:$0xff]  ;;  %v6163_v5 = vld [vmem:[%s6694_s6 + $0x1a9] sm:$0xff] }
 0x3a9   : > { %6227 = vmatmul.msk.f32.gmra.mxu3 %vm318_vm1, %v6161_v10  ;;  %v8255_v15 = vld [vmem:[%s6694_s6 + $0x1aa] sm:$0xff] }
 0x3aa   : > { %6357 = vmatmul.msk.f32.gmra.mxu0 %vm318_vm1, %v8223_v28  ;;  %5279 = vst.msk [vmem:[%s8110_s5 + $0x10] sm:$0xff] %vm5004_vm2, %v5263_v53  ;;  %v4892_v40 = vadd.f32 %v7980_v18, %v4824_v4 }
 0x3ab   : > { %v3599_v27 = vpop.f32.mrf.mxu2 }
 0x3ac   : > { %v4956_v16 = vmax.f32 %v4892_v40, 0.0  ;;  %v3757_v57 = vadd.f32 %v3599_v27, %v3220_v59  ;;  %v4133_v9 = vpop.f32.mrf.mxu3  ;;  %v3065_v33 = vpop.f32.mrf.mxu1 }
 0x3ad   : > { %v5109_v21 = vld [vmem:[#allocation2 + $0x78] sm:$0xff]  ;;  %v3221_v48 = vadd.f32 %v3065_v33, %v7389_v1 }
 0x3ae   : > { %v5141_v25 = vmax.f32 %v5076_v51, %v5109_v21  ;;  %5021 = vst.msk [vmem:[#allocation2 + $0x80] sm:$0xff] %vm5004_vm2, %v4956_v16  ;;  %v4291_v2 = vadd.f32 %v4133_v9, %v3757_v57  ;;  %v6164_v9 = vld [vmem:[%s6694_s6 + $0x1b9] sm:$0xff] }
 0x3af   : > { %v4670_v17 = vpop.f32.mrf.mxu0  ;;  %5966 = vmatmul.msk.f32.gmra.mxu1 %vm318_vm1, %v8179_v42  ;;  %v8271_v21 = vld [vmem:[%s6694_s6 + $0x1ba] sm:$0xff] }
 0x3b0   : > { %5173 = vst.msk [vmem:[#allocation3 + $0x38] sm:$0xff] %vm5004_vm2, %v5141_v25  ;;  %v4825_v37 = vadd.f32 %v4667_v22, %v4291_v2  ;;  %6098 = vmatmul.msk.f32.gmra.mxu2 %vm318_vm1, %v6032_v61 }
 0x3b1   : > { %6228 = vmatmul.msk.f32.gmra.mxu3 %vm318_vm1, %v6162_v49 }
 0x3b2   : > { %6358 = vmatmul.msk.f32.gmra.mxu0 %vm318_vm1, %v8240_v41  ;;  %v4893_v38 = vadd.f32 %v7980_v18, %v4825_v37 }
 0x3b3   : > { %v3602_v24 = vpop.f32.mrf.mxu2 }
 0x3b4   : > { %v4957_v7 = vmax.f32 %v4893_v38, 0.0  ;;  %v3758_v50 = vadd.f32 %v3602_v24, %v3221_v48  ;;  %v4136_v0 = vpop.f32.mrf.mxu3  ;;  %v3068_v36 = vpop.f32.mrf.mxu1  ;;  %v6035_v48 = vld [vmem:[%s6694_s6 + $0x1c0] sm:$0xff] }
 0x3b5   : > { %v3222_v32 = vadd.f32 %v3068_v36, %v7403_v6  ;;  %v6165_v38 = vld [vmem:[%s6694_s6 + $0x1c1] sm:$0xff] }
 0x3b6   : > { %5022 = vst.msk [vmem:[#allocation2 + $0x88] sm:$0xff] %vm5004_vm2, %v4957_v7  ;;  %v4292_v42 = vadd.f32 %v4136_v0, %v3758_v50  ;;  %v8285_v7 = vld [vmem:[%s6694_s6 + $0x1c2] sm:$0xff] }
 0x3b7   : > { %v4673_v3 = vpop.f32.mrf.mxu0  ;;  %v5204_v10 = vld [vmem:[#allocation3 + $0x30] ss:$2 sm:$0xff]  ;;  %v5236_v22 = vld [vmem:[#allocation3 + $0x31] ss:$2 sm:$0xff]  ;;  %5967 = vmatmul.msk.f32.gmra.mxu1 %vm318_vm1, %v8193_v35 }
 0x3b8   : > { %v5264_v1 = vmax.f32 %v5204_v10, %v5236_v22  ;;  %v4826_v44 = vadd.f32 %v4670_v17, %v4292_v42  ;;  %6099 = vmatmul.msk.f32.gmra.mxu2 %vm318_vm1, %v6033_v29  ;;  %v6034_v35 = vld [vmem:[%s6694_s6 + $0x1b8] sm:$0xff]  ;;  %v6036_v10 = vld [vmem:[%s6694_s6 + $0x1c8] sm:$0xff] }
 0x3b9   : > { %6229 = vmatmul.msk.f32.gmra.mxu3 %vm318_vm1, %v6163_v5  ;;  %v6166_v22 = vld [vmem:[%s6694_s6 + $0x1c9] sm:$0xff] }
 0x3ba   : > { %6359 = vmatmul.msk.f32.gmra.mxu0 %vm318_vm1, %v8255_v15  ;;  %5280 = vst.msk [vmem:[%s8110_s5 + $0x18] sm:$0xff] %vm5004_vm2, %v5264_v1  ;;  %v4894_v53 = vadd.f32 %v7980_v18, %v4826_v44  ;;  %v8299_v44 = vld [vmem:[%s6694_s6 + $0x1ca] sm:$0xff] }
 0x3bb   : > { %v3605_v4 = vpop.f32.mrf.mxu2 }
 0x3bc   : > { %v4958_v59 = vmax.f32 %v4894_v53, 0.0  ;;  %v3759_v40 = vadd.f32 %v3605_v4, %v3222_v32  ;;  %v4139_v27 = vpop.f32.mrf.mxu3  ;;  %v3071_v16 = vpop.f32.mrf.mxu1 }
 0x3bd   : > { %v3223_v6 = vadd.f32 %v3071_v16, %v7417_v19  ;;  %v5077_v16 = vld [vmem:[#allocation2 + $0x80] sm:$0xff] }
 0x3be   : > { %5023 = vst.msk [vmem:[#allocation2 + $0x90] sm:$0xff] %vm5004_vm2, %v4958_v59  ;;  %v4293_v57 = vadd.f32 %v4139_v27, %v3759_v40 }
 0x3bf   : > { %v4676_v51 = vpop.f32.mrf.mxu0  ;;  %5968 = vmatmul.msk.f32.gmra.mxu1 %vm318_vm1, %v8208_v30 }
 0x3c0   : > { %v4827_v33 = vadd.f32 %v4673_v3, %v4293_v57  ;;  %6100 = vmatmul.msk.f32.gmra.mxu2 %vm318_vm1, %v6034_v35  ;;  %v6037_v57 = vld [vmem:[%s6694_s6 + $0x1d0] sm:$0xff] }
 0x3c1   : > { %6230 = vmatmul.msk.f32.gmra.mxu3 %vm318_vm1, %v6164_v9 }
 0x3c2   : > { %6360 = vmatmul.msk.f32.gmra.mxu0 %vm318_vm1, %v8271_v21  ;;  %v4895_v61 = vadd.f32 %v7980_v18, %v4827_v33  ;;  %v6167_v33 = vld [vmem:[%s6694_s6 + $0x1d1] sm:$0xff] }
 0x3c3   : > { %v3608_v25 = vpop.f32.mrf.mxu2 }
 0x3c4   : > { %v4959_v2 = vmax.f32 %v4895_v61, 0.0  ;;  %v3760_v49 = vadd.f32 %v3608_v25, %v3223_v6  ;;  %v4142_v17 = vpop.f32.mrf.mxu3  ;;  %v3074_v37 = vpop.f32.mrf.mxu1  ;;  %v8313_v61 = vld [vmem:[%s6694_s6 + $0x1d2] sm:$0xff] }
 0x3c5   : > { %v3224_v19 = vadd.f32 %v3074_v37, %v7431_v63 }
 0x3c6   : > { %5024 = vst.msk [vmem:[#allocation2 + $0x98] sm:$0xff] %vm5004_vm2, %v4959_v2  ;;  %v4294_v30 = vadd.f32 %v4142_v17, %v3760_v49 }
 0x3c7   : > { %v4679_v24 = vpop.f32.mrf.mxu0  ;;  %5969 = vmatmul.msk.f32.gmra.mxu1 %vm318_vm1, %v8223_v28 }
 0x3c8   : > { %v4828_v50 = vadd.f32 %v4676_v51, %v4294_v30  ;;  %6101 = vmatmul.msk.f32.gmra.mxu2 %vm318_vm1, %v6035_v48  ;;  %v5078_v30 = vld [vmem:[#allocation2 + $0x88] sm:$0xff] }
 0x3c9   : > { %6231 = vmatmul.msk.f32.gmra.mxu3 %vm318_vm1, %v6165_v38 }
 0x3ca   : > { %6361 = vmatmul.msk.f32.gmra.mxu0 %vm318_vm1, %v8285_v7  ;;  %v4896_v0 = vadd.f32 %v7980_v18, %v4828_v50 }
 0x3cb   : > { %v3611_v36 = vpop.f32.mrf.mxu2 }
 0x3cc   : > { %v4960_v29 = vmax.f32 %v4896_v0, 0.0  ;;  %v3761_v42 = vadd.f32 %v3611_v36, %v3224_v19  ;;  %v4145_v5 = vpop.f32.mrf.mxu3  ;;  %v3077_v3 = vpop.f32.mrf.mxu1  ;;  %v6168_v0 = vld [vmem:[%s6694_s6 + $0x1e1] sm:$0xff] }
 0x3cd   : > { %v3225_v63 = vadd.f32 %v3077_v3, %v7445_v56 }
 0x3ce   : > { %5025 = vst.msk [vmem:[#allocation2 + $0xa0] sm:$0xff] %vm5004_vm2, %v4960_v29  ;;  %v4295_v28 = vadd.f32 %v4145_v5, %v3761_v42  ;;  %v8328_v29 = vld [vmem:[%s6694_s6 + $0x1e2] sm:$0xff] }
 0x3cf   : > { %v4682_v1 = vpop.f32.mrf.mxu0  ;;  %5970 = vmatmul.msk.f32.gmra.mxu1 %vm318_vm1, %v8240_v41 }
 0x3d0   : > { %v4829_v32 = vadd.f32 %v4679_v24, %v4295_v28  ;;  %6102 = vmatmul.msk.f32.gmra.mxu2 %vm318_vm1, %v6036_v10  ;;  %v6038_v24 = vld [vmem:[%s6694_s6 + $0x1e0] sm:$0xff] }
 0x3d1   : > { %6232 = vmatmul.msk.f32.gmra.mxu3 %vm318_vm1, %v6166_v22 }
 0x3d2   : > { %6362 = vmatmul.msk.f32.gmra.mxu0 %vm318_vm1, %v8299_v44  ;;  %v4897_v53 = vadd.f32 %v7980_v18, %v4829_v32 }
 0x3d3   : > { %v3614_v4 = vpop.f32.mrf.mxu2 }
 0x3d4   : > { %v4961_v59 = vmax.f32 %v4897_v53, 0.0  ;;  %v3762_v40 = vadd.f32 %v3614_v4, %v3225_v63  ;;  %v4148_v27 = vpop.f32.mrf.mxu3  ;;  %v3080_v41 = vpop.f32.mrf.mxu1  ;;  %v6039_v63 = vld [vmem:[%s6694_s6 + $0x1e8] sm:$0xff] }
 0x3d5   : > { %v5110_v35 = vld [vmem:[#allocation2 + $0xa0] sm:$0xff]  ;;  %v3226_v25 = vadd.f32 %v3080_v41, %v7459_v52 }
 0x3d6   : > { %v5142_v9 = vmax.f32 %v5077_v16, %v5110_v35  ;;  %5026 = vst.msk [vmem:[#allocation2 + $0xa8] sm:$0xff] %vm5004_vm2, %v4961_v59  ;;  %v4296_v51 = vadd.f32 %v4148_v27, %v3762_v40  ;;  %v6169_v59 = vld [vmem:[%s6694_s6 + $0x1e9] sm:$0xff] }
 0x3d7   : > { %v4685_v6 = vpop.f32.mrf.mxu0  ;;  %5971 = vmatmul.msk.f32.gmra.mxu1 %vm318_vm1, %v8255_v15  ;;  %v8343_v27 = vld [vmem:[%s6694_s6 + $0x1ea] sm:$0xff] }
 0x3d8   : > { %5174 = vst.msk [vmem:[#allocation3 + $0x40] sm:$0xff] %vm5004_vm2, %v5142_v9  ;;  %v4830_v56 = vadd.f32 %v4682_v1, %v4296_v51  ;;  %6103 = vmatmul.msk.f32.gmra.mxu2 %vm318_vm1, %v6037_v57  ;;  %v5079_v1 = vld [vmem:[#allocation2 + $0x90] sm:$0xff] }
 0x3d9   : > { %6233 = vmatmul.msk.f32.gmra.mxu3 %vm318_vm1, %v6167_v33 }
 0x3da   : > { %6363 = vmatmul.msk.f32.gmra.mxu0 %vm318_vm1, %v8313_v61  ;;  %v4898_v2 = vadd.f32 %v7980_v18, %v4830_v56 }
 0x3db   : > { %v3617_v49 = vpop.f32.mrf.mxu2 }
 0x3dc   : > { %v4962_v17 = vmax.f32 %v4898_v2, 0.0  ;;  %v3763_v37 = vadd.f32 %v3617_v49, %v3226_v25  ;;  %v4151_v48 = vpop.f32.mrf.mxu3  ;;  %v3083_v15 = vpop.f32.mrf.mxu1  ;;  %v6040_v49 = vld [vmem:[%s6694_s6 + $0x1f0] sm:$0xff] }
 0x3dd   : > { %v5111_v38 = vld [vmem:[#allocation2 + $0xa8] sm:$0xff]  ;;  %v3227_v42 = vadd.f32 %v3083_v15, %v7473_v11  ;;  %v8373_v15 = vld [vmem:[%s8804_s2] ss:$0 sm:$0xff] }
 0x3de   : > { %v5143_v50 = vmax.f32 %v5078_v30, %v5111_v38  ;;  %5027 = vst.msk [vmem:[#allocation2 + $0xb0] sm:$0xff] %vm5004_vm2, %v4962_v17  ;;  %v4297_v19 = vadd.f32 %v4151_v48, %v3763_v37  ;;  %v6170_v48 = vld [vmem:[%s6694_s6 + $0x1f1] sm:$0xff] }
 0x3df   : > { %v4688_v36 = vpop.f32.mrf.mxu0  ;;  %5972 = vmatmul.msk.f32.gmra.mxu1 %vm318_vm1, %v8271_v21  ;;  %v8360_v38 = vld [vmem:[%s6694_s6 + $0x1f2] sm:$0xff] }
 0x3e0   : > { %5175 = vst.msk [vmem:[#allocation3 + $0x48] sm:$0xff] %vm5004_vm2, %v5143_v50  ;;  %v4831_v52 = vadd.f32 %v4685_v6, %v4297_v19  ;;  %6104 = vmatmul.msk.f32.gmra.mxu2 %vm318_vm1, %v6038_v24 }
 0x3e1   : > { %6234 = vmatmul.msk.f32.gmra.mxu3 %vm318_vm1, %v6168_v0 }
 0x3e2   : > { %6364 = vmatmul.msk.f32.gmra.mxu0 %vm318_vm1, %v8328_v29  ;;  %v4899_v5 = vadd.f32 %v7980_v18, %v4831_v52  ;;  %v6041_v52 = vld [vmem:[%s6694_s6 + $0x1f8] sm:$0xff] }
 0x3e3   : > { %v3620_v3 = vpop.f32.mrf.mxu2 }
 0x3e4   : > { %v4963_v10 = vmax.f32 %v4899_v5, 0.0  ;;  %v3764_v28 = vadd.f32 %v3620_v3, %v3227_v42  ;;  %v4154_v22 = vpop.f32.mrf.mxu3  ;;  %v3086_v21 = vpop.f32.mrf.mxu1  ;;  %v6171_v5 = vld [vmem:[%s6694_s6 + $0x1f9] sm:$0xff] }
 0x3e5   : > { %v5112_v32 = vld [vmem:[#allocation2 + $0xb0] sm:$0xff]  ;;  %v3228_v57 = vadd.f32 %v3086_v21, %v7487_v20 }
 0x3e6   : > { %v5144_v53 = vmax.f32 %v5079_v1, %v5112_v32  ;;  %5028 = vst.msk [vmem:[#allocation2 + $0xb8] sm:$0xff] %vm5004_vm2, %v4963_v10  ;;  %v4298_v4 = vadd.f32 %v4154_v22, %v3764_v28 }
 0x3e7   : > { %v4691_v40 = vpop.f32.mrf.mxu0  ;;  %v5206_v11 = vld [vmem:[#allocation3 + $0x40] ss:$2 sm:$0xff]  ;;  %v5238_v16 = vld [vmem:[#allocation3 + $0x41] ss:$2 sm:$0xff]  ;;  %5973 = vmatmul.msk.f32.gmra.mxu1 %vm318_vm1, %v8285_v7  ;;  %v5080_v7 = vld [vmem:[#allocation2 + $0x98] sm:$0xff] }
 0x3e8   : > { %v5265_v35 = vmax.f32 %v5206_v11, %v5238_v16  ;;  %5176 = vst.msk [vmem:[#allocation3 + $0x50] sm:$0xff] %vm5004_vm2, %v5144_v53  ;;  %v4832_v41 = vadd.f32 %v4688_v36, %v4298_v4  ;;  %6105 = vmatmul.msk.f32.gmra.mxu2 %vm318_vm1, %v6039_v63  ;;  %v6172_v16 = vld [vmem:[%s6694_s6 + $0x209] sm:$0xff] }
 0x3e9   : > { %6235 = vmatmul.msk.f32.gmra.mxu3 %vm318_vm1, %v6169_v59 }
 0x3ea   : > { %6365 = vmatmul.msk.f32.gmra.mxu0 %vm318_vm1, %v8343_v27  ;;  %5281 = vst.msk [vmem:[%s8110_s5 + $0x20] sm:$0xff] %vm5004_vm2, %v5265_v35  ;;  %v4900_v9 = vadd.f32 %v7980_v18, %v4832_v41  ;;  %v8396_v41 = vld [vmem:[%s6694_s6 + $0x20a] sm:$0xff] }
 0x3eb   : > { %v3623_v51 = vpop.f32.mrf.mxu2 }
 0x3ec   : > { %v4964_v33 = vmax.f32 %v4900_v9, 0.0  ;;  %v3765_v6 = vadd.f32 %v3623_v51, %v3228_v57  ;;  %v4157_v56 = vpop.f32.mrf.mxu3  ;;  %v3089_v2 = vpop.f32.mrf.mxu1 }
 0x3ed   : > { %v5113_v25 = vld [vmem:[#allocation2 + $0xb8] sm:$0xff]  ;;  %v3229_v18 = vadd.f32 %v3089_v2, %v7501_v31 }
 0x3ee   : > { %v5145_v17 = vmax.f32 %v5080_v7, %v5113_v25  ;;  %5029 = vst.msk [vmem:[#allocation2 + $0xc0] sm:$0xff] %vm5004_vm2, %v4964_v33  ;;  %v4299_v37 = vadd.f32 %v4157_v56, %v3765_v6  ;;  %v8380_v31 = vld [vmem:[%s6694_s6 + $0x1fa] sm:$0xff]  ;;  %v6043_v25 = vld [vmem:[%s6694_s6 + $0x210] sm:$0xff] }
 0x3ef   : > { %v4694_v30 = vpop.f32.mrf.mxu0  ;;  %5974 = vmatmul.msk.f32.gmra.mxu1 %vm318_vm1, %v8299_v44  ;;  %v6173_v2 = vld [vmem:[%s6694_s6 + $0x211] sm:$0xff] }
 0x3f0   : > { %5177 = vst.msk [vmem:[#allocation3 + $0x58] sm:$0xff] %vm5004_vm2, %v5145_v17  ;;  %v4833_v20 = vadd.f32 %v4691_v40, %v4299_v37  ;;  %6106 = vmatmul.msk.f32.gmra.mxu2 %vm318_vm1, %v6040_v49  ;;  %v8410_v17 = vld [vmem:[%s6694_s6 + $0x212] sm:$0xff] }
 0x3f1   : > { %6236 = vmatmul.msk.f32.gmra.mxu3 %vm318_vm1, %v6170_v48 }
 0x3f2   : > { %6366 = vmatmul.msk.f32.gmra.mxu0 %vm318_vm1, %v8360_v38  ;;  %v4901_v24 = vadd.f32 %v8373_v15, %v4833_v20 }
 0x3f3   : > { %v3626_v50 = vpop.f32.mrf.mxu2 }
 0x3f4   : > { %v4965_v19 = vmax.f32 %v4901_v24, 0.0  ;;  %v3766_v44 = vadd.f32 %v3626_v50, %v3229_v18  ;;  %v4160_v0 = vpop.f32.mrf.mxu3  ;;  %v3092_v36 = vpop.f32.mrf.mxu1 }
 0x3f5   : > { %v3230_v32 = vadd.f32 %v3092_v36, %v7515_v43  ;;  %v8424_v36 = vld [vmem:[%s6694_s6 + $0x21a] sm:$0xff] }
 0x3f6   : > { %5030 = vst.msk [vmem:[#allocation2 + $0xc8] sm:$0xff] %vm5004_vm2, %v4965_v19  ;;  %v4300_v42 = vadd.f32 %v4160_v0, %v3766_v44  ;;  %v6044_v19 = vld [vmem:[%s6694_s6 + $0x218] sm:$0xff] }
 0x3f7   : > { %v4697_v3 = vpop.f32.mrf.mxu0  ;;  %v5208_v10 = vld [vmem:[#allocation3 + $0x50] ss:$2 sm:$0xff]  ;;  %v5240_v28 = vld [vmem:[#allocation3 + $0x51] ss:$2 sm:$0xff]  ;;  %5975 = vmatmul.msk.f32.gmra.mxu1 %vm318_vm1, %v8313_v61  ;;  %v6042_v61 = vld [vmem:[%s6694_s6 + $0x208] sm:$0xff] }
 0x3f8   : > { %v5266_v22 = vmax.f32 %v5208_v10, %v5240_v28  ;;  %v4834_v1 = vadd.f32 %v4694_v30, %v4300_v42  ;;  %6107 = vmatmul.msk.f32.gmra.mxu2 %vm318_vm1, %v6041_v52  ;;  %v6174_v44 = vld [vmem:[%s6694_s6 + $0x219] sm:$0xff] }
 0x3f9   : > { %6237 = vmatmul.msk.f32.gmra.mxu3 %vm318_vm1, %v6171_v5 }
 0x3fa   : > { %6367 = vmatmul.msk.f32.gmra.mxu0 %vm318_vm1, %v8380_v31  ;;  %5282 = vst.msk [vmem:[%s8110_s5 + $0x28] sm:$0xff] %vm5004_vm2, %v5266_v22  ;;  %v4902_v21 = vadd.f32 %v8373_v15, %v4834_v1  ;;  %v5081_v22 = vld [vmem:[#allocation2 + $0xc0] sm:$0xff] }
 0x3fb   : > { %v3629_v63 = vpop.f32.mrf.mxu2 }
 0x3fc   : > { %v4966_v53 = vmax.f32 %v4902_v21, 0.0  ;;  %v3767_v4 = vadd.f32 %v3629_v63, %v3230_v32  ;;  %v4163_v59 = vpop.f32.mrf.mxu3  ;;  %v3095_v40 = vpop.f32.mrf.mxu1  ;;  %v6045_v32 = vld [vmem:[%s6694_s6 + $0x220] sm:$0xff] }
 0x3fd   : > { %v3231_v43 = vadd.f32 %v3095_v40, %v7529_v55 }
 0x3fe   : > { %5031 = vst.msk [vmem:[#allocation2 + $0xd0] sm:$0xff] %vm5004_vm2, %v4966_v53  ;;  %v4301_v11 = vadd.f32 %v4163_v59, %v3767_v4  ;;  %v6175_v53 = vld [vmem:[%s6694_s6 + $0x221] sm:$0xff] }
 0x3ff   : > { %v4700_v35 = vpop.f32.mrf.mxu0  ;;  %5976 = vmatmul.msk.f32.gmra.mxu1 %vm318_vm1, %v8328_v29  ;;  %v8438_v59 = vld [vmem:[%s6694_s6 + $0x222] sm:$0xff] }
 0x400   : > { %v4835_v57 = vadd.f32 %v4697_v3, %v4301_v11  ;;  %6108 = vmatmul.msk.f32.gmra.mxu2 %vm318_vm1, %v6042_v61 }
 0x401   : > { %6238 = vmatmul.msk.f32.gmra.mxu3 %vm318_vm1, %v6172_v16 }
 0x402   : > { %6368 = vmatmul.msk.f32.gmra.mxu0 %vm318_vm1, %v8396_v41  ;;  %v4903_v9 = vadd.f32 %v8373_v15, %v4835_v57 }
 0x403   : > { %v3632_v51 = vpop.f32.mrf.mxu2 }
 0x404   : > { %v4967_v33 = vmax.f32 %v4903_v9, 0.0  ;;  %v3768_v6 = vadd.f32 %v3632_v51, %v3231_v43  ;;  %v4166_v56 = vpop.f32.mrf.mxu3  ;;  %v3098_v7 = vpop.f32.mrf.mxu1  ;;  %v5082_v43 = vld [vmem:[#allocation2 + $0xc8] sm:$0xff]  ;;  %v6046_v51 = vld [vmem:[%s6694_s6 + $0x230] sm:$0xff] }
 0x405   : > { %v3232_v55 = vadd.f32 %v3098_v7, %v7543_v62 }
 0x406   : > { %5032 = vst.msk [vmem:[#allocation2 + $0xd8] sm:$0xff] %vm5004_vm2, %v4967_v33  ;;  %v4302_v29 = vadd.f32 %v4166_v56, %v3768_v6  ;;  %v6176_v56 = vld [vmem:[%s6694_s6 + $0x231] sm:$0xff] }
 0x407   : > { %v4703_v49 = vpop.f32.mrf.mxu0  ;;  %5977 = vmatmul.msk.f32.gmra.mxu1 %vm318_vm1, %v8343_v27 }
 0x408   : > { %v4836_v37 = vadd.f32 %v4700_v35, %v4302_v29  ;;  %6109 = vmatmul.msk.f32.gmra.mxu2 %vm318_vm1, %v6043_v25  ;;  %v8453_v25 = vld [vmem:[%s6694_s6 + $0x232] sm:$0xff] }
 0x409   : > { %6239 = vmatmul.msk.f32.gmra.mxu3 %vm318_vm1, %v6173_v2 }
 0x40a   : > { %6369 = vmatmul.msk.f32.gmra.mxu0 %vm318_vm1, %v8410_v17  ;;  %v4904_v48 = vadd.f32 %v8373_v15, %v4836_v37 }
 0x40b   : > { %v3635_v30 = vpop.f32.mrf.mxu2 }
 0x40c   : > { %v4968_v20 = vmax.f32 %v4904_v48, 0.0  ;;  %v3769_v18 = vadd.f32 %v3635_v30, %v3232_v55  ;;  %v4169_v24 = vpop.f32.mrf.mxu3  ;;  %v3101_v50 = vpop.f32.mrf.mxu1  ;;  %v5083_v30 = vld [vmem:[#allocation2 + $0xd0] sm:$0xff] }
 0x40d   : > { %v3233_v62 = vadd.f32 %v3101_v50, %v7557_v8 }
 0x40e   : > { %5033 = vst.msk [vmem:[#allocation2 + $0xe0] sm:$0xff] %vm5004_vm2, %v4968_v20  ;;  %v4303_v27 = vadd.f32 %v4169_v24, %v3769_v18  ;;  %v6047_v18 = vld [vmem:[%s6694_s6 + $0x238] sm:$0xff] }
 0x40f   : > { %v4706_v0 = vpop.f32.mrf.mxu0  ;;  %5978 = vmatmul.msk.f32.gmra.mxu1 %vm318_vm1, %v8360_v38 }
 0x410   : > { %v4837_v52 = vadd.f32 %v4703_v49, %v4303_v27  ;;  %6110 = vmatmul.msk.f32.gmra.mxu2 %vm318_vm1, %v6044_v19  ;;  %v6177_v19 = vld [vmem:[%s6694_s6 + $0x239] sm:$0xff] }
 0x411   : > { %6240 = vmatmul.msk.f32.gmra.mxu3 %vm318_vm1, %v6174_v44  ;;  %v8468_v44 = vld [vmem:[%s6694_s6 + $0x23a] sm:$0xff] }
 0x412   : > { %6370 = vmatmul.msk.f32.gmra.mxu0 %vm318_vm1, %v8424_v36  ;;  %v4905_v42 = vadd.f32 %v8373_v15, %v4837_v52 }
 0x413   : > { %v3638_v5 = vpop.f32.mrf.mxu2 }
 0x414   : > { %v4969_v3 = vmax.f32 %v4905_v42, 0.0  ;;  %v3770_v10 = vadd.f32 %v3638_v5, %v3233_v62  ;;  %v4172_v28 = vpop.f32.mrf.mxu3  ;;  %v3104_v38 = vpop.f32.mrf.mxu1 }
 0x415   : > { %v5114_v1 = vld [vmem:[#allocation2 + $0xe0] sm:$0xff]  ;;  %v3234_v40 = vadd.f32 %v3104_v38, %v7571_v23 }
 0x416   : > { %v5146_v21 = vmax.f32 %v5081_v22, %v5114_v1  ;;  %5034 = vst.msk [vmem:[#allocation2 + $0xe8] sm:$0xff] %vm5004_vm2, %v4969_v3  ;;  %v4304_v63 = vadd.f32 %v4172_v28, %v3770_v10 }
 0x417   : > { %v4709_v4 = vpop.f32.mrf.mxu0  ;;  %5979 = vmatmul.msk.f32.gmra.mxu1 %vm318_vm1, %v8380_v31 }
 0x418   : > { %5178 = vst.msk [vmem:[#allocation3 + $0x60] sm:$0xff] %vm5004_vm2, %v5146_v21  ;;  %v4838_v8 = vadd.f32 %v4706_v0, %v4304_v63  ;;  %6111 = vmatmul.msk.f32.gmra.mxu2 %vm318_vm1, %v6045_v32  ;;  %v6048_v32 = vld [vmem:[%s6694_s6 + $0x240] sm:$0xff] }
 0x419   : > { %6241 = vmatmul.msk.f32.gmra.mxu3 %vm318_vm1, %v6175_v53  ;;  %v6178_v53 = vld [vmem:[%s6694_s6 + $0x241] sm:$0xff] }
 0x41a   : > { %6371 = vmatmul.msk.f32.gmra.mxu0 %vm318_vm1, %v8438_v59  ;;  %v4906_v61 = vadd.f32 %v8373_v15, %v4838_v8  ;;  %v8485_v8 = vld [vmem:[%s6694_s6 + $0x242] sm:$0xff] }
 0x41b   : > { %v3641_v11 = vpop.f32.mrf.mxu2 }
 0x41c   : > { %v4970_v16 = vmax.f32 %v4906_v61, 0.0  ;;  %v3771_v35 = vadd.f32 %v3641_v11, %v3234_v40  ;;  %v4175_v57 = vpop.f32.mrf.mxu3  ;;  %v3107_v31 = vpop.f32.mrf.mxu1 }
 0x41d   : > { %v5115_v9 = vld [vmem:[#allocation2 + $0xe8] sm:$0xff]  ;;  %v3235_v29 = vadd.f32 %v3107_v31, %v7585_v46 }
 0x41e   : > { %v5147_v33 = vmax.f32 %v5082_v43, %v5115_v9  ;;  %5035 = vst.msk [vmem:[#allocation2 + $0xf0] sm:$0xff] %vm5004_vm2, %v4970_v16  ;;  %v4305_v6 = vadd.f32 %v4175_v57, %v3771_v35  ;;  %v6049_v9 = vld [vmem:[%s6694_s6 + $0x248] sm:$0xff] }
 0x41f   : > { %v4712_v7 = vpop.f32.mrf.mxu0  ;;  %5980 = vmatmul.msk.f32.gmra.mxu1 %vm318_vm1, %v8396_v41  ;;  %v6179_v31 = vld [vmem:[%s6694_s6 + $0x249] sm:$0xff] }
 0x420   : > { %5179 = vst.msk [vmem:[#allocation3 + $0x68] sm:$0xff] %vm5004_vm2, %v5147_v33  ;;  %v4839_v23 = vadd.f32 %v4709_v4, %v4305_v6  ;;  %6112 = vmatmul.msk.f32.gmra.mxu2 %vm318_vm1, %v6046_v51  ;;  %v8500_v33 = vld [vmem:[%s6694_s6 + $0x24a] sm:$0xff] }
 0x421   : > { %6242 = vmatmul.msk.f32.gmra.mxu3 %vm318_vm1, %v6176_v56 }
 0x422   : > { %6372 = vmatmul.msk.f32.gmra.mxu0 %vm318_vm1, %v8453_v25  ;;  %v4907_v2 = vadd.f32 %v8373_v15, %v4839_v23 }
 0x423   : > { %v3644_v49 = vpop.f32.mrf.mxu2 }
 0x424   : > { %v4971_v37 = vmax.f32 %v4907_v2, 0.0  ;;  %v3772_v55 = vadd.f32 %v3644_v49, %v3235_v29  ;;  %v4178_v48 = vpop.f32.mrf.mxu3  ;;  %v3110_v41 = vpop.f32.mrf.mxu1 }
 0x425   : > { %v5116_v20 = vld [vmem:[#allocation2 + $0xf0] sm:$0xff]  ;;  %v3236_v42 = vadd.f32 %v3110_v41, %v7599_v12 }
 0x426   : > { %v5148_v24 = vmax.f32 %v5083_v30, %v5116_v20  ;;  %5036 = vst.msk [vmem:[#allocation2 + $0xf8] sm:$0xff] %vm5004_vm2, %v4971_v37  ;;  %v4306_v50 = vadd.f32 %v4178_v48, %v3772_v55  ;;  %v6180_v20 = vld [vmem:[%s6694_s6 + $0x259] sm:$0xff] }
 0x427   : > { %v4715_v27 = vpop.f32.mrf.mxu0  ;;  %v5210_v46 = vld [vmem:[#allocation3 + $0x60] ss:$2 sm:$0xff]  ;;  %v5242_v0 = vld [vmem:[#allocation3 + $0x61] ss:$2 sm:$0xff]  ;;  %5981 = vmatmul.msk.f32.gmra.mxu1 %vm318_vm1, %v8410_v17  ;;  %v5084_v17 = vld [vmem:[#allocation2 + $0xd8] sm:$0xff] }
 0x428   : > { %v5267_v52 = vmax.f32 %v5210_v46, %v5242_v0  ;;  %5180 = vst.msk [vmem:[#allocation3 + $0x70] sm:$0xff] %vm5004_vm2, %v5148_v24  ;;  %v4840_v62 = vadd.f32 %v4712_v7, %v4306_v50  ;;  %6113 = vmatmul.msk.f32.gmra.mxu2 %vm318_vm1, %v6047_v18  ;;  %v8516_v18 = vld [vmem:[%s6694_s6 + $0x25a] sm:$0xff] }
 0x429   : > { %6243 = vmatmul.msk.f32.gmra.mxu3 %vm318_vm1, %v6177_v19 }
 0x42a   : > { %6373 = vmatmul.msk.f32.gmra.mxu0 %vm318_vm1, %v8468_v44  ;;  %5283 = vst.msk [vmem:[%s8110_s5 + $0x30] sm:$0xff] %vm5004_vm2, %v5267_v52  ;;  %v4908_v5 = vadd.f32 %v8373_v15, %v4840_v62  ;;  %v6051_v62 = vld [vmem:[%s6694_s6 + $0x260] sm:$0xff] }
 0x42b   : > { %v3647_v3 = vpop.f32.mrf.mxu2 }
 0x42c   : > { %v4972_v10 = vmax.f32 %v4908_v5, 0.0  ;;  %v3773_v28 = vadd.f32 %v3647_v3, %v3236_v42  ;;  %v4181_v22 = vpop.f32.mrf.mxu3  ;;  %v3113_v38 = vpop.f32.mrf.mxu1  ;;  %v6181_v42 = vld [vmem:[%s6694_s6 + $0x261] sm:$0xff] }
 0x42d   : > { %v5117_v1 = vld [vmem:[#allocation2 + $0xf8] sm:$0xff]  ;;  %v3237_v40 = vadd.f32 %v3113_v38, %v7613_v47  ;;  %v8530_v3 = vld [vmem:[%s6694_s6 + $0x262] sm:$0xff] }
 0x42e   : > { %v5149_v21 = vmax.f32 %v5084_v17, %v5117_v1  ;;  %5037 = vst.msk [vmem:[#allocation2 + $0x100] sm:$0xff] %vm5004_vm2, %v4972_v10  ;;  %v4307_v63 = vadd.f32 %v4181_v22, %v3773_v28 }
 0x42f   : > { %v4718_v4 = vpop.f32.mrf.mxu0  ;;  %5982 = vmatmul.msk.f32.gmra.mxu1 %vm318_vm1, %v8424_v36 }
 0x430   : > { %5181 = vst.msk [vmem:[#allocation3 + $0x78] sm:$0xff] %vm5004_vm2, %v5149_v21  ;;  %v4841_v12 = vadd.f32 %v4715_v27, %v4307_v63  ;;  %6114 = vmatmul.msk.f32.gmra.mxu2 %vm318_vm1, %v6048_v32  ;;  %v6052_v21 = vld [vmem:[%s6694_s6 + $0x268] sm:$0xff] }
 0x431   : > { %6244 = vmatmul.msk.f32.gmra.mxu3 %vm318_vm1, %v6178_v53  ;;  %v6182_v63 = vld [vmem:[%s6694_s6 + $0x269] sm:$0xff] }
 0x432   : > { %6374 = vmatmul.msk.f32.gmra.mxu0 %vm318_vm1, %v8485_v8  ;;  %v4909_v61 = vadd.f32 %v8373_v15, %v4841_v12 }
 0x433   : > { %v3650_v11 = vpop.f32.mrf.mxu2 }
 0x434   : > { %v4973_v16 = vmax.f32 %v4909_v61, 0.0  ;;  %v3774_v35 = vadd.f32 %v3650_v11, %v3237_v40  ;;  %v4184_v57 = vpop.f32.mrf.mxu3  ;;  %v3116_v43 = vpop.f32.mrf.mxu1 }
 0x435   : > { %v3238_v23 = vadd.f32 %v3116_v43, %v7627_v60 }
 0x436   : > { %5038 = vst.msk [vmem:[#allocation2 + $0x108] sm:$0xff] %vm5004_vm2, %v4973_v16  ;;  %v4308_v36 = vadd.f32 %v4184_v57, %v3774_v35  ;;  %v5085_v57 = vld [vmem:[#allocation2 + $0x100] sm:$0xff] }
 0x437   : > { %v4721_v51 = vpop.f32.mrf.mxu0  ;;  %v5212_v6 = vld [vmem:[#allocation3 + $0x70] ss:$2 sm:$0xff]  ;;  %v5244_v56 = vld [vmem:[#allocation3 + $0x71] ss:$2 sm:$0xff]  ;;  %5983 = vmatmul.msk.f32.gmra.mxu1 %vm318_vm1, %v8438_v59 }
 0x438   : > { %v5268_v47 = vmax.f32 %v5212_v6, %v5244_v56  ;;  %v4842_v7 = vadd.f32 %v4718_v4, %v4308_v36  ;;  %6115 = vmatmul.msk.f32.gmra.mxu2 %vm318_vm1, %v6049_v9  ;;  %v6050_v59 = vld [vmem:[%s6694_s6 + $0x258] sm:$0xff]  ;;  %v8544_v4 = vld [vmem:[%s6694_s6 + $0x26a] sm:$0xff] }
 0x439   : > { %6245 = vmatmul.msk.f32.gmra.mxu3 %vm318_vm1, %v6179_v31  ;;  %v6053_v9 = vld [vmem:[%s6694_s6 + $0x270] sm:$0xff] }
 0x43a   : > { %6375 = vmatmul.msk.f32.gmra.mxu0 %vm318_vm1, %v8500_v33  ;;  %5284 = vst.msk [vmem:[%s8110_s5 + $0x38] sm:$0xff] %vm5004_vm2, %v5268_v47  ;;  %v4910_v29 = vadd.f32 %v8373_v15, %v4842_v7  ;;  %v8558_v56 = vld [vmem:[%s6694_s6 + $0x272] sm:$0xff] }
 0x43b   : > { %v3653_v2 = vpop.f32.mrf.mxu2 }
 0x43c   : > { %v4974_v49 = vmax.f32 %v4910_v29, 0.0  ;;  %v3775_v37 = vadd.f32 %v3653_v2, %v3238_v23  ;;  %v4187_v55 = vpop.f32.mrf.mxu3  ;;  %v3119_v48 = vpop.f32.mrf.mxu1 }
 0x43d   : > { %v3239_v60 = vadd.f32 %v3119_v48, %v7641_v14  ;;  %v6054_v48 = vld [vmem:[%s6694_s6 + $0x280] sm:$0xff] }
 0x43e   : > { %5039 = vst.msk [vmem:[#allocation2 + $0x110] sm:$0xff] %vm5004_vm2, %v4974_v49  ;;  %v4309_v30 = vadd.f32 %v4187_v55, %v3775_v37  ;;  %v5086_v37 = vld [vmem:[#allocation2 + $0x108] sm:$0xff] }
 0x43f   : > { %v4724_v41 = vpop.f32.mrf.mxu0  ;;  %5984 = vmatmul.msk.f32.gmra.mxu1 %vm318_vm1, %v8453_v25 }
 0x440   : > { %v4843_v24 = vadd.f32 %v4721_v51, %v4309_v30  ;;  %6116 = vmatmul.msk.f32.gmra.mxu2 %vm318_vm1, %v6050_v59  ;;  %v6183_v51 = vld [vmem:[%s6694_s6 + $0x271] sm:$0xff] }
 0x441   : > { %6246 = vmatmul.msk.f32.gmra.mxu3 %vm318_vm1, %v6180_v20  ;;  %v6184_v20 = vld [vmem:[%s6694_s6 + $0x281] sm:$0xff] }
 0x442   : > { %6376 = vmatmul.msk.f32.gmra.mxu0 %vm318_vm1, %v8516_v18  ;;  %v4911_v50 = vadd.f32 %v8373_v15, %v4843_v24  ;;  %v8573_v24 = vld [vmem:[%s6694_s6 + $0x282] sm:$0xff] }
 0x443   : > { %v3656_v19 = vpop.f32.mrf.mxu2 }
 0x444   : > { %v4975_v27 = vmax.f32 %v4911_v50, 0.0  ;;  %v3776_v46 = vadd.f32 %v3656_v19, %v3239_v60  ;;  %v4190_v0 = vpop.f32.mrf.mxu3  ;;  %v3122_v52 = vpop.f32.mrf.mxu1 }
 0x445   : > { %v3240_v14 = vadd.f32 %v3122_v52, %v7655_v45  ;;  %v5087_v52 = vld [vmem:[#allocation2 + $0x110] sm:$0xff] }
 0x446   : > { %5040 = vst.msk [vmem:[#allocation2 + $0x118] sm:$0xff] %vm5004_vm2, %v4975_v27  ;;  %v4310_v25 = vadd.f32 %v4190_v0, %v3776_v46 }
 0x447   : > { %v4727_v5 = vpop.f32.mrf.mxu0  ;;  %5985 = vmatmul.msk.f32.gmra.mxu1 %vm318_vm1, %v8468_v44 }
 0x448   : > { %v4844_v10 = vadd.f32 %v4724_v41, %v4310_v25  ;;  %6117 = vmatmul.msk.f32.gmra.mxu2 %vm318_vm1, %v6051_v62  ;;  %v6055_v25 = vld [vmem:[%s6694_s6 + $0x288] sm:$0xff] }
 0x449   : > { %6247 = vmatmul.msk.f32.gmra.mxu3 %vm318_vm1, %v6181_v42 }
 0x44a   : > { %6377 = vmatmul.msk.f32.gmra.mxu0 %vm318_vm1, %v8530_v3  ;;  %v4912_v28 = vadd.f32 %v8373_v15, %v4844_v10  ;;  %v6185_v10 = vld [vmem:[%s6694_s6 + $0x289] sm:$0xff] }
 0x44b   : > { %v3659_v22 = vpop.f32.mrf.mxu2 }
 0x44c   : > { %v4976_v17 = vmax.f32 %v4912_v28, 0.0  ;;  %v3777_v1 = vadd.f32 %v3659_v22, %v3240_v14  ;;  %v4193_v38 = vpop.f32.mrf.mxu3  ;;  %v3125_v32 = vpop.f32.mrf.mxu1  ;;  %v8588_v28 = vld [vmem:[%s6694_s6 + $0x28a] sm:$0xff] }
 0x44d   : > { %v3241_v45 = vadd.f32 %v3125_v32, %v7669_v34 }
 0x44e   : > { %5041 = vst.msk [vmem:[#allocation2 + $0x120] sm:$0xff] %vm5004_vm2, %v4976_v17  ;;  %v4311_v44 = vadd.f32 %v4193_v38, %v3777_v1 }
 0x44f   : > { %v4730_v53 = vpop.f32.mrf.mxu0  ;;  %5986 = vmatmul.msk.f32.gmra.mxu1 %vm318_vm1, %v8485_v8 }
 0x450   : > { %v4845_v12 = vadd.f32 %v4727_v5, %v4311_v44  ;;  %6118 = vmatmul.msk.f32.gmra.mxu2 %vm318_vm1, %v6052_v21 }
 0x451   : > { %6248 = vmatmul.msk.f32.gmra.mxu3 %vm318_vm1, %v6182_v63 }
 0x452   : > { %6378 = vmatmul.msk.f32.gmra.mxu0 %vm318_vm1, %v8544_v4  ;;  %v4913_v40 = vadd.f32 %v8373_v15, %v4845_v12 }
 0x453   : > { %v3662_v61 = vpop.f32.mrf.mxu2 }
 0x454   : > { %v4977_v11 = vmax.f32 %v4913_v40, 0.0  ;;  %v3778_v16 = vadd.f32 %v3662_v61, %v3241_v45  ;;  %v4196_v35 = vpop.f32.mrf.mxu3  ;;  %v3128_v8 = vpop.f32.mrf.mxu1  ;;  %v6056_v40 = vld [vmem:[%s6694_s6 + $0x290] sm:$0xff] }
 0x455   : > { %v5118_v43 = vld [vmem:[#allocation2 + $0x120] sm:$0xff]  ;;  %v3242_v47 = vadd.f32 %v3128_v8, %v7683_v26 }
 0x456   : > { %v5150_v36 = vmax.f32 %v5085_v57, %v5118_v43  ;;  %5042 = vst.msk [vmem:[#allocation2 + $0x128] sm:$0xff] %vm5004_vm2, %v4977_v11  ;;  %v4312_v31 = vadd.f32 %v4196_v35, %v3778_v16  ;;  %v6186_v16 = vld [vmem:[%s6694_s6 + $0x291] sm:$0xff] }
 0x457   : > { %v4733_v6 = vpop.f32.mrf.mxu0  ;;  %5987 = vmatmul.msk.f32.gmra.mxu1 %vm318_vm1, %v8500_v33  ;;  %v8605_v57 = vld [vmem:[%s6694_s6 + $0x292] sm:$0xff] }
 0x458   : > { %5182 = vst.msk [vmem:[#allocation3 + $0x80] sm:$0xff] %vm5004_vm2, %v5150_v36  ;;  %v4846_v34 = vadd.f32 %v4730_v53, %v4312_v31  ;;  %6119 = vmatmul.msk.f32.gmra.mxu2 %vm318_vm1, %v6053_v9 }
 0x459   : > { %6249 = vmatmul.msk.f32.gmra.mxu3 %vm318_vm1, %v6183_v51 }
 0x45a   : > { %6379 = vmatmul.msk.f32.gmra.mxu0 %vm318_vm1, %v8558_v56  ;;  %v4914_v7 = vadd.f32 %v8373_v15, %v4846_v34  ;;  %v6057_v34 = vld [vmem:[%s6694_s6 + $0x298] sm:$0xff] }
 0x45b   : > { %v3665_v23 = vpop.f32.mrf.mxu2 }
 0x45c   : > { %v4978_v29 = vmax.f32 %v4914_v7, 0.0  ;;  %v3779_v2 = vadd.f32 %v3665_v23, %v3242_v47  ;;  %v4199_v49 = vpop.f32.mrf.mxu3  ;;  %v3131_v33 = vpop.f32.mrf.mxu1  ;;  %v6187_v47 = vld [vmem:[%s6694_s6 + $0x299] sm:$0xff] }
 0x45d   : > { %v5119_v55 = vld [vmem:[#allocation2 + $0x128] sm:$0xff]  ;;  %v3243_v60 = vadd.f32 %v3131_v33, %v7697_v54  ;;  %v8620_v23 = vld [vmem:[%s6694_s6 + $0x29a] sm:$0xff] }
 0x45e   : > { %v5151_v59 = vmax.f32 %v5086_v37, %v5119_v55  ;;  %5043 = vst.msk [vmem:[#allocation2 + $0x130] sm:$0xff] %vm5004_vm2, %v4978_v29  ;;  %v4313_v30 = vadd.f32 %v4199_v49, %v3779_v2 }
 0x45f   : > { %v4736_v41 = vpop.f32.mrf.mxu0  ;;  %5988 = vmatmul.msk.f32.gmra.mxu1 %vm318_vm1, %v8516_v18 }
 0x460   : > { %5183 = vst.msk [vmem:[#allocation3 + $0x88] sm:$0xff] %vm5004_vm2, %v5151_v59  ;;  %v4847_v26 = vadd.f32 %v4733_v6, %v4313_v30  ;;  %6120 = vmatmul.msk.f32.gmra.mxu2 %vm318_vm1, %v6054_v48 }
 0x461   : > { %6250 = vmatmul.msk.f32.gmra.mxu3 %vm318_vm1, %v6184_v20 }
 0x462   : > { %6380 = vmatmul.msk.f32.gmra.mxu0 %vm318_vm1, %v8573_v24  ;;  %v4915_v50 = vadd.f32 %v8373_v15, %v4847_v26  ;;  %v6188_v26 = vld [vmem:[%s6694_s6 + $0x2a9] sm:$0xff] }
 0x463   : > { %v3668_v19 = vpop.f32.mrf.mxu2 }
 0x464   : > { %v4979_v27 = vmax.f32 %v4915_v50, 0.0  ;;  %v3780_v46 = vadd.f32 %v3668_v19, %v3243_v60  ;;  %v4202_v0 = vpop.f32.mrf.mxu3  ;;  %v3134_v18 = vpop.f32.mrf.mxu1  ;;  %v6318_v50 = vld [vmem:[%s6694_s6 + $0x2aa] sm:$0xff] }
 0x465   : > { %v5120_v62 = vld [vmem:[#allocation2 + $0x130] sm:$0xff]  ;;  %v3244_v38 = vadd.f32 %v3134_v18, %v7711_v39 }
 0x466   : > { %v5152_v42 = vmax.f32 %v5087_v52, %v5120_v62  ;;  %5044 = vst.msk [vmem:[#allocation2 + $0x138] sm:$0xff] %vm5004_vm2, %v4979_v27  ;;  %v4314_v5 = vadd.f32 %v4202_v0, %v3780_v46 }
 0x467   : > { %v4739_v14 = vpop.f32.mrf.mxu0  ;;  %v5214_v54 = vld [vmem:[#allocation3 + $0x80] ss:$2 sm:$0xff]  ;;  %v5246_v22 = vld [vmem:[#allocation3 + $0x81] ss:$2 sm:$0xff]  ;;  %5989 = vmatmul.msk.f32.gmra.mxu1 %vm318_vm1, %v8530_v3  ;;  %v5088_v3 = vld [vmem:[#allocation2 + $0x118] sm:$0xff] }
 0x468   : > { %v5269_v17 = vmax.f32 %v5214_v54, %v5246_v22  ;;  %5184 = vst.msk [vmem:[#allocation3 + $0x90] sm:$0xff] %vm5004_vm2, %v5152_v42  ;;  %v4848_v1 = vadd.f32 %v4736_v41, %v4314_v5  ;;  %6121 = vmatmul.msk.f32.gmra.mxu2 %vm318_vm1, %v6055_v25  ;;  %v6059_v42 = vld [vmem:[%s6694_s6 + $0x2b0] sm:$0xff]  ;;  %v8887_v22 = vld [vmem:[#allocation12_spill] sm:$0xff] }
 0x469   : > { %6251 = vmatmul.msk.f32.gmra.mxu3 %vm318_vm1, %v6185_v10  ;;  %v6189_v5 = vld [vmem:[%s6694_s6 + $0x2b1] sm:$0xff] }
 0x46a   : > { %6381 = vmatmul.msk.f32.gmra.mxu0 %vm318_vm1, %v8588_v28  ;;  %5285 = vst.msk [vmem:[%s8110_s5 + $0x40] sm:$0xff] %vm5004_vm2, %v5269_v17  ;;  %v4916_v32 = vadd.f32 %v8373_v15, %v4848_v1 }
 0x46b   : > { %v3671_v21 = vpop.f32.mrf.mxu2 }
 0x46c   : > { %v4980_v44 = vmax.f32 %v4916_v32, 0.0  ;;  %v3781_v63 = vadd.f32 %v3671_v21, %v3244_v38  ;;  %v4205_v53 = vpop.f32.mrf.mxu3  ;;  %v3137_v45 = vpop.f32.mrf.mxu1 }
 0x46d   : > { %v5121_v12 = vld [vmem:[#allocation2 + $0x138] sm:$0xff]  ;;  %v3245_v43 = vadd.f32 %v3137_v45, %v7725_v58 }
 0x46e   : > { %v5153_v61 = vmax.f32 %v5088_v3, %v5121_v12  ;;  %5045 = vst.msk [vmem:[#allocation2 + $0x140] sm:$0xff] %vm5004_vm2, %v4980_v44  ;;  %v4315_v11 = vadd.f32 %v4205_v53, %v3781_v63  ;;  %v6060_v53 = vld [vmem:[%s6694_s6 + $0x2b8] sm:$0xff] }
 0x46f   : > { %v4742_v35 = vpop.f32.mrf.mxu0  ;;  %5990 = vmatmul.msk.f32.gmra.mxu1 %vm318_vm1, %v8544_v4  ;;  %v6190_v3 = vld [vmem:[%s6694_s6 + $0x2b9] sm:$0xff] }
 0x470   : > { %5185 = vst.msk [vmem:[#allocation3 + $0x98] sm:$0xff] %vm5004_vm2, %v5153_v61  ;;  %v4849_v39 = vadd.f32 %v4739_v14, %v4315_v11  ;;  %6122 = vmatmul.msk.f32.gmra.mxu2 %vm318_vm1, %v6056_v40  ;;  %v6319_v14 = vld [vmem:[%s6694_s6 + $0x2b2] sm:$0xff]  ;;  %v6320_v45 = vld [vmem:[%s6694_s6 + $0x2ba] sm:$0xff] }
 0x471   : > { %6252 = vmatmul.msk.f32.gmra.mxu3 %vm318_vm1, %v6186_v16  ;;  %v8888_v61 = vld [vmem:[#allocation14_spill] sm:$0xff] }
 0x472   : > { %6382 = vmatmul.msk.f32.gmra.mxu0 %vm318_vm1, %v8605_v57  ;;  %v4917_v8 = vadd.f32 %v8373_v15, %v4849_v39 }
 0x473   : > { %v3674_v9 = vpop.f32.mrf.mxu2 }
 0x474   : > { %v4981_v36 = vmax.f32 %v4917_v8, 0.0  ;;  %v3782_v31 = vadd.f32 %v3674_v9, %v3245_v43  ;;  %v4208_v51 = vpop.f32.mrf.mxu3  ;;  %v3140_v6 = vpop.f32.mrf.mxu1 }
 0x475   : > { %v3246_v37 = vadd.f32 %v3140_v6, %v7737_v13  ;;  %v8886_v13 = vld [vmem:[#allocation10_spill] sm:$0xff]  ;;  %v5089_v9 = vld [vmem:[#allocation2 + $0x140] sm:$0xff] }
 0x476   : > { %5046 = vst.msk [vmem:[#allocation2 + $0x148] sm:$0xff] %vm5004_vm2, %v4981_v36  ;;  %v4316_v4 = vadd.f32 %v4208_v51, %v3782_v31 }
 0x477   : > { %v4745_v7 = vpop.f32.mrf.mxu0  ;;  %v5216_v29 = vld [vmem:[#allocation3 + $0x90] ss:$2 sm:$0xff]  ;;  %v5248_v2 = vld [vmem:[#allocation3 + $0x91] ss:$2 sm:$0xff]  ;;  %5991 = vmatmul.msk.f32.gmra.mxu1 %vm318_vm1, %v8558_v56  ;;  %v6058_v56 = vld [vmem:[%s6694_s6 + $0x2a8] sm:$0xff] }
 0x478   : > { %v5270_v58 = vmax.f32 %v5216_v29, %v5248_v2  ;;  %v4850_v49 = vadd.f32 %v4742_v35, %v4316_v4  ;;  %6123 = vmatmul.msk.f32.gmra.mxu2 %vm318_vm1, %v6057_v34  ;;  %v6191_v34 = vld [vmem:[%s6694_s6 + $0x2c1] sm:$0xff] }
 0x479   : > { %6253 = vmatmul.msk.f32.gmra.mxu3 %vm318_vm1, %v6187_v47  ;;  %v6321_v47 = vld [vmem:[%s6694_s6 + $0x2c2] sm:$0xff] }
 0x47a   : > { %6383 = vmatmul.msk.f32.gmra.mxu0 %vm318_vm1, %v8620_v23  ;;  %5286 = vst.msk [vmem:[%s8110_s5 + $0x48] sm:$0xff] %vm5004_vm2, %v5270_v58  ;;  %v4918_v55 = vadd.f32 %v8373_v15, %v4850_v49  ;;  %v8889_v29 = vld [vmem:[#allocation16_spill] sm:$0xff] }
 0x47b   : > { %v3677_v33 = vpop.f32.mrf.mxu2 }
 0x47c   : > { %v4982_v48 = vmax.f32 %v4918_v55, 0.0  ;;  %v3783_v59 = vadd.f32 %v3677_v33, %v3246_v37  ;;  %v4211_v30 = vpop.f32.mrf.mxu3  ;;  %v3143_v20 = vpop.f32.mrf.mxu1 }
 0x47d   : > { %v3247_v27 = vadd.f32 %v3143_v20, %v8886_v13 }
 0x47e   : > { %5047 = vst.msk [vmem:[#allocation2 + $0x150] sm:$0xff] %vm5004_vm2, %v4982_v48  ;;  %v4317_v41 = vadd.f32 %v4211_v30, %v3783_v59  ;;  %v5090_v48 = vld [vmem:[#allocation2 + $0x148] sm:$0xff] }
 0x47f   : > { %v4748_v60 = vpop.f32.mrf.mxu0  ;;  %5992 = vmatmul.msk.f32.gmra.mxu1 %vm318_vm1, %v8573_v24 }
 0x480   : > { %v4851_v19 = vadd.f32 %v4745_v7, %v4317_v41  ;;  %6124 = vmatmul.msk.f32.gmra.mxu2 %vm318_vm1, %v6058_v56 }
 0x481   : > { %6254 = vmatmul.msk.f32.gmra.mxu3 %vm318_vm1, %v6188_v26  ;;  %v8890_v26 = vld [vmem:[#allocation18_spill] sm:$0xff] }
 0x482   : > { %6384 = vmatmul.msk.f32.gmra.mxu0 %vm318_vm1, %v6318_v50  ;;  %v4919_v46 = vadd.f32 %v8373_v15, %v4851_v19 }
 0x483   : > { %v3680_v0 = vpop.f32.mrf.mxu2 }
 0x484   : > { %v4983_v52 = vmax.f32 %v4919_v46, 0.0  ;;  %v3784_v62 = vadd.f32 %v3680_v0, %v3247_v27  ;;  %v4214_v18 = vpop.f32.mrf.mxu3  ;;  %v3146_v25 = vpop.f32.mrf.mxu1 }
 0x485   : > { %v3248_v17 = vadd.f32 %v3146_v25, %v8887_v22  ;;  %v5091_v0 = vld [vmem:[#allocation2 + $0x150] sm:$0xff] }
 0x486   : > { %5048 = vst.msk [vmem:[#allocation2 + $0x158] sm:$0xff] %vm5004_vm2, %v4983_v52  ;;  %v4318_v24 = vadd.f32 %v4214_v18, %v3784_v62 }
 0x487   : > { %v4751_v10 = vpop.f32.mrf.mxu0  ;;  %5993 = vmatmul.msk.f32.gmra.mxu1 %vm318_vm1, %v8588_v28 }
 0x488   : > { %v4852_v54 = vadd.f32 %v4748_v60, %v4318_v24  ;;  %6125 = vmatmul.msk.f32.gmra.mxu2 %vm318_vm1, %v6059_v42 }
 0x489   : > { %6255 = vmatmul.msk.f32.gmra.mxu3 %vm318_vm1, %v6189_v5 }
 0x48a   : > { %6385 = vmatmul.msk.f32.gmra.mxu0 %vm318_vm1, %v6319_v14  ;;  %v4920_v1 = vadd.f32 %v8373_v15, %v4852_v54  ;;  %v8891_v54 = vld [vmem:[#allocation20_spill] sm:$0xff] }
 0x48b   : > { %v3683_v38 = vpop.f32.mrf.mxu2 }
 0x48c   : > { %v4984_v32 = vmax.f32 %v4920_v1, 0.0  ;;  %v3785_v21 = vadd.f32 %v3683_v38, %v3248_v17  ;;  %v4217_v44 = vpop.f32.mrf.mxu3  ;;  %v3149_v63 = vpop.f32.mrf.mxu1 }
 0x48d   : > { %v3249_v11 = vadd.f32 %v3149_v63, %v8888_v61 }
 0x48e   : > { %5049 = vst.msk [vmem:[#allocation2 + $0x160] sm:$0xff] %vm5004_vm2, %v4984_v32  ;;  %v4319_v28 = vadd.f32 %v4217_v44, %v3785_v21  ;;  %v5092_v44 = vld [vmem:[#allocation2 + $0x158] sm:$0xff] }
 0x48f   : > { %v4754_v12 = vpop.f32.mrf.mxu0  ;;  %5994 = vmatmul.msk.f32.gmra.mxu1 %vm318_vm1, %v8605_v57  ;;  %v6061_v57 = vld [vmem:[%s6694_s6 + $0x2c0] sm:$0xff] }
 0x490   : > { %v4853_v40 = vadd.f32 %v4751_v10, %v4319_v28  ;;  %6126 = vmatmul.msk.f32.gmra.mxu2 %vm318_vm1, %v6060_v53 }
 0x491   : > { %6256 = vmatmul.msk.f32.gmra.mxu3 %vm318_vm1, %v6190_v3 }
 0x492   : > { %6386 = vmatmul.msk.f32.gmra.mxu0 %vm318_vm1, %v6320_v45  ;;  %v4921_v16 = vadd.f32 %v8373_v15, %v4853_v40  ;;  %v8892_v40 = vld [vmem:[#allocation22_spill] sm:$0xff] }
 0x493   : > { %v3686_v35 = vpop.f32.mrf.mxu2 }
 0x494   : > { %v4985_v39 = vmax.f32 %v4921_v16, 0.0  ;;  %v3786_v43 = vadd.f32 %v3686_v35, %v3249_v11  ;;  %v4220_v8 = vpop.f32.mrf.mxu3  ;;  %v3152_v31 = vpop.f32.mrf.mxu1 }
 0x495   : > { %v5122_v36 = vld [vmem:[#allocation2 + $0x160] sm:$0xff]  ;;  %v3250_v2 = vadd.f32 %v3152_v31, %v8889_v29 }
 0x496   : > { %v5154_v51 = vmax.f32 %v5089_v9, %v5122_v36  ;;  %5050 = vst.msk [vmem:[#allocation2 + $0x168] sm:$0xff] %vm5004_vm2, %v4985_v39  ;;  %v4320_v6 = vadd.f32 %v4220_v8, %v3786_v43 }
 0x497   : > { %v4757_v4 = vpop.f32.mrf.mxu0  ;;  %5995 = vmatmul.msk.f32.gmra.mxu1 %vm318_vm1, %v8620_v23 }
 0x498   : > { %5186 = vst.msk [vmem:[#allocation3 + $0xa0] sm:$0xff] %vm5004_vm2, %v5154_v51  ;;  %v4854_v7 = vadd.f32 %v4754_v12, %v4320_v6  ;;  %6127 = vmatmul.msk.f32.gmra.mxu2 %vm318_vm1, %v6061_v57 }
 0x499   : > { %6257 = vmatmul.msk.f32.gmra.mxu3 %vm318_vm1, %v6191_v34  ;;  %v8893_v34 = vld [vmem:[#allocation24_spill] sm:$0xff] }
 0x49a   : > { %6387 = vmatmul.msk.f32.gmra.mxu0 %vm318_vm1, %v6321_v47  ;;  %v4922_v58 = vadd.f32 %v8373_v15, %v4854_v7 }
 0x49b   : > { %v3689_v49 = vpop.f32.mrf.mxu2 }
 0x49c   : > { %v4986_v37 = vmax.f32 %v4922_v58, 0.0  ;;  %v3787_v55 = vadd.f32 %v3689_v49, %v3250_v2  ;;  %v4223_v33 = vpop.f32.mrf.mxu3  ;;  %v3155_v30 = vpop.f32.mrf.mxu1 }
 0x49d   : > { %v5123_v59 = vld [vmem:[#allocation2 + $0x168] sm:$0xff]  ;;  %v3251_v60 = vadd.f32 %v3155_v30, %v8890_v26 }
 0x49e   : > { %v5155_v20 = vmax.f32 %v5090_v48, %v5123_v59  ;;  %5051 = vst.msk [vmem:[#allocation2 + $0x170] sm:$0xff] %vm5004_vm2, %v4986_v37  ;;  %v4321_v23 = vadd.f32 %v4223_v33, %v3787_v55  ;;  %v8894_v48 = vld [vmem:[#allocation26_spill] sm:$0xff] }
 0x49f   : > { %v4760_v56 = vpop.f32.mrf.mxu0 }
 0x4a0   : > { %5187 = vst.msk [vmem:[#allocation3 + $0xa8] sm:$0xff] %vm5004_vm2, %v5155_v20  ;;  %v4855_v41 = vadd.f32 %v4757_v4, %v4321_v23 }
 0x4a2   : > { %v4923_v50 = vadd.f32 %v8373_v15, %v4855_v41 }
 0x4a3   : > { %v3692_v19 = vpop.f32.mrf.mxu2 }
 0x4a4   : > { %v4987_v13 = vmax.f32 %v4923_v50, 0.0  ;;  %v3788_v27 = vadd.f32 %v3692_v19, %v3251_v60  ;;  %v4226_v46 = vpop.f32.mrf.mxu3  ;;  %v3158_v62 = vpop.f32.mrf.mxu1 }
 0x4a5   : > { %v5124_v52 = vld [vmem:[#allocation2 + $0x170] sm:$0xff]  ;;  %v3252_v22 = vadd.f32 %v3158_v62, %v8891_v54 }
 0x4a6   : > { %v5156_v18 = vmax.f32 %v5091_v0, %v5124_v52  ;;  %5052 = vst.msk [vmem:[#allocation2 + $0x178] sm:$0xff] %vm5004_vm2, %v4987_v13  ;;  %v4322_v25 = vadd.f32 %v4226_v46, %v3788_v27  ;;  %v8895_v13 = vld [vmem:[#allocation28_spill] sm:$0xff]  ;;  %v8704_v46 = vld [vmem:[%s8804_s2] ss:$0 sm:$0xff] }
 0x4a7   : > { %v4763_v42 = vpop.f32.mrf.mxu0  ;;  %v5218_v24 = vld [vmem:[#allocation3 + $0xa0] ss:$2 sm:$0xff]  ;;  %v5250_v5 = vld [vmem:[#allocation3 + $0xa1] ss:$2 sm:$0xff] }
 0x4a8   : > { %v5271_v10 = vmax.f32 %v5218_v24, %v5250_v5  ;;  %5188 = vst.msk [vmem:[#allocation3 + $0xb0] sm:$0xff] %vm5004_vm2, %v5156_v18  ;;  %v4856_v14 = vadd.f32 %v4760_v56, %v4322_v25 }
 0x4aa   : > { %5287 = vst.msk [vmem:[%s8110_s5 + $0x50] sm:$0xff] %vm5004_vm2, %v5271_v10  ;;  %v4924_v17 = vadd.f32 %v8373_v15, %v4856_v14  ;;  %v8896_v10 = vld [vmem:[#allocation30_spill] sm:$0xff] }
 0x4ab   : > { %v3695_v1 = vpop.f32.mrf.mxu2 }
 0x4ac   : > { %v4988_v38 = vmax.f32 %v4924_v17, 0.0  ;;  %v3789_v32 = vadd.f32 %v3695_v1, %v3252_v22  ;;  %v4229_v21 = vpop.f32.mrf.mxu3  ;;  %v3161_v53 = vpop.f32.mrf.mxu1 }
 0x4ad   : > { %v5125_v63 = vld [vmem:[#allocation2 + $0x178] sm:$0xff]  ;;  %v3253_v61 = vadd.f32 %v3161_v53, %v8892_v40 }
 0x4ae   : > { %v5157_v28 = vmax.f32 %v5092_v44, %v5125_v63  ;;  %5053 = vst.msk [vmem:[#allocation2 + $0x180] sm:$0xff] %vm5004_vm2, %v4988_v38  ;;  %v4323_v3 = vadd.f32 %v4229_v21, %v3789_v32 }
 0x4af   : > { %v4766_v12 = vpop.f32.mrf.mxu0 }
 0x4b0   : > { %5189 = vst.msk [vmem:[#allocation3 + $0xb8] sm:$0xff] %vm5004_vm2, %v5157_v28  ;;  %v4857_v45 = vadd.f32 %v4763_v42, %v4323_v3 }
 0x4b2   : > { %v4925_v11 = vadd.f32 %v8373_v15, %v4857_v45 }
 0x4b3   : > { %v3698_v16 = vpop.f32.mrf.mxu2 }
 0x4b4   : > { %v4989_v35 = vmax.f32 %v4925_v11, 0.0  ;;  %v3790_v39 = vadd.f32 %v3698_v16, %v3253_v61  ;;  %v4232_v43 = vpop.f32.mrf.mxu3  ;;  %v3164_v8 = vpop.f32.mrf.mxu1 }
 0x4b5   : > { %v3254_v4 = vadd.f32 %v3164_v8, %v8893_v34  ;;  %v5093_v32 = vld [vmem:[#allocation2 + $0x180] sm:$0xff] }
 0x4b6   : > { %5054 = vst.msk [vmem:[#allocation2 + $0x188] sm:$0xff] %vm5004_vm2, %v4989_v35  ;;  %v4324_v9 = vadd.f32 %v4232_v43, %v3790_v39 }
 0x4b7   : > { %v4769_v36 = vpop.f32.mrf.mxu0  ;;  %v5220_v31 = vld [vmem:[#allocation3 + $0xb0] ss:$2 sm:$0xff]  ;;  %v5252_v57 = vld [vmem:[#allocation3 + $0xb1] ss:$2 sm:$0xff] }
 0x4b8   : > { %v5272_v51 = vmax.f32 %v5220_v31, %v5252_v57  ;;  %v4858_v6 = vadd.f32 %v4766_v12, %v4324_v9  ;;  %v8897_v12 = vld [vmem:[#allocation32_spill] sm:$0xff] }
 0x4ba   : > { %5288 = vst.msk [vmem:[%s8110_s5 + $0x58] sm:$0xff] %vm5004_vm2, %v5272_v51  ;;  %v4926_v47 = vadd.f32 %v8373_v15, %v4858_v6  ;;  %v8898_v51 = vld [vmem:[#allocation34_spill] sm:$0xff] }
 0x4bb   : > { %v3701_v7 = vpop.f32.mrf.mxu2 }
 0x4bc   : > { %v4990_v29 = vmax.f32 %v4926_v47, 0.0  ;;  %v3791_v2 = vadd.f32 %v3701_v7, %v3254_v4  ;;  %v4235_v58 = vpop.f32.mrf.mxu3  ;;  %v3167_v49 = vpop.f32.mrf.mxu1 }
 0x4bd   : > { %v3255_v59 = vadd.f32 %v3167_v49, %v8894_v48  ;;  %v5094_v39 = vld [vmem:[#allocation2 + $0x188] sm:$0xff] }
 0x4be   : > { %5055 = vst.msk [vmem:[#allocation2 + $0x190] sm:$0xff] %vm5004_vm2, %v4990_v29  ;;  %v4325_v37 = vadd.f32 %v4235_v58, %v3791_v2 }
 0x4bf   : > { %v4772_v55 = vpop.f32.mrf.mxu0 }
 0x4c0   : > { %v4859_v33 = vadd.f32 %v4769_v36, %v4325_v37 }
 0x4c2   : > { %v4927_v30 = vadd.f32 %v8373_v15, %v4859_v33 }
 0x4c3   : > { %v3704_v20 = vpop.f32.mrf.mxu2 }
 0x4c4   : > { %v4991_v23 = vmax.f32 %v4927_v30, 0.0  ;;  %v3792_v56 = vadd.f32 %v3704_v20, %v3255_v59  ;;  %v4238_v41 = vpop.f32.mrf.mxu3  ;;  %v3170_v26 = vpop.f32.mrf.mxu1 }
 0x4c5   : > { %v3256_v27 = vadd.f32 %v3170_v26, %v8895_v13  ;;  %v5095_v2 = vld [vmem:[#allocation2 + $0x190] sm:$0xff] }
 0x4c6   : > { %5056 = vst.msk [vmem:[#allocation2 + $0x198] sm:$0xff] %vm5004_vm2, %v4991_v23  ;;  %v4326_v60 = vadd.f32 %v4238_v41, %v3792_v56  ;;  %v8899_v23 = vld [vmem:[#allocation7_spill] sm:$0xff] }
 0x4c7   : > { %v4775_v50 = vpop.f32.mrf.mxu0 }
 0x4c8   : > { %v4860_v19 = vadd.f32 %v4772_v55, %v4326_v60 }
 0x4ca   : > { %v4928_v0 = vadd.f32 %v8704_v46, %v4860_v19 }
 0x4cb   : > { %v3707_v15 = vpop.f32.mrf.mxu2 }
 0x4cc   : > { %v4992_v52 = vmax.f32 %v4928_v0, 0.0  ;;  %v3793_v62 = vadd.f32 %v3707_v15, %v3256_v27  ;;  %v4241_v18 = vpop.f32.mrf.mxu3  ;;  %v3173_v25 = vpop.f32.mrf.mxu1 }
 0x4cd   : > { %v3257_v14 = vadd.f32 %v3173_v25, %v8896_v10  ;;  %v5096_v13 = vld [vmem:[#allocation2 + $0x198] sm:$0xff]  ;;  %v8900_v25 = vld [vmem:[#allocation8_spill] sm:$0xff] }
 0x4ce   : > { %5057 = vst.msk [vmem:[#allocation2 + $0x1a0] sm:$0xff] %vm5004_vm2, %v4992_v52  ;;  %v4327_v42 = vadd.f32 %v4241_v18, %v3793_v62 }
 0x4cf   : > { %v4778_v24 = vpop.f32.mrf.mxu0 }
 0x4d0   : > { %v4861_v5 = vadd.f32 %v4775_v50, %v4327_v42 }
 0x4d2   : > { %v4929_v54 = vadd.f32 %v8704_v46, %v4861_v5 }
 0x4d3   : > { %v3710_v22 = vpop.f32.mrf.mxu2 }
 0x4d4   : > { %v4993_v17 = vmax.f32 %v4929_v54, 0.0  ;;  %v3794_v1 = vadd.f32 %v3710_v22, %v3257_v14  ;;  %v4244_v38 = vpop.f32.mrf.mxu3  ;;  %v3176_v44 = vpop.f32.mrf.mxu1 }
 0x4d5   : > { %v5126_v21 = vld [vmem:[#allocation2 + $0x1a0] sm:$0xff]  ;;  %v3258_v45 = vadd.f32 %v3176_v44, %v8897_v12 }
 0x4d6   : > { %v5158_v63 = vmax.f32 %v5093_v32, %v5126_v21  ;;  %5058 = vst.msk [vmem:[#allocation2 + $0x1a8] sm:$0xff] %vm5004_vm2, %v4993_v17  ;;  %v4328_v53 = vadd.f32 %v4244_v38, %v3794_v1 }
 0x4d7   : > { %v4781_v28 = vpop.f32.mrf.mxu0 }
 0x4d8   : > { %5190 = vst.msk [vmem:[#allocation3 + $0xc0] sm:$0xff] %vm5004_vm2, %v5158_v63  ;;  %v4862_v3 = vadd.f32 %v4778_v24, %v4328_v53  ;;  %v8901_v63 = vld [vmem:[#allocation9_spill] sm:$0xff] }
 0x4da   : > { %v4930_v40 = vadd.f32 %v8704_v46, %v4862_v3 }
 0x4db   : > { %v3713_v61 = vpop.f32.mrf.mxu2 }
 0x4dc   : > { %v4994_v11 = vmax.f32 %v4930_v40, 0.0  ;;  %v3795_v16 = vadd.f32 %v3713_v61, %v3258_v45  ;;  %v4247_v35 = vpop.f32.mrf.mxu3  ;;  %v3179_v8 = vpop.f32.mrf.mxu1 }
 0x4dd   : > { %v5127_v43 = vld [vmem:[#allocation2 + $0x1a8] sm:$0xff]  ;;  %v3259_v6 = vadd.f32 %v3179_v8, %v8898_v51 }
 0x4de   : > { %v5159_v9 = vmax.f32 %v5094_v39, %v5127_v43  ;;  %5059 = vst.msk [vmem:[#allocation2 + $0x1b0] sm:$0xff] %vm5004_vm2, %v4994_v11  ;;  %v4329_v36 = vadd.f32 %v4247_v35, %v3795_v16  ;;  %v8902_v39 = vld [vmem:[#allocation11_spill] sm:$0xff] }
 0x4df   : > { %v4784_v31 = vpop.f32.mrf.mxu0 }
 0x4e0   : > { %5191 = vst.msk [vmem:[#allocation3 + $0xc8] sm:$0xff] %vm5004_vm2, %v5159_v9  ;;  %v4863_v57 = vadd.f32 %v4781_v28, %v4329_v36 }
 0x4e2   : > { %v4931_v34 = vadd.f32 %v8704_v46, %v4863_v57 }
 0x4e3   : > { %v3716_v4 = vpop.f32.mrf.mxu2 }
 0x4e4   : > { %v4995_v47 = vmax.f32 %v4931_v34, 0.0  ;;  %v3796_v7 = vadd.f32 %v3716_v4, %v3259_v6  ;;  %v4250_v29 = vpop.f32.mrf.mxu3  ;;  %v3182_v49 = vpop.f32.mrf.mxu1 }
 0x4e5   : > { %v5128_v58 = vld [vmem:[#allocation2 + $0x1b0] sm:$0xff]  ;;  %v3260_v56 = vadd.f32 %v3182_v49, %v8899_v23 }
 0x4e6   : > { %v5160_v37 = vmax.f32 %v5095_v2, %v5128_v58  ;;  %5060 = vst.msk [vmem:[#allocation2 + $0x1b8] sm:$0xff] %vm5004_vm2, %v4995_v47  ;;  %v4330_v55 = vadd.f32 %v4250_v29, %v3796_v7  ;;  %v8903_v47 = vld [vmem:[#allocation13_spill] sm:$0xff] }
 0x4e7   : > { %v4787_v33 = vpop.f32.mrf.mxu0  ;;  %v5222_v48 = vld [vmem:[#allocation3 + $0xc0] ss:$2 sm:$0xff]  ;;  %v5254_v59 = vld [vmem:[#allocation3 + $0xc1] ss:$2 sm:$0xff] }
 0x4e8   : > { %v5273_v30 = vmax.f32 %v5222_v48, %v5254_v59  ;;  %5192 = vst.msk [vmem:[#allocation3 + $0xd0] sm:$0xff] %vm5004_vm2, %v5160_v37  ;;  %v4864_v20 = vadd.f32 %v4784_v31, %v4330_v55  ;;  %v8904_v59 = vld [vmem:[#allocation15_spill] sm:$0xff] }
 0x4ea   : > { %5289 = vst.msk [vmem:[%s8110_s5 + $0x60] sm:$0xff] %vm5004_vm2, %v5273_v30  ;;  %v4932_v41 = vadd.f32 %v8704_v46, %v4864_v20 }
 0x4eb   : > { %v3719_v26 = vpop.f32.mrf.mxu2 }
 0x4ec   : > { %v4996_v60 = vmax.f32 %v4932_v41, 0.0  ;;  %v3797_v50 = vadd.f32 %v3719_v26, %v3260_v56  ;;  %v4253_v19 = vpop.f32.mrf.mxu3  ;;  %v3185_v0 = vpop.f32.mrf.mxu1 }
 0x4ed   : > { %v5129_v27 = vld [vmem:[#allocation2 + $0x1b8] sm:$0xff]  ;;  %v3261_v42 = vadd.f32 %v3185_v0, %v8900_v25 }
 0x4ee   : > { %v5161_v15 = vmax.f32 %v5096_v13, %v5129_v27  ;;  %5061 = vst.msk [vmem:[#allocation2 + $0x1c0] sm:$0xff] %vm5004_vm2, %v4996_v60  ;;  %v4331_v52 = vadd.f32 %v4253_v19, %v3797_v50 }
 0x4ef   : > { %v4790_v62 = vpop.f32.mrf.mxu0 }
 0x4f0   : > { %5193 = vst.msk [vmem:[#allocation3 + $0xd8] sm:$0xff] %vm5004_vm2, %v5161_v15  ;;  %v4865_v18 = vadd.f32 %v4787_v33, %v4331_v52  ;;  %v8905_v52 = vld [vmem:[#allocation17_spill] sm:$0xff] }
 0x4f2   : > { %v4933_v24 = vadd.f32 %v8704_v46, %v4865_v18 }
 0x4f3   : > { %v3722_v5 = vpop.f32.mrf.mxu2 }
 0x4f4   : > { %v4997_v10 = vmax.f32 %v4933_v24, 0.0  ;;  %v3798_v14 = vadd.f32 %v3722_v5, %v3261_v42  ;;  %v4256_v54 = vpop.f32.mrf.mxu3  ;;  %v3188_v22 = vpop.f32.mrf.mxu1 }
 0x4f5   : > { %v3262_v53 = vadd.f32 %v3188_v22, %v8901_v63  ;;  %v5097_v50 = vld [vmem:[#allocation2 + $0x1c0] sm:$0xff] }
 0x4f6   : > { %5062 = vst.msk [vmem:[#allocation2 + $0x1c8] sm:$0xff] %vm5004_vm2, %v4997_v10  ;;  %v4332_v17 = vadd.f32 %v4256_v54, %v3798_v14 }
 0x4f7   : > { %v4793_v1 = vpop.f32.mrf.mxu0  ;;  %v5224_v38 = vld [vmem:[#allocation3 + $0xd0] ss:$2 sm:$0xff]  ;;  %v5256_v32 = vld [vmem:[#allocation3 + $0xd1] ss:$2 sm:$0xff] }
 0x4f8   : > { %v5274_v21 = vmax.f32 %v5224_v38, %v5256_v32  ;;  %v4866_v44 = vadd.f32 %v4790_v62, %v4332_v17 }
 0x4fa   : > { %5290 = vst.msk [vmem:[%s8110_s5 + $0x68] sm:$0xff] %vm5004_vm2, %v5274_v21  ;;  %v4934_v28 = vadd.f32 %v8704_v46, %v4866_v44 }
 0x4fb   : > { %v3725_v3 = vpop.f32.mrf.mxu2 }
 0x4fc   : > { %v4998_v12 = vmax.f32 %v4934_v28, 0.0  ;;  %v3799_v45 = vadd.f32 %v3725_v3, %v3262_v53  ;;  %v4259_v40 = vpop.f32.mrf.mxu3  ;;  %v3191_v61 = vpop.f32.mrf.mxu1 }
 0x4fd   : > { %v3263_v43 = vadd.f32 %v3191_v61, %v8902_v39  ;;  %v5098_v10 = vld [vmem:[#allocation2 + $0x1c8] sm:$0xff] }
 0x4fe   : > { %5063 = vst.msk [vmem:[#allocation2 + $0x1d0] sm:$0xff] %vm5004_vm2, %v4998_v12  ;;  %v4333_v11 = vadd.f32 %v4259_v40, %v3799_v45 }
 0x4ff   : > { %v4796_v16 = vpop.f32.mrf.mxu0 }
 0x500   : > { %v4867_v35 = vadd.f32 %v4793_v1, %v4333_v11 }
 0x502   : > { %v4935_v8 = vadd.f32 %v8704_v46, %v4867_v35 }
 0x503   : > { %v3728_v9 = vpop.f32.mrf.mxu2 }
 0x504   : > { %v4999_v36 = vmax.f32 %v4935_v8, 0.0  ;;  %v3800_v31 = vadd.f32 %v3728_v9, %v3263_v43  ;;  %v4262_v57 = vpop.f32.mrf.mxu3  ;;  %v3194_v51 = vpop.f32.mrf.mxu1 }
 0x505   : > { %v3264_v7 = vadd.f32 %v3194_v51, %v8903_v47  ;;  %v5099_v21 = vld [vmem:[#allocation2 + $0x1d0] sm:$0xff] }
 0x506   : > { %5064 = vst.msk [vmem:[#allocation2 + $0x1d8] sm:$0xff] %vm5004_vm2, %v4999_v36  ;;  %v4334_v6 = vadd.f32 %v4262_v57, %v3800_v31 }
 0x507   : > { %v4799_v4 = vpop.f32.mrf.mxu0 }
 0x508   : > { %v4868_v34 = vadd.f32 %v4796_v16, %v4334_v6 }
 0x50a   : > { %v4936_v29 = vadd.f32 %v8704_v46, %v4868_v34 }
 0x50b   : > { %v3731_v2 = vpop.f32.mrf.mxu2 }
 0x50c   : > { %v5000_v58 = vmax.f32 %v4936_v29, 0.0  ;;  %v3801_v49 = vadd.f32 %v3731_v2, %v3264_v7  ;;  %v4265_v37 = vpop.f32.mrf.mxu3  ;;  %v3197_v55 = vpop.f32.mrf.mxu1 }
 0x50d   : > { %v3265_v30 = vadd.f32 %v3197_v55, %v8904_v59 }
 0x50e   : > { %5065 = vst.msk [vmem:[#allocation2 + $0x1e0] sm:$0xff] %vm5004_vm2, %v5000_v58  ;;  %v4335_v33 = vadd.f32 %v4265_v37, %v3801_v49 }
 0x50f   : > { %v4802_v56 = vpop.f32.mrf.mxu0 }
 0x510   : > { %v4869_v48 = vadd.f32 %v4799_v4, %v4335_v33 }
 0x512   : > { %v4937_v20 = vadd.f32 %v8704_v46, %v4869_v48 }
 0x513   : > { %v3734_v23 = vpop.f32.mrf.mxu2 }
 0x514   : > { %v5001_v41 = vmax.f32 %v4937_v20, 0.0  ;;  %v3802_v26 = vadd.f32 %v3734_v23, %v3265_v30  ;;  %v4268_v60 = vpop.f32.mrf.mxu3  ;;  %v3200_v0 = vpop.f32.mrf.mxu1 }
 0x515   : > { %v5130_v19 = vld [vmem:[#allocation2 + $0x1e0] sm:$0xff]  ;;  %v3266_v62 = vadd.f32 %v3200_v0, %v8905_v52 }
 0x516   : > { %v5162_v13 = vmax.f32 %v5097_v50, %v5130_v19  ;;  %5066 = vst.msk [vmem:[#allocation2 + $0x1e8] sm:$0xff] %vm5004_vm2, %v5001_v41  ;;  %v4336_v27 = vadd.f32 %v4268_v60, %v3802_v26 }
 0x517   : > { %v4805_v54 = vpop.f32.mrf.mxu0 }
 0x518   : > { %5194 = vst.msk [vmem:[#allocation3 + $0xe0] sm:$0xff] %vm5004_vm2, %v5162_v13  ;;  %v4870_v15 = vadd.f32 %v4802_v56, %v4336_v27 }
 0x51a   : > { %v4938_v18 = vadd.f32 %v8704_v46, %v4870_v15 }
 0x51b   : > { %v3737_v25 = vpop.f32.mrf.mxu2 }
 0x51c   : > { %v5002_v42 = vmax.f32 %v4938_v18, 0.0  ;;  %v3803_v24 = vadd.f32 %v3737_v25, %v3266_v62  ;;  %v4271_v5 = vpop.f32.mrf.mxu3 }
 0x51d   : > { %v5131_v14 = vld [vmem:[#allocation2 + $0x1e8] sm:$0xff] }
 0x51e   : > { %v5163_v22 = vmax.f32 %v5098_v10, %v5131_v14  ;;  %5067 = vst.msk [vmem:[#allocation2 + $0x1f0] sm:$0xff] %vm5004_vm2, %v5002_v42  ;;  %v4337_v17 = vadd.f32 %v4271_v5, %v3803_v24 }
 0x520   : > { %5195 = vst.msk [vmem:[#allocation3 + $0xe8] sm:$0xff] %vm5004_vm2, %v5163_v22  ;;  %v4871_v1 = vadd.f32 %v4805_v54, %v4337_v17 }
 0x522   : > { %v4939_v38 = vadd.f32 %v8704_v46, %v4871_v1  ;;  %v5100_v46 = vld [vmem:[#allocation2 + $0x1d8] sm:$0xff] }
 0x524   : > { %v5003_v32 = vmax.f32 %v4939_v38, 0.0 }
 0x525   : > { %v5132_v44 = vld [vmem:[#allocation2 + $0x1f0] sm:$0xff] }
 0x526   : > { %v5164_v63 = vmax.f32 %v5099_v21, %v5132_v44  ;;  %5068 = vst.msk [vmem:[#allocation2 + $0x1f8] sm:$0xff] %vm5004_vm2, %v5003_v32 }
 0x527   : > { %v5226_v53 = vld [vmem:[#allocation3 + $0xe0] ss:$2 sm:$0xff]  ;;  %v5258_v28 = vld [vmem:[#allocation3 + $0xe1] ss:$2 sm:$0xff] }
 0x528   : > { %v5275_v3 = vmax.f32 %v5226_v53, %v5258_v28  ;;  %5196 = vst.msk [vmem:[#allocation3 + $0xf0] sm:$0xff] %vm5004_vm2, %v5164_v63 }
 0x52a   : > { %5291 = vst.msk [vmem:[%s8110_s5 + $0x70] sm:$0xff] %vm5004_vm2, %v5275_v3 }
 0x52d   : > { %v5133_v12 = vld [vmem:[#allocation2 + $0x1f8] sm:$0xff] }
 0x52e   : > { %v5165_v45 = vmax.f32 %v5100_v46, %v5133_v12 }
 0x530   : > { %5197 = vst.msk [vmem:[#allocation3 + $0xf8] sm:$0xff] %vm5004_vm2, %v5165_v45 }
 0x537   : > { %v5228_v40 = vld [vmem:[#allocation3 + $0xf0] ss:$2 sm:$0xff]  ;;  %v5260_v61 = vld [vmem:[#allocation3 + $0xf1] ss:$2 sm:$0xff] }
 0x538   : > { %v5276_v11 = vmax.f32 %v5228_v40, %v5260_v61 }
 0x53a   : > { %5292 = vst.msk [vmem:[%s8110_s5 + $0x78] sm:$0xff] %vm5004_vm2, %v5276_v11 }
 0x53b   : > { %6503 = shalt.err (!%p6500_p6)
}
 0x53c   : > { %s6572_s29 = smov 128   ;;  %s6573_s5 = smov 8  }
 0x53d   : > { %6400 = dma.vmem_to_hbm [thread:$0]  (%p6645_p3), %s5310_s4, 2048, %s5312_s7, %s5294_s15, %s6572_s29, %s6572_s29, %s6573_s5  }
 0x53e PF: > { %p6406_p7 = scmp.ge.s32.totalorder %s6570_s19, 2  ;;  %s5326_s21 = sand.u32 1, %s6542_s12  }
 0x53f   : > { %s5327_s24 = scalar_lea.sflag [#allocation5], %s5326_s21 }
 0x540   : > { %p6403_p9 = pnand %p6406_p7, %p6654_p8 }
 0x542   : > { %p6404_p10 = pneg %p6403_p9 }
 0x544   : > { %6537 = dma.done.wait (%p6404_p10), %s5327_s24, 2048  }
 0x545   : > { %6539 = vsyncadd (%p6404_p10), %s5327_s24, 4294965248  ;;  %s16_s19 = sadd.s32 1, %s6570_s19   ;;  %s8906_s12 = smov %s6546_s13 }
 0x546   : > { %p13_p11 = scmp.ge.s32.totalorder %s16_s19, 6   ;;  %s8907_s13 = smov %s6550_s14 }
 0x547   : > { %s8908_s14 = smov %s6663_s30  ;;  %s8909_s15 = smov %s6562_s17 }
 0x548   : > { %s8910_s16 = smov %s6566_s18  ;;  %s8911_s17 = smov %s8914_s22 }
 0x549   : > { %s8912_s18 = smov %s8918_s23  ;;  %15 = sbr.rel (!%p13_p11) target bundleno = 5 (0x5), region = 110 }
 0x54e   :  { %5333 = vsyncpa [#allocation5], 1 }
 0x54f   :  { %5335 = vsyncpa [#allocation5 + $0x1], 1 }

</bundles_post_ra>
